<compile_context>
chip_gen: v5e
topology: v5e:2x2
jax: 0.10.0
libtpu: 0.0.40
codegen_flags: <defaults>
</compile_context>

<pallas_src>
import functools
import math

import jax
import jax.numpy as jnp
from jax import lax
from jax.experimental import pallas as pl
from jax.experimental.pallas import tpu as pltpu

DIM = 32                       # d_model of the wrapper
D_STATE = 16
D_CONV = 4
EXPAND = 2
D_INNER = EXPAND * DIM         # 64
DT_RANK = math.ceil(DIM / 16)  # 2
GN_EPS = 1e-5
PAD_FRONT = 8                  # causal-conv history carried via front zero padding


# ----------------------------- in-kernel math ------------------------------
def _sigmoid(x):
    return 1.0 / (1.0 + jnp.exp(-x))


def _softplus(x):
    # stable softplus using only exp/log (Mosaic-friendly)
    return jnp.maximum(x, 0.0) + jnp.log(1.0 + jnp.exp(-jnp.abs(x)))


def _erf(x):
    # Abramowitz & Stegun 7.1.26 polynomial (max abs err ~1.5e-7).
    # TODO(synk): polynomial erf used instead of relying on lax.erf lowering.
    p = 0.3275911
    a1, a2, a3, a4, a5 = (0.254829592, -0.284496736, 1.421413741,
                          -1.453152027, 1.061405429)
    s = jnp.where(x >= 0.0, 1.0, -1.0)
    ax = jnp.abs(x)
    t = 1.0 / (1.0 + p * ax)
    poly = ((((a5 * t + a4) * t + a3) * t + a2) * t + a1) * t
    return s * (1.0 - poly * jnp.exp(-ax * ax))


def _gelu_exact(x):
    return 0.5 * x * (1.0 + _erf(x * (1.0 / math.sqrt(2.0))))


def _plan(L):
    """Pick (chunk, padded L). Single chunk for short sequences, else chunk=256."""
    if L <= 256:
        Lp = max(8, ((L + 7) // 8) * 8)
        return Lp, Lp
    chunk = 256
    Lp = ((L + chunk - 1) // chunk) * chunk
    return chunk, Lp


# ------------------------- fused MambaWrapper kernel -----------------------
def _fused_kernel(x_ref, win2_ref, wz_ref, convw_ref, convb_ref,
                  wd2_ref, dtb2_ref, wbc_ref, apack_ref, d_ref,
                  wof_ref, cb_ref, gw_ref, gb_ref,
                  o_ref,
                  da_ref, dbu_ref, a2_ref, b2_ref, hs_ref,
                  *, chunk, n_chunks, l_true, l_pad):
    half = chunk // 2
    un = min(8, half)                 # serial / pair-fill unroll
    une = max(1, min(8, half - 1))    # even-recovery unroll

    # loop-invariant weight loads (hoisted once)
    win2 = win2_ref[...]              # (32, 128)  in_proj x-half, duplicated lanes
    wz = wz_ref[...]                  # (32, 64)   in_proj z-half
    wd2 = wd2_ref[...]                # (128, 128) folded dt projection, duplicated
    dtb2 = dtb2_ref[...]              # (1, 128)
    wbc = wbc_ref[...]                # (128, 32)  B|C projection
    apack = apack_ref[...]            # (8, 128)   A packed: states split across lane halves
    d_row = d_ref[...]                # (1, 64)
    wof = wof_ref[...]                # (64, 32)   out_proj fused with 1x1 conv
    cb = cb_ref[...]                  # (1, 32)

    def process_chunk(ci, h_carry):
        if n_chunks == 1:
            s0 = 0
        else:
            s0 = pl.multiple_of(ci * chunk, chunk)

        # ---- load this chunk (+8 history columns), go time-major ----
        x_slab = x_ref[0, :, pl.ds(s0, chunk + PAD_FRONT)]       # (32, chunk+8)
        x_ext = jnp.transpose(x_slab, (1, 0))                    # (chunk+8, 32)

        # ---- in_proj (x-half duplicated across lane halves; z separate) ----
        xin2_ext = jnp.dot(x_ext, win2,
                           preferred_element_type=jnp.float32)   # (chunk+8, 128)
        z = jnp.dot(x_ext[PAD_FRONT:, :], wz,
                    preferred_element_type=jnp.float32)          # (chunk, 64)

        # ---- depthwise causal Conv1d + SiLU on full 128 lanes -> u2 = [u | u] ----
        base = PAD_FRONT - (D_CONV - 1)                          # = 5
        conv = jnp.zeros((chunk, 2 * D_INNER), jnp.float32)
        for k in range(D_CONV):
            conv = conv + xin2_ext[base + k:base + k + chunk, :] * convw_ref[k:k + 1, :]
        conv = conv + convb_ref[...]
        u2 = conv * _sigmoid(conv)                               # (chunk, 128)
        gate = z * _sigmoid(z)                                   # (chunk, 64) = silu(z)

        # ---- SSM projections (delta produced already lane-duplicated) ----
        delta2 = _softplus(
            jnp.dot(u2, wd2, preferred_element_type=jnp.float32) + dtb2)   # (chunk, 128)
        bc = jnp.dot(u2, wbc, preferred_element_type=jnp.float32)          # (chunk, 32)
        du2 = delta2 * u2                                                  # (chunk, 128)

        # ---- discretization into scratch (full-lane exp, state packed (8,128)) ----
        da_ref[...] = jnp.exp(delta2[:, None, :] * apack[None, :, :])
        b_lo = bc[:, 0:8]
        b_hi = bc[:, 8:16]
        bsel = jnp.concatenate(
            [jnp.broadcast_to(b_lo[:, :, None], (chunk, 8, D_INNER)),
             jnp.broadcast_to(b_hi[:, :, None], (chunk, 8, D_INNER))], axis=2)
        dbu_ref[...] = du2[:, None, :] * bsel

        # ---- blocked 2-step recurrence: pair compression (vector, independent) ----
        def fill_pair(i, c):
            d1 = da_ref[2 * i + 1]
            a2_ref[i] = d1 * da_ref[2 * i]
            b2_ref[i] = d1 * dbu_ref[2 * i] + dbu_ref[2 * i + 1]
            return c

        lax.fori_loop(0, half, fill_pair, 0, unroll=un)

        # ---- serial scan over pairs (half-length dependency chain) ----
        def scan_step(i, h):
            h = a2_ref[i] * h + b2_ref[i]
            hs_ref[2 * i + 1] = h
            return h

        h_last = lax.fori_loop(0, half, scan_step, h_carry, unroll=un)

        # ---- even-index state recovery (vector, independent) ----
        hs_ref[0] = da_ref[0] * h_carry + dbu_ref[0]

        def fill_even(i, c):
            hs_ref[2 * i] = da_ref[2 * i] * hs_ref[2 * i - 1] + dbu_ref[2 * i]
            return c

        lax.fori_loop(1, half, fill_even, 0, unroll=une)

        # ---- deferred C contraction + D skip + SiLU(z) gate ----
        c_lo = bc[:, 16:24]
        c_hi = bc[:, 24:32]
        csel = jnp.concatenate(
            [jnp.broadcast_to(c_lo[:, :, None], (chunk, 8, D_INNER)),
             jnp.broadcast_to(c_hi[:, :, None], (chunk, 8, D_INNER))], axis=2)
        y2 = jnp.sum(hs_ref[...] * csel, axis=1)                 # (chunk, 128)
        y = (y2[:, 0:D_INNER] + y2[:, D_INNER:] + u2[:, 0:D_INNER] * d_row) * gate

        # ---- fused out_proj + Conv1d(dim,dim,1) + exact GELU; store channel-major ----
        g = _gelu_exact(jnp.dot(y, wof, preferred_element_type=jnp.float32) + cb)
        o_ref[0, :, pl.ds(s0, chunk)] = jnp.transpose(g, (1, 0))
        return h_last

    h0 = jnp.zeros((8, 2 * D_INNER), jnp.float32)
    lax.fori_loop(0, n_chunks, process_chunk, h0)

    # ---- GroupNorm(1, dim): second pass over the (dim, L) pre-norm staging ----
    g_all = o_ref[0]                                             # (32, l_pad)
    if l_pad != l_true:
        mask = lax.broadcasted_iota(jnp.int32, (DIM, l_pad), 1) < l_true
        cnt = float(DIM * l_true)
        g_m = jnp.where(mask, g_all, 0.0)
        mean = jnp.sum(g_m) / cnt
        var = jnp.sum(jnp.where(mask, (g_all - mean) ** 2, 0.0)) / cnt
    else:
        mean = jnp.mean(g_all)
        var = jnp.mean((g_all - mean) ** 2)
    gn = (g_all - mean) * lax.rsqrt(var + GN_EPS)
    o_ref[0] = gn * gw_ref[...] + gb_ref[...]


# --------------------------------- wrapper ---------------------------------
def mamba_wrapper_forward(x, p):
    """x: (B, DIM, L) float32 (PyTorch NCL). Returns (B, DIM, L)."""
    B, C, L = x.shape
    assert C == DIM
    chunk, Lp = _plan(L)
    n_chunks = Lp // chunk

    # zero pad: 8 columns in front (causal-conv history), Lp - L at the back.
    x_pad = jnp.pad(x.astype(jnp.float32),
                    ((0, 0), (0, 0), (PAD_FRONT, Lp - L)))

    # ---------- host-side parameter pre-arrangement (free, done once) ----------
    in_w = p["in_proj_w"].astype(jnp.float32)                     # (128, 32)
    inx_t = in_w[:D_INNER, :].T                                   # (32, 64)
    inz_t = in_w[D_INNER:, :].T                                   # (32, 64)
    win2 = jnp.concatenate([inx_t, inx_t], axis=1)                # (32, 128)

    convw = p["conv_w"].astype(jnp.float32).T                     # (4, 64)
    convw2 = jnp.concatenate([convw, convw], axis=1)              # (4, 128)
    convb2 = jnp.concatenate([p["conv_b"], p["conv_b"]])[None, :]  # (1, 128)

    xp = p["x_proj_w"].astype(jnp.float32)                        # (34, 64)
    w_delta = (p["dt_proj_w"] @ xp[:DT_RANK, :]).T                # (64, 64) folded dt_proj
    wd2 = jnp.concatenate(
        [jnp.concatenate([w_delta, w_delta], axis=1),
         jnp.zeros((D_INNER, 2 * D_INNER), jnp.float32)], axis=0)  # (128, 128)
    dtb2 = jnp.concatenate([p["dt_proj_b"], p["dt_proj_b"]])[None, :]  # (1, 128)

    w_b = xp[DT_RANK:DT_RANK + D_STATE, :].T                      # (64, 16)
    w_c = xp[DT_RANK + D_STATE:, :].T                             # (64, 16)
    wbc = jnp.concatenate(
        [jnp.concatenate([w_b, w_c], axis=1),
         jnp.zeros((D_INNER, 2 * D_STATE), jnp.float32)], axis=0)  # (128, 32)

    a_neg_t = (-jnp.exp(p["A_log"])).astype(jnp.float32).T        # (16, 64)
    apack = jnp.concatenate([a_neg_t[0:8, :], a_neg_t[8:16, :]], axis=1)  # (8, 128)

    d_row = p["D"].astype(jnp.float32)[None, :]                   # (1, 64)
    wof = p["out_proj_w"].astype(jnp.float32).T @ p["cw_w"].astype(jnp.float32).T  # (64, 32)
    cb = p["cw_b"][None, :]                                       # (1, 32)
    gw = p["gn_w"][:, None]                                       # (32, 1)
    gb = p["gn_b"][:, None]                                       # (32, 1)

    def pspec(a):
        return pl.BlockSpec(a.shape, lambda b, _n=a.ndim: (0,) * _n)

    kernel = functools.partial(_fused_kernel, chunk=chunk, n_chunks=n_chunks,
                               l_true=L, l_pad=Lp)

    out = pl.pallas_call(
        kernel,
        out_shape=jax.ShapeDtypeStruct((B, DIM, Lp), jnp.float32),
        grid=(B,),
        in_specs=[pl.BlockSpec((1, DIM, PAD_FRONT + Lp), lambda b: (b, 0, 0)),
                  pspec(win2), pspec(inz_t), pspec(convw2), pspec(convb2),
                  pspec(wd2), pspec(dtb2), pspec(wbc), pspec(apack),
                  pspec(d_row), pspec(wof), pspec(cb), pspec(gw), pspec(gb)],
        out_specs=pl.BlockSpec((1, DIM, Lp), lambda b: (b, 0, 0)),
        scratch_shapes=[pltpu.VMEM((chunk, 8, 2 * D_INNER), jnp.float32),       # da
                        pltpu.VMEM((chunk, 8, 2 * D_INNER), jnp.float32),       # dbu
                        pltpu.VMEM((chunk // 2, 8, 2 * D_INNER), jnp.float32),  # a2 (pairs)
                        pltpu.VMEM((chunk // 2, 8, 2 * D_INNER), jnp.float32),  # b2 (pairs)
                        pltpu.VMEM((chunk, 8, 2 * D_INNER), jnp.float32)],      # h states
        compiler_params=pltpu.CompilerParams(
            dimension_semantics=("parallel",),
            vmem_limit_bytes=40 * 1024 * 1024),
    )(x_pad, win2, inz_t, convw2, convb2, wd2, dtb2, wbc, apack,
      d_row, wof, cb, gw, gb)

    return out[:, :, :L]


# ----------------------- deterministic parameter init ----------------------
def init_params(key):
    ks = jax.random.split(key, 10)

    def w(k, shape, fan_in):
        return jax.random.normal(k, shape, jnp.float32) / math.sqrt(fan_in)

    p = {}
    p["in_proj_w"] = w(ks[0], (2 * D_INNER, DIM), DIM)
    p["conv_w"] = w(ks[1], (D_INNER, D_CONV), D_CONV)        # depthwise conv weight (squeezed)
    p["conv_b"] = 0.1 * jax.random.normal(ks[2], (D_INNER,), jnp.float32)
    p["x_proj_w"] = w(ks[3], (DT_RANK + 2 * D_STATE, D_INNER), D_INNER)
    p["dt_proj_w"] = w(ks[4], (D_INNER, DT_RANK), DT_RANK)
    p["dt_proj_b"] = 0.1 * jax.random.normal(ks[5], (D_INNER,), jnp.float32)
    p["A_log"] = jnp.log(jnp.broadcast_to(
        jnp.arange(1, D_STATE + 1, dtype=jnp.float32), (D_INNER, D_STATE)))
    p["D"] = jnp.ones((D_INNER,), jnp.float32)
    p["out_proj_w"] = w(ks[6], (DIM, D_INNER), D_INNER)
    p["cw_w"] = w(ks[7], (DIM, DIM), DIM)                    # Conv1d(dim,dim,1) weight squeezed
    p["cw_b"] = 0.1 * jax.random.normal(ks[8], (DIM,), jnp.float32)
    p["gn_w"] = 1.0 + 0.1 * jax.random.normal(ks[9], (DIM,), jnp.float32)
    p["gn_b"] = jnp.zeros((DIM,), jnp.float32)
    return p


# ------------------------- pure-JAX reference model ------------------------
def reference_forward(x, p):
    B, C, L = x.shape
    h = jnp.transpose(x, (0, 2, 1))                          # (B, L, DIM)
    xz = h @ p["in_proj_w"].T
    x_in, z = xz[..., :D_INNER], xz[..., D_INNER:]
    x_pad = jnp.pad(x_in, ((0, 0), (D_CONV - 1, 0), (0, 0)))
    u = sum(p["conv_w"][:, k][None, None, :] * x_pad[:, k:k + L, :]
            for k in range(D_CONV)) + p["conv_b"][None, None, :]
    u = u * jax.nn.sigmoid(u)
    x_dbl = u @ p["x_proj_w"].T
    dt = x_dbl[..., :DT_RANK]
    Bm = x_dbl[..., DT_RANK:DT_RANK + D_STATE]
    Cm = x_dbl[..., DT_RANK + D_STATE:]
    delta = jax.nn.softplus(dt @ p["dt_proj_w"].T + p["dt_proj_b"])
    A = -jnp.exp(p["A_log"])                                 # (D_INNER, D_STATE)

    def scan_one(delta_b, b_b, c_b, u_b):
        def step(hst, inp):
            d_t, bt, ct, ut = inp
            da = jnp.exp(d_t[:, None] * A)
            dbu = d_t[:, None] * bt[None, :] * ut[:, None]
            hst = da * hst + dbu
            y = (hst * ct[None, :]).sum(-1) + p["D"] * ut
            return hst, y
        _, ys = lax.scan(step, jnp.zeros((D_INNER, D_STATE), jnp.float32),
                         (delta_b, b_b, c_b, u_b))
        return ys

    ys = jax.vmap(scan_one)(delta, Bm, Cm, u)
    y = ys * (z * jax.nn.sigmoid(z))
    y = y @ p["out_proj_w"].T
    y = y @ p["cw_w"].T + p["cw_b"]
    y = jax.nn.gelu(y, approximate=False)
    mean = y.mean(axis=(1, 2), keepdims=True)
    var = ((y - mean) ** 2).mean(axis=(1, 2), keepdims=True)
    y = (y - mean) * lax.rsqrt(var + GN_EPS)
    y = y * p["gn_w"][None, None, :] + p["gn_b"][None, None, :]
    return jnp.transpose(y, (0, 2, 1))


# ----------------------------------- main -----------------------------------
if __name__ == "__main__":
    B, L = 2, 16
    key = jax.random.PRNGKey(0)
    kx, kp = jax.random.split(key)
    x = jax.random.normal(kx, (B, DIM, L), jnp.float32)      # PyTorch NCL input
    params = init_params(kp)

    out = jax.jit(mamba_wrapper_forward)(x, params)
    out = jax.block_until_ready(out)

    assert out.shape == (B, DIM, L)
    assert bool(jnp.all(jnp.isfinite(out)))

    ref = reference_forward(x, params)
    max_err = float(jnp.max(jnp.abs(out - ref)))
    assert max_err < 2e-3, f"mismatch vs reference, max abs err = {max_err}"

    print("KERNEL_OK")
</pallas_src>

<mosaic_0001>
module attributes {stable_mosaic.version = 11 : i64} {
  func.func @_fused_kernel(%arg0: i32, %arg1: memref<1x32x24xf32, #tpu.memory_space<vmem>>, %arg2: memref<32x128xf32, #tpu.memory_space<vmem>>, %arg3: memref<32x64xf32, #tpu.memory_space<vmem>>, %arg4: memref<4x128xf32, #tpu.memory_space<vmem>>, %arg5: memref<1x128xf32, #tpu.memory_space<vmem>>, %arg6: memref<128x128xf32, #tpu.memory_space<vmem>>, %arg7: memref<1x128xf32, #tpu.memory_space<vmem>>, %arg8: memref<128x32xf32, #tpu.memory_space<vmem>>, %arg9: memref<8x128xf32, #tpu.memory_space<vmem>>, %arg10: memref<1x64xf32, #tpu.memory_space<vmem>>, %arg11: memref<64x32xf32, #tpu.memory_space<vmem>>, %arg12: memref<1x32xf32, #tpu.memory_space<vmem>>, %arg13: memref<32x1xf32, #tpu.memory_space<vmem>>, %arg14: memref<32x1xf32, #tpu.memory_space<vmem>>, %arg15: memref<1x32x16xf32, #tpu.memory_space<vmem>>, %arg16: memref<16x8x128xf32, #tpu.memory_space<vmem>>, %arg17: memref<16x8x128xf32, #tpu.memory_space<vmem>>, %arg18: memref<8x8x128xf32, #tpu.memory_space<vmem>>, %arg19: memref<8x8x128xf32, #tpu.memory_space<vmem>>, %arg20: memref<16x8x128xf32, #tpu.memory_space<vmem>>) attributes {dimension_semantics = [#tpu.dimension_semantics<parallel>], iteration_bounds = array<i64: 2>, scalar_prefetch = 0 : i64, scratch_operands = 5 : i64, tpu.core_type = #tpu.core_type<tc>, window_params = [{transform_indices = @transform_0, window_bounds = array<i64: 1, 32, 24>}, {pipeline_mode = #tpu.pipeline_mode<synchronous>, transform_indices = @transform_1, window_bounds = array<i64: 32, 128>}, {pipeline_mode = #tpu.pipeline_mode<synchronous>, transform_indices = @transform_2, window_bounds = array<i64: 32, 64>}, {pipeline_mode = #tpu.pipeline_mode<synchronous>, transform_indices = @transform_3, window_bounds = array<i64: 4, 128>}, {pipeline_mode = #tpu.pipeline_mode<synchronous>, transform_indices = @transform_4, window_bounds = array<i64: 1, 128>}, {pipeline_mode = #tpu.pipeline_mode<synchronous>, transform_indices = @transform_5, window_bounds = array<i64: 128, 128>}, {pipeline_mode = #tpu.pipeline_mode<synchronous>, transform_indices = @transform_6, window_bounds = array<i64: 1, 128>}, {pipeline_mode = #tpu.pipeline_mode<synchronous>, transform_indices = @transform_7, window_bounds = array<i64: 128, 32>}, {pipeline_mode = #tpu.pipeline_mode<synchronous>, transform_indices = @transform_8, window_bounds = array<i64: 8, 128>}, {pipeline_mode = #tpu.pipeline_mode<synchronous>, transform_indices = @transform_9, window_bounds = array<i64: 1, 64>}, {pipeline_mode = #tpu.pipeline_mode<synchronous>, transform_indices = @transform_10, window_bounds = array<i64: 64, 32>}, {pipeline_mode = #tpu.pipeline_mode<synchronous>, transform_indices = @transform_11, window_bounds = array<i64: 1, 32>}, {pipeline_mode = #tpu.pipeline_mode<synchronous>, transform_indices = @transform_12, window_bounds = array<i64: 32, 1>}, {pipeline_mode = #tpu.pipeline_mode<synchronous>, transform_indices = @transform_13, window_bounds = array<i64: 32, 1>}, {transform_indices = @transform_14, window_bounds = array<i64: 1, 32, 16>}]} {
    %c0 = arith.constant 0 : index
    %c0_0 = arith.constant 0 : index
    %0 = vector.load %arg2[%c0, %c0_0] : memref<32x128xf32, #tpu.memory_space<vmem>>, vector<32x128xf32>
    %c0_1 = arith.constant 0 : index
    %c0_2 = arith.constant 0 : index
    %1 = vector.load %arg3[%c0_1, %c0_2] : memref<32x64xf32, #tpu.memory_space<vmem>>, vector<32x64xf32>
    %c0_3 = arith.constant 0 : index
    %c0_4 = arith.constant 0 : index
    %2 = vector.load %arg6[%c0_3, %c0_4] : memref<128x128xf32, #tpu.memory_space<vmem>>, vector<128x128xf32>
    %c0_5 = arith.constant 0 : index
    %c0_6 = arith.constant 0 : index
    %3 = vector.load %arg7[%c0_5, %c0_6] : memref<1x128xf32, #tpu.memory_space<vmem>>, vector<1x128xf32>
    %c0_7 = arith.constant 0 : index
    %c0_8 = arith.constant 0 : index
    %4 = vector.load %arg8[%c0_7, %c0_8] : memref<128x32xf32, #tpu.memory_space<vmem>>, vector<128x32xf32>
    %c0_9 = arith.constant 0 : index
    %c0_10 = arith.constant 0 : index
    %5 = vector.load %arg9[%c0_9, %c0_10] : memref<8x128xf32, #tpu.memory_space<vmem>>, vector<8x128xf32>
    %c0_11 = arith.constant 0 : index
    %c0_12 = arith.constant 0 : index
    %6 = vector.load %arg10[%c0_11, %c0_12] : memref<1x64xf32, #tpu.memory_space<vmem>>, vector<1x64xf32>
    %c0_13 = arith.constant 0 : index
    %c0_14 = arith.constant 0 : index
    %7 = vector.load %arg11[%c0_13, %c0_14] : memref<64x32xf32, #tpu.memory_space<vmem>>, vector<64x32xf32>
    %c0_15 = arith.constant 0 : index
    %c0_16 = arith.constant 0 : index
    %8 = vector.load %arg12[%c0_15, %c0_16] : memref<1x32xf32, #tpu.memory_space<vmem>>, vector<1x32xf32>
    %cst = arith.constant 0.000000e+00 : f32
    %9 = vector.broadcast %cst : f32 to vector<8x128xf32>
    %c0_i32 = arith.constant 0 : i32
    %c0_17 = arith.constant 0 : index
    %c0_18 = arith.constant 0 : index
    %c0_19 = arith.constant 0 : index
    %10 = vector.load %arg1[%c0_17, %c0_18, %c0_19] : memref<1x32x24xf32, #tpu.memory_space<vmem>>, vector<1x32x24xf32>
    %11 = vector.shape_cast %10 : vector<1x32x24xf32> to vector<32x24xf32>
    %12 = tpu.transpose %11, [1, 0] : vector<32x24xf32> -> vector<24x32xf32>
    %cst_20 = arith.constant dense<0.000000e+00> : vector<24x128xf32>
    %13 = tpu.matmul %12, %0, %cst_20 {dimension_numbers = #tpu.dot_dimension_numbers<[1], [0], [0], [1], [0, 0, 1, 1], [], []>} : vector<24x32xf32>, vector<32x128xf32>, vector<24x128xf32> -> vector<24x128xf32>
    %14 = vector.extract_strided_slice %12 {offsets = [8, 0], sizes = [16, 32], strides = [1, 1]} : vector<24x32xf32> to vector<16x32xf32>
    %cst_21 = arith.constant dense<0.000000e+00> : vector<16x64xf32>
    %15 = tpu.matmul %14, %1, %cst_21 {dimension_numbers = #tpu.dot_dimension_numbers<[1], [0], [0], [1], [0, 0, 1, 1], [], []>} : vector<16x32xf32>, vector<32x64xf32>, vector<16x64xf32> -> vector<16x64xf32>
    %cst_22 = arith.constant 0.000000e+00 : f32
    %16 = vector.broadcast %cst_22 : f32 to vector<16x128xf32>
    %17 = vector.extract_strided_slice %13 {offsets = [5, 0], sizes = [16, 128], strides = [1, 1]} : vector<24x128xf32> to vector<16x128xf32>
    %c0_23 = arith.constant 0 : index
    %c0_24 = arith.constant 0 : index
    %18 = vector.load %arg4[%c0_23, %c0_24] : memref<4x128xf32, #tpu.memory_space<vmem>>, vector<1x128xf32>
    %19 = vector.broadcast %18 : vector<1x128xf32> to vector<16x128xf32>
    %20 = arith.mulf %17, %19 : vector<16x128xf32>
    %21 = arith.addf %16, %20 : vector<16x128xf32>
    %22 = vector.extract_strided_slice %13 {offsets = [6, 0], sizes = [16, 128], strides = [1, 1]} : vector<24x128xf32> to vector<16x128xf32>
    %c1 = arith.constant 1 : index
    %c0_25 = arith.constant 0 : index
    %23 = vector.load %arg4[%c1, %c0_25] : memref<4x128xf32, #tpu.memory_space<vmem>>, vector<1x128xf32>
    %24 = vector.broadcast %23 : vector<1x128xf32> to vector<16x128xf32>
    %25 = arith.mulf %22, %24 : vector<16x128xf32>
    %26 = arith.addf %21, %25 : vector<16x128xf32>
    %27 = vector.extract_strided_slice %13 {offsets = [7, 0], sizes = [16, 128], strides = [1, 1]} : vector<24x128xf32> to vector<16x128xf32>
    %c2 = arith.constant 2 : index
    %c0_26 = arith.constant 0 : index
    %28 = vector.load %arg4[%c2, %c0_26] : memref<4x128xf32, #tpu.memory_space<vmem>>, vector<1x128xf32>
    %29 = vector.broadcast %28 : vector<1x128xf32> to vector<16x128xf32>
    %30 = arith.mulf %27, %29 : vector<16x128xf32>
    %31 = arith.addf %26, %30 : vector<16x128xf32>
    %32 = vector.extract_strided_slice %13 {offsets = [8, 0], sizes = [16, 128], strides = [1, 1]} : vector<24x128xf32> to vector<16x128xf32>
    %c3 = arith.constant 3 : index
    %c0_27 = arith.constant 0 : index
    %33 = vector.load %arg4[%c3, %c0_27] : memref<4x128xf32, #tpu.memory_space<vmem>>, vector<1x128xf32>
    %34 = vector.broadcast %33 : vector<1x128xf32> to vector<16x128xf32>
    %35 = arith.mulf %32, %34 : vector<16x128xf32>
    %36 = arith.addf %31, %35 : vector<16x128xf32>
    %c0_28 = arith.constant 0 : index
    %c0_29 = arith.constant 0 : index
    %37 = vector.load %arg5[%c0_28, %c0_29] : memref<1x128xf32, #tpu.memory_space<vmem>>, vector<1x128xf32>
    %38 = vector.broadcast %37 : vector<1x128xf32> to vector<16x128xf32>
    %39 = arith.addf %36, %38 : vector<16x128xf32>
    %cst_30 = arith.constant 0.000000e+00 : f32
    %40 = vector.broadcast %cst_30 : f32 to vector<16x128xf32>
    %41 = arith.subf %40, %39 : vector<16x128xf32>
    %42 = math.exp %41 : vector<16x128xf32>
    %cst_31 = arith.constant 1.000000e+00 : f32
    %43 = vector.broadcast %cst_31 : f32 to vector<16x128xf32>
    %44 = arith.addf %43, %42 : vector<16x128xf32>
    %cst_32 = arith.constant 1.000000e+00 : f32
    %45 = vector.broadcast %cst_32 : f32 to vector<16x128xf32>
    %46 = arith.divf %45, %44 : vector<16x128xf32>
    %47 = arith.mulf %39, %46 : vector<16x128xf32>
    %cst_33 = arith.constant 0.000000e+00 : f32
    %48 = vector.broadcast %cst_33 : f32 to vector<16x64xf32>
    %49 = arith.subf %48, %15 : vector<16x64xf32>
    %50 = math.exp %49 : vector<16x64xf32>
    %cst_34 = arith.constant 1.000000e+00 : f32
    %51 = vector.broadcast %cst_34 : f32 to vector<16x64xf32>
    %52 = arith.addf %51, %50 : vector<16x64xf32>
    %cst_35 = arith.constant 1.000000e+00 : f32
    %53 = vector.broadcast %cst_35 : f32 to vector<16x64xf32>
    %54 = arith.divf %53, %52 : vector<16x64xf32>
    %55 = arith.mulf %15, %54 : vector<16x64xf32>
    %cst_36 = arith.constant dense<0.000000e+00> : vector<16x128xf32>
    %56 = tpu.matmul %47, %2, %cst_36 {dimension_numbers = #tpu.dot_dimension_numbers<[1], [0], [0], [1], [0, 0, 1, 1], [], []>} : vector<16x128xf32>, vector<128x128xf32>, vector<16x128xf32> -> vector<16x128xf32>
    %57 = vector.broadcast %3 : vector<1x128xf32> to vector<16x128xf32>
    %58 = arith.addf %56, %57 : vector<16x128xf32>
    %cst_37 = arith.constant 0.000000e+00 : f32
    %59 = vector.broadcast %cst_37 : f32 to vector<16x128xf32>
    %60 = arith.maximumf %58, %59 : vector<16x128xf32>
    %61 = math.absf %58 : vector<16x128xf32>
    %cst_38 = arith.constant 0.000000e+00 : f32
    %62 = vector.broadcast %cst_38 : f32 to vector<16x128xf32>
    %63 = arith.subf %62, %61 : vector<16x128xf32>
    %64 = math.exp %63 : vector<16x128xf32>
    %cst_39 = arith.constant 1.000000e+00 : f32
    %65 = vector.broadcast %cst_39 : f32 to vector<16x128xf32>
    %66 = arith.addf %65, %64 : vector<16x128xf32>
    %67 = math.log %66 : vector<16x128xf32>
    %68 = arith.addf %60, %67 : vector<16x128xf32>
    %cst_40 = arith.constant dense<0.000000e+00> : vector<16x32xf32>
    %69 = tpu.matmul %47, %4, %cst_40 {dimension_numbers = #tpu.dot_dimension_numbers<[1], [0], [0], [1], [0, 0, 1, 1], [], []>} : vector<16x128xf32>, vector<128x32xf32>, vector<16x32xf32> -> vector<16x32xf32>
    %70 = arith.mulf %68, %47 : vector<16x128xf32>
    %71 = vector.shape_cast %68 : vector<16x128xf32> to vector<16x1x128xf32>
    %72 = vector.shape_cast %5 : vector<8x128xf32> to vector<1x8x128xf32>
    %73 = vector.broadcast %71 : vector<16x1x128xf32> to vector<16x8x128xf32>
    %74 = vector.broadcast %72 : vector<1x8x128xf32> to vector<16x8x128xf32>
    %75 = arith.mulf %73, %74 : vector<16x8x128xf32>
    %76 = math.exp %75 : vector<16x8x128xf32>
    %c0_41 = arith.constant 0 : index
    %c0_42 = arith.constant 0 : index
    %c0_43 = arith.constant 0 : index
    %77 = vector.load %arg16[%c0_41, %c0_42, %c0_43] : memref<16x8x128xf32, #tpu.memory_space<vmem>>, vector<16x8x128xf32>
    tpu.vector_store %arg16[%c0_41, %c0_42, %c0_43], %76 {strides = array<i32>} : memref<16x8x128xf32, #tpu.memory_space<vmem>>, vector<16x8x128xf32>,
    %78 = vector.extract_strided_slice %69 {offsets = [0, 0], sizes = [16, 8], strides = [1, 1]} : vector<16x32xf32> to vector<16x8xf32>
    %79 = vector.extract_strided_slice %69 {offsets = [0, 8], sizes = [16, 8], strides = [1, 1]} : vector<16x32xf32> to vector<16x8xf32>
    %80 = vector.shape_cast %78 : vector<16x8xf32> to vector<16x8x1xf32>
    %81 = vector.shape_cast %80 : vector<16x8x1xf32> to vector<16x8x1xf32>
    %82 = vector.broadcast %81 : vector<16x8x1xf32> to vector<16x8x64xf32>
    %83 = vector.shape_cast %79 : vector<16x8xf32> to vector<16x8x1xf32>
    %84 = vector.shape_cast %83 : vector<16x8x1xf32> to vector<16x8x1xf32>
    %85 = vector.broadcast %84 : vector<16x8x1xf32> to vector<16x8x64xf32>
    %86 = tpu.concatenate %82, %85 in 2 : vector<16x8x64xf32>, vector<16x8x64xf32> -> vector<16x8x128xf32>
    %87 = vector.shape_cast %70 : vector<16x128xf32> to vector<16x1x128xf32>
    %88 = vector.broadcast %87 : vector<16x1x128xf32> to vector<16x8x128xf32>
    %89 = arith.mulf %88, %86 : vector<16x8x128xf32>
    %c0_44 = arith.constant 0 : index
    %c0_45 = arith.constant 0 : index
    %c0_46 = arith.constant 0 : index
    %90 = vector.load %arg17[%c0_44, %c0_45, %c0_46] : memref<16x8x128xf32, #tpu.memory_space<vmem>>, vector<16x8x128xf32>
    tpu.vector_store %arg17[%c0_44, %c0_45, %c0_46], %89 {strides = array<i32>} : memref<16x8x128xf32, #tpu.memory_space<vmem>>, vector<16x8x128xf32>,
    %c0_i32_47 = arith.constant 0 : i32
    %c2_i32 = arith.constant 2 : i32
    %91 = arith.muli %c2_i32, %c0_i32_47 : i32
    %c1_i32 = arith.constant 1 : i32
    %92 = arith.addi %91, %c1_i32 : i32
    %93 = arith.index_cast %92 : i32 to index
    %c0_48 = arith.constant 0 : index
    %c0_49 = arith.constant 0 : index
    %94 = vector.load %arg16[%93, %c0_48, %c0_49] : memref<16x8x128xf32, #tpu.memory_space<vmem>>, vector<1x8x128xf32>
    %95 = vector.shape_cast %94 : vector<1x8x128xf32> to vector<8x128xf32>
    %c2_i32_50 = arith.constant 2 : i32
    %96 = arith.muli %c2_i32_50, %c0_i32_47 : i32
    %97 = arith.index_cast %96 : i32 to index
    %c0_51 = arith.constant 0 : index
    %c0_52 = arith.constant 0 : index
    %98 = vector.load %arg16[%97, %c0_51, %c0_52] : memref<16x8x128xf32, #tpu.memory_space<vmem>>, vector<1x8x128xf32>
    %99 = vector.shape_cast %98 : vector<1x8x128xf32> to vector<8x128xf32>
    %100 = arith.mulf %95, %99 : vector<8x128xf32>
    %101 = arith.index_cast %c0_i32_47 : i32 to index
    %c0_53 = arith.constant 0 : index
    %c0_54 = arith.constant 0 : index
    %102 = vector.load %arg18[%101, %c0_53, %c0_54] : memref<8x8x128xf32, #tpu.memory_space<vmem>>, vector<1x8x128xf32>
    %103 = vector.shape_cast %102 : vector<1x8x128xf32> to vector<8x128xf32>
    %104 = vector.shape_cast %100 : vector<8x128xf32> to vector<1x8x128xf32>
    tpu.vector_store %arg18[%101, %c0_53, %c0_54], %104 {strides = array<i32>} : memref<8x8x128xf32, #tpu.memory_space<vmem>>, vector<1x8x128xf32>,
    %c2_i32_55 = arith.constant 2 : i32
    %105 = arith.muli %c2_i32_55, %c0_i32_47 : i32
    %106 = arith.index_cast %105 : i32 to index
    %c0_56 = arith.constant 0 : index
    %c0_57 = arith.constant 0 : index
    %107 = vector.load %arg17[%106, %c0_56, %c0_57] : memref<16x8x128xf32, #tpu.memory_space<vmem>>, vector<1x8x128xf32>
    %108 = vector.shape_cast %107 : vector<1x8x128xf32> to vector<8x128xf32>
    %109 = arith.mulf %95, %108 : vector<8x128xf32>
    %c2_i32_58 = arith.constant 2 : i32
    %110 = arith.muli %c2_i32_58, %c0_i32_47 : i32
    %c1_i32_59 = arith.constant 1 : i32
    %111 = arith.addi %110, %c1_i32_59 : i32
    %112 = arith.index_cast %111 : i32 to index
    %c0_60 = arith.constant 0 : index
    %c0_61 = arith.constant 0 : index
    %113 = vector.load %arg17[%112, %c0_60, %c0_61] : memref<16x8x128xf32, #tpu.memory_space<vmem>>, vector<1x8x128xf32>
    %114 = vector.shape_cast %113 : vector<1x8x128xf32> to vector<8x128xf32>
    %115 = arith.addf %109, %114 : vector<8x128xf32>
    %116 = arith.index_cast %c0_i32_47 : i32 to index
    %c0_62 = arith.constant 0 : index
    %c0_63 = arith.constant 0 : index
    %117 = vector.load %arg19[%116, %c0_62, %c0_63] : memref<8x8x128xf32, #tpu.memory_space<vmem>>, vector<1x8x128xf32>
    %118 = vector.shape_cast %117 : vector<1x8x128xf32> to vector<8x128xf32>
    %119 = vector.shape_cast %115 : vector<8x128xf32> to vector<1x8x128xf32>
    tpu.vector_store %arg19[%116, %c0_62, %c0_63], %119 {strides = array<i32>} : memref<8x8x128xf32, #tpu.memory_space<vmem>>, vector<1x8x128xf32>,
    %c1_i32_64 = arith.constant 1 : i32
    %c2_i32_65 = arith.constant 2 : i32
    %120 = arith.muli %c2_i32_65, %c1_i32_64 : i32
    %c1_i32_66 = arith.constant 1 : i32
    %121 = arith.addi %120, %c1_i32_66 : i32
    %122 = arith.index_cast %121 : i32 to index
    %c0_67 = arith.constant 0 : index
    %c0_68 = arith.constant 0 : index
    %123 = vector.load %arg16[%122, %c0_67, %c0_68] : memref<16x8x128xf32, #tpu.memory_space<vmem>>, vector<1x8x128xf32>
    %124 = vector.shape_cast %123 : vector<1x8x128xf32> to vector<8x128xf32>
    %c2_i32_69 = arith.constant 2 : i32
    %125 = arith.muli %c2_i32_69, %c1_i32_64 : i32
    %126 = arith.index_cast %125 : i32 to index
    %c0_70 = arith.constant 0 : index
    %c0_71 = arith.constant 0 : index
    %127 = vector.load %arg16[%126, %c0_70, %c0_71] : memref<16x8x128xf32, #tpu.memory_space<vmem>>, vector<1x8x128xf32>
    %128 = vector.shape_cast %127 : vector<1x8x128xf32> to vector<8x128xf32>
    %129 = arith.mulf %124, %128 : vector<8x128xf32>
    %130 = arith.index_cast %c1_i32_64 : i32 to index
    %c0_72 = arith.constant 0 : index
    %c0_73 = arith.constant 0 : index
    %131 = vector.load %arg18[%130, %c0_72, %c0_73] : memref<8x8x128xf32, #tpu.memory_space<vmem>>, vector<1x8x128xf32>
    %132 = vector.shape_cast %131 : vector<1x8x128xf32> to vector<8x128xf32>
    %133 = vector.shape_cast %129 : vector<8x128xf32> to vector<1x8x128xf32>
    tpu.vector_store %arg18[%130, %c0_72, %c0_73], %133 {strides = array<i32>} : memref<8x8x128xf32, #tpu.memory_space<vmem>>, vector<1x8x128xf32>,
    %c2_i32_74 = arith.constant 2 : i32
    %134 = arith.muli %c2_i32_74, %c1_i32_64 : i32
    %135 = arith.index_cast %134 : i32 to index
    %c0_75 = arith.constant 0 : index
    %c0_76 = arith.constant 0 : index
    %136 = vector.load %arg17[%135, %c0_75, %c0_76] : memref<16x8x128xf32, #tpu.memory_space<vmem>>, vector<1x8x128xf32>
    %137 = vector.shape_cast %136 : vector<1x8x128xf32> to vector<8x128xf32>
    %138 = arith.mulf %124, %137 : vector<8x128xf32>
    %c2_i32_77 = arith.constant 2 : i32
    %139 = arith.muli %c2_i32_77, %c1_i32_64 : i32
    %c1_i32_78 = arith.constant 1 : i32
    %140 = arith.addi %139, %c1_i32_78 : i32
    %141 = arith.index_cast %140 : i32 to index
    %c0_79 = arith.constant 0 : index
    %c0_80 = arith.constant 0 : index
    %142 = vector.load %arg17[%141, %c0_79, %c0_80] : memref<16x8x128xf32, #tpu.memory_space<vmem>>, vector<1x8x128xf32>
    %143 = vector.shape_cast %142 : vector<1x8x128xf32> to vector<8x128xf32>
    %144 = arith.addf %138, %143 : vector<8x128xf32>
    %145 = arith.index_cast %c1_i32_64 : i32 to index
    %c0_81 = arith.constant 0 : index
    %c0_82 = arith.constant 0 : index
    %146 = vector.load %arg19[%145, %c0_81, %c0_82] : memref<8x8x128xf32, #tpu.memory_space<vmem>>, vector<1x8x128xf32>
    %147 = vector.shape_cast %146 : vector<1x8x128xf32> to vector<8x128xf32>
    %148 = vector.shape_cast %144 : vector<8x128xf32> to vector<1x8x128xf32>
    tpu.vector_store %arg19[%145, %c0_81, %c0_82], %148 {strides = array<i32>} : memref<8x8x128xf32, #tpu.memory_space<vmem>>, vector<1x8x128xf32>,
    %c2_i32_83 = arith.constant 2 : i32
    %c2_i32_84 = arith.constant 2 : i32
    %149 = arith.muli %c2_i32_84, %c2_i32_83 : i32
    %c1_i32_85 = arith.constant 1 : i32
    %150 = arith.addi %149, %c1_i32_85 : i32
    %151 = arith.index_cast %150 : i32 to index
    %c0_86 = arith.constant 0 : index
    %c0_87 = arith.constant 0 : index
    %152 = vector.load %arg16[%151, %c0_86, %c0_87] : memref<16x8x128xf32, #tpu.memory_space<vmem>>, vector<1x8x128xf32>
    %153 = vector.shape_cast %152 : vector<1x8x128xf32> to vector<8x128xf32>
    %c2_i32_88 = arith.constant 2 : i32
    %154 = arith.muli %c2_i32_88, %c2_i32_83 : i32
    %155 = arith.index_cast %154 : i32 to index
    %c0_89 = arith.constant 0 : index
    %c0_90 = arith.constant 0 : index
    %156 = vector.load %arg16[%155, %c0_89, %c0_90] : memref<16x8x128xf32, #tpu.memory_space<vmem>>, vector<1x8x128xf32>
    %157 = vector.shape_cast %156 : vector<1x8x128xf32> to vector<8x128xf32>
    %158 = arith.mulf %153, %157 : vector<8x128xf32>
    %159 = arith.index_cast %c2_i32_83 : i32 to index
    %c0_91 = arith.constant 0 : index
    %c0_92 = arith.constant 0 : index
    %160 = vector.load %arg18[%159, %c0_91, %c0_92] : memref<8x8x128xf32, #tpu.memory_space<vmem>>, vector<1x8x128xf32>
    %161 = vector.shape_cast %160 : vector<1x8x128xf32> to vector<8x128xf32>
    %162 = vector.shape_cast %158 : vector<8x128xf32> to vector<1x8x128xf32>
    tpu.vector_store %arg18[%159, %c0_91, %c0_92], %162 {strides = array<i32>} : memref<8x8x128xf32, #tpu.memory_space<vmem>>, vector<1x8x128xf32>,
    %c2_i32_93 = arith.constant 2 : i32
    %163 = arith.muli %c2_i32_93, %c2_i32_83 : i32
    %164 = arith.index_cast %163 : i32 to index
    %c0_94 = arith.constant 0 : index
    %c0_95 = arith.constant 0 : index
    %165 = vector.load %arg17[%164, %c0_94, %c0_95] : memref<16x8x128xf32, #tpu.memory_space<vmem>>, vector<1x8x128xf32>
    %166 = vector.shape_cast %165 : vector<1x8x128xf32> to vector<8x128xf32>
    %167 = arith.mulf %153, %166 : vector<8x128xf32>
    %c2_i32_96 = arith.constant 2 : i32
    %168 = arith.muli %c2_i32_96, %c2_i32_83 : i32
    %c1_i32_97 = arith.constant 1 : i32
    %169 = arith.addi %168, %c1_i32_97 : i32
    %170 = arith.index_cast %169 : i32 to index
    %c0_98 = arith.constant 0 : index
    %c0_99 = arith.constant 0 : index
    %171 = vector.load %arg17[%170, %c0_98, %c0_99] : memref<16x8x128xf32, #tpu.memory_space<vmem>>, vector<1x8x128xf32>
    %172 = vector.shape_cast %171 : vector<1x8x128xf32> to vector<8x128xf32>
    %173 = arith.addf %167, %172 : vector<8x128xf32>
    %174 = arith.index_cast %c2_i32_83 : i32 to index
    %c0_100 = arith.constant 0 : index
    %c0_101 = arith.constant 0 : index
    %175 = vector.load %arg19[%174, %c0_100, %c0_101] : memref<8x8x128xf32, #tpu.memory_space<vmem>>, vector<1x8x128xf32>
    %176 = vector.shape_cast %175 : vector<1x8x128xf32> to vector<8x128xf32>
    %177 = vector.shape_cast %173 : vector<8x128xf32> to vector<1x8x128xf32>
    tpu.vector_store %arg19[%174, %c0_100, %c0_101], %177 {strides = array<i32>} : memref<8x8x128xf32, #tpu.memory_space<vmem>>, vector<1x8x128xf32>,
    %c3_i32 = arith.constant 3 : i32
    %c2_i32_102 = arith.constant 2 : i32
    %178 = arith.muli %c2_i32_102, %c3_i32 : i32
    %c1_i32_103 = arith.constant 1 : i32
    %179 = arith.addi %178, %c1_i32_103 : i32
    %180 = arith.index_cast %179 : i32 to index
    %c0_104 = arith.constant 0 : index
    %c0_105 = arith.constant 0 : index
    %181 = vector.load %arg16[%180, %c0_104, %c0_105] : memref<16x8x128xf32, #tpu.memory_space<vmem>>, vector<1x8x128xf32>
    %182 = vector.shape_cast %181 : vector<1x8x128xf32> to vector<8x128xf32>
    %c2_i32_106 = arith.constant 2 : i32
    %183 = arith.muli %c2_i32_106, %c3_i32 : i32
    %184 = arith.index_cast %183 : i32 to index
    %c0_107 = arith.constant 0 : index
    %c0_108 = arith.constant 0 : index
    %185 = vector.load %arg16[%184, %c0_107, %c0_108] : memref<16x8x128xf32, #tpu.memory_space<vmem>>, vector<1x8x128xf32>
    %186 = vector.shape_cast %185 : vector<1x8x128xf32> to vector<8x128xf32>
    %187 = arith.mulf %182, %186 : vector<8x128xf32>
    %188 = arith.index_cast %c3_i32 : i32 to index
    %c0_109 = arith.constant 0 : index
    %c0_110 = arith.constant 0 : index
    %189 = vector.load %arg18[%188, %c0_109, %c0_110] : memref<8x8x128xf32, #tpu.memory_space<vmem>>, vector<1x8x128xf32>
    %190 = vector.shape_cast %189 : vector<1x8x128xf32> to vector<8x128xf32>
    %191 = vector.shape_cast %187 : vector<8x128xf32> to vector<1x8x128xf32>
    tpu.vector_store %arg18[%188, %c0_109, %c0_110], %191 {strides = array<i32>} : memref<8x8x128xf32, #tpu.memory_space<vmem>>, vector<1x8x128xf32>,
    %c2_i32_111 = arith.constant 2 : i32
    %192 = arith.muli %c2_i32_111, %c3_i32 : i32
    %193 = arith.index_cast %192 : i32 to index
    %c0_112 = arith.constant 0 : index
    %c0_113 = arith.constant 0 : index
    %194 = vector.load %arg17[%193, %c0_112, %c0_113] : memref<16x8x128xf32, #tpu.memory_space<vmem>>, vector<1x8x128xf32>
    %195 = vector.shape_cast %194 : vector<1x8x128xf32> to vector<8x128xf32>
    %196 = arith.mulf %182, %195 : vector<8x128xf32>
    %c2_i32_114 = arith.constant 2 : i32
    %197 = arith.muli %c2_i32_114, %c3_i32 : i32
    %c1_i32_115 = arith.constant 1 : i32
    %198 = arith.addi %197, %c1_i32_115 : i32
    %199 = arith.index_cast %198 : i32 to index
    %c0_116 = arith.constant 0 : index
    %c0_117 = arith.constant 0 : index
    %200 = vector.load %arg17[%199, %c0_116, %c0_117] : memref<16x8x128xf32, #tpu.memory_space<vmem>>, vector<1x8x128xf32>
    %201 = vector.shape_cast %200 : vector<1x8x128xf32> to vector<8x128xf32>
    %202 = arith.addf %196, %201 : vector<8x128xf32>
    %203 = arith.index_cast %c3_i32 : i32 to index
    %c0_118 = arith.constant 0 : index
    %c0_119 = arith.constant 0 : index
    %204 = vector.load %arg19[%203, %c0_118, %c0_119] : memref<8x8x128xf32, #tpu.memory_space<vmem>>, vector<1x8x128xf32>
    %205 = vector.shape_cast %204 : vector<1x8x128xf32> to vector<8x128xf32>
    %206 = vector.shape_cast %202 : vector<8x128xf32> to vector<1x8x128xf32>
    tpu.vector_store %arg19[%203, %c0_118, %c0_119], %206 {strides = array<i32>} : memref<8x8x128xf32, #tpu.memory_space<vmem>>, vector<1x8x128xf32>,
    %c4_i32 = arith.constant 4 : i32
    %c2_i32_120 = arith.constant 2 : i32
    %207 = arith.muli %c2_i32_120, %c4_i32 : i32
    %c1_i32_121 = arith.constant 1 : i32
    %208 = arith.addi %207, %c1_i32_121 : i32
    %209 = arith.index_cast %208 : i32 to index
    %c0_122 = arith.constant 0 : index
    %c0_123 = arith.constant 0 : index
    %210 = vector.load %arg16[%209, %c0_122, %c0_123] : memref<16x8x128xf32, #tpu.memory_space<vmem>>, vector<1x8x128xf32>
    %211 = vector.shape_cast %210 : vector<1x8x128xf32> to vector<8x128xf32>
    %c2_i32_124 = arith.constant 2 : i32
    %212 = arith.muli %c2_i32_124, %c4_i32 : i32
    %213 = arith.index_cast %212 : i32 to index
    %c0_125 = arith.constant 0 : index
    %c0_126 = arith.constant 0 : index
    %214 = vector.load %arg16[%213, %c0_125, %c0_126] : memref<16x8x128xf32, #tpu.memory_space<vmem>>, vector<1x8x128xf32>
    %215 = vector.shape_cast %214 : vector<1x8x128xf32> to vector<8x128xf32>
    %216 = arith.mulf %211, %215 : vector<8x128xf32>
    %217 = arith.index_cast %c4_i32 : i32 to index
    %c0_127 = arith.constant 0 : index
    %c0_128 = arith.constant 0 : index
    %218 = vector.load %arg18[%217, %c0_127, %c0_128] : memref<8x8x128xf32, #tpu.memory_space<vmem>>, vector<1x8x128xf32>
    %219 = vector.shape_cast %218 : vector<1x8x128xf32> to vector<8x128xf32>
    %220 = vector.shape_cast %216 : vector<8x128xf32> to vector<1x8x128xf32>
    tpu.vector_store %arg18[%217, %c0_127, %c0_128], %220 {strides = array<i32>} : memref<8x8x128xf32, #tpu.memory_space<vmem>>, vector<1x8x128xf32>,
    %c2_i32_129 = arith.constant 2 : i32
    %221 = arith.muli %c2_i32_129, %c4_i32 : i32
    %222 = arith.index_cast %221 : i32 to index
    %c0_130 = arith.constant 0 : index
    %c0_131 = arith.constant 0 : index
    %223 = vector.load %arg17[%222, %c0_130, %c0_131] : memref<16x8x128xf32, #tpu.memory_space<vmem>>, vector<1x8x128xf32>
    %224 = vector.shape_cast %223 : vector<1x8x128xf32> to vector<8x128xf32>
    %225 = arith.mulf %211, %224 : vector<8x128xf32>
    %c2_i32_132 = arith.constant 2 : i32
    %226 = arith.muli %c2_i32_132, %c4_i32 : i32
    %c1_i32_133 = arith.constant 1 : i32
    %227 = arith.addi %226, %c1_i32_133 : i32
    %228 = arith.index_cast %227 : i32 to index
    %c0_134 = arith.constant 0 : index
    %c0_135 = arith.constant 0 : index
    %229 = vector.load %arg17[%228, %c0_134, %c0_135] : memref<16x8x128xf32, #tpu.memory_space<vmem>>, vector<1x8x128xf32>
    %230 = vector.shape_cast %229 : vector<1x8x128xf32> to vector<8x128xf32>
    %231 = arith.addf %225, %230 : vector<8x128xf32>
    %232 = arith.index_cast %c4_i32 : i32 to index
    %c0_136 = arith.constant 0 : index
    %c0_137 = arith.constant 0 : index
    %233 = vector.load %arg19[%232, %c0_136, %c0_137] : memref<8x8x128xf32, #tpu.memory_space<vmem>>, vector<1x8x128xf32>
    %234 = vector.shape_cast %233 : vector<1x8x128xf32> to vector<8x128xf32>
    %235 = vector.shape_cast %231 : vector<8x128xf32> to vector<1x8x128xf32>
    tpu.vector_store %arg19[%232, %c0_136, %c0_137], %235 {strides = array<i32>} : memref<8x8x128xf32, #tpu.memory_space<vmem>>, vector<1x8x128xf32>,
    %c5_i32 = arith.constant 5 : i32
    %c2_i32_138 = arith.constant 2 : i32
    %236 = arith.muli %c2_i32_138, %c5_i32 : i32
    %c1_i32_139 = arith.constant 1 : i32
    %237 = arith.addi %236, %c1_i32_139 : i32
    %238 = arith.index_cast %237 : i32 to index
    %c0_140 = arith.constant 0 : index
    %c0_141 = arith.constant 0 : index
    %239 = vector.load %arg16[%238, %c0_140, %c0_141] : memref<16x8x128xf32, #tpu.memory_space<vmem>>, vector<1x8x128xf32>
    %240 = vector.shape_cast %239 : vector<1x8x128xf32> to vector<8x128xf32>
    %c2_i32_142 = arith.constant 2 : i32
    %241 = arith.muli %c2_i32_142, %c5_i32 : i32
    %242 = arith.index_cast %241 : i32 to index
    %c0_143 = arith.constant 0 : index
    %c0_144 = arith.constant 0 : index
    %243 = vector.load %arg16[%242, %c0_143, %c0_144] : memref<16x8x128xf32, #tpu.memory_space<vmem>>, vector<1x8x128xf32>
    %244 = vector.shape_cast %243 : vector<1x8x128xf32> to vector<8x128xf32>
    %245 = arith.mulf %240, %244 : vector<8x128xf32>
    %246 = arith.index_cast %c5_i32 : i32 to index
    %c0_145 = arith.constant 0 : index
    %c0_146 = arith.constant 0 : index
    %247 = vector.load %arg18[%246, %c0_145, %c0_146] : memref<8x8x128xf32, #tpu.memory_space<vmem>>, vector<1x8x128xf32>
    %248 = vector.shape_cast %247 : vector<1x8x128xf32> to vector<8x128xf32>
    %249 = vector.shape_cast %245 : vector<8x128xf32> to vector<1x8x128xf32>
    tpu.vector_store %arg18[%246, %c0_145, %c0_146], %249 {strides = array<i32>} : memref<8x8x128xf32, #tpu.memory_space<vmem>>, vector<1x8x128xf32>,
    %c2_i32_147 = arith.constant 2 : i32
    %250 = arith.muli %c2_i32_147, %c5_i32 : i32
    %251 = arith.index_cast %250 : i32 to index
    %c0_148 = arith.constant 0 : index
    %c0_149 = arith.constant 0 : index
    %252 = vector.load %arg17[%251, %c0_148, %c0_149] : memref<16x8x128xf32, #tpu.memory_space<vmem>>, vector<1x8x128xf32>
    %253 = vector.shape_cast %252 : vector<1x8x128xf32> to vector<8x128xf32>
    %254 = arith.mulf %240, %253 : vector<8x128xf32>
    %c2_i32_150 = arith.constant 2 : i32
    %255 = arith.muli %c2_i32_150, %c5_i32 : i32
    %c1_i32_151 = arith.constant 1 : i32
    %256 = arith.addi %255, %c1_i32_151 : i32
    %257 = arith.index_cast %256 : i32 to index
    %c0_152 = arith.constant 0 : index
    %c0_153 = arith.constant 0 : index
    %258 = vector.load %arg17[%257, %c0_152, %c0_153] : memref<16x8x128xf32, #tpu.memory_space<vmem>>, vector<1x8x128xf32>
    %259 = vector.shape_cast %258 : vector<1x8x128xf32> to vector<8x128xf32>
    %260 = arith.addf %254, %259 : vector<8x128xf32>
    %261 = arith.index_cast %c5_i32 : i32 to index
    %c0_154 = arith.constant 0 : index
    %c0_155 = arith.constant 0 : index
    %262 = vector.load %arg19[%261, %c0_154, %c0_155] : memref<8x8x128xf32, #tpu.memory_space<vmem>>, vector<1x8x128xf32>
    %263 = vector.shape_cast %262 : vector<1x8x128xf32> to vector<8x128xf32>
    %264 = vector.shape_cast %260 : vector<8x128xf32> to vector<1x8x128xf32>
    tpu.vector_store %arg19[%261, %c0_154, %c0_155], %264 {strides = array<i32>} : memref<8x8x128xf32, #tpu.memory_space<vmem>>, vector<1x8x128xf32>,
    %c6_i32 = arith.constant 6 : i32
    %c2_i32_156 = arith.constant 2 : i32
    %265 = arith.muli %c2_i32_156, %c6_i32 : i32
    %c1_i32_157 = arith.constant 1 : i32
    %266 = arith.addi %265, %c1_i32_157 : i32
    %267 = arith.index_cast %266 : i32 to index
    %c0_158 = arith.constant 0 : index
    %c0_159 = arith.constant 0 : index
    %268 = vector.load %arg16[%267, %c0_158, %c0_159] : memref<16x8x128xf32, #tpu.memory_space<vmem>>, vector<1x8x128xf32>
    %269 = vector.shape_cast %268 : vector<1x8x128xf32> to vector<8x128xf32>
    %c2_i32_160 = arith.constant 2 : i32
    %270 = arith.muli %c2_i32_160, %c6_i32 : i32
    %271 = arith.index_cast %270 : i32 to index
    %c0_161 = arith.constant 0 : index
    %c0_162 = arith.constant 0 : index
    %272 = vector.load %arg16[%271, %c0_161, %c0_162] : memref<16x8x128xf32, #tpu.memory_space<vmem>>, vector<1x8x128xf32>
    %273 = vector.shape_cast %272 : vector<1x8x128xf32> to vector<8x128xf32>
    %274 = arith.mulf %269, %273 : vector<8x128xf32>
    %275 = arith.index_cast %c6_i32 : i32 to index
    %c0_163 = arith.constant 0 : index
    %c0_164 = arith.constant 0 : index
    %276 = vector.load %arg18[%275, %c0_163, %c0_164] : memref<8x8x128xf32, #tpu.memory_space<vmem>>, vector<1x8x128xf32>
    %277 = vector.shape_cast %276 : vector<1x8x128xf32> to vector<8x128xf32>
    %278 = vector.shape_cast %274 : vector<8x128xf32> to vector<1x8x128xf32>
    tpu.vector_store %arg18[%275, %c0_163, %c0_164], %278 {strides = array<i32>} : memref<8x8x128xf32, #tpu.memory_space<vmem>>, vector<1x8x128xf32>,
    %c2_i32_165 = arith.constant 2 : i32
    %279 = arith.muli %c2_i32_165, %c6_i32 : i32
    %280 = arith.index_cast %279 : i32 to index
    %c0_166 = arith.constant 0 : index
    %c0_167 = arith.constant 0 : index
    %281 = vector.load %arg17[%280, %c0_166, %c0_167] : memref<16x8x128xf32, #tpu.memory_space<vmem>>, vector<1x8x128xf32>
    %282 = vector.shape_cast %281 : vector<1x8x128xf32> to vector<8x128xf32>
    %283 = arith.mulf %269, %282 : vector<8x128xf32>
    %c2_i32_168 = arith.constant 2 : i32
    %284 = arith.muli %c2_i32_168, %c6_i32 : i32
    %c1_i32_169 = arith.constant 1 : i32
    %285 = arith.addi %284, %c1_i32_169 : i32
    %286 = arith.index_cast %285 : i32 to index
    %c0_170 = arith.constant 0 : index
    %c0_171 = arith.constant 0 : index
    %287 = vector.load %arg17[%286, %c0_170, %c0_171] : memref<16x8x128xf32, #tpu.memory_space<vmem>>, vector<1x8x128xf32>
    %288 = vector.shape_cast %287 : vector<1x8x128xf32> to vector<8x128xf32>
    %289 = arith.addf %283, %288 : vector<8x128xf32>
    %290 = arith.index_cast %c6_i32 : i32 to index
    %c0_172 = arith.constant 0 : index
    %c0_173 = arith.constant 0 : index
    %291 = vector.load %arg19[%290, %c0_172, %c0_173] : memref<8x8x128xf32, #tpu.memory_space<vmem>>, vector<1x8x128xf32>
    %292 = vector.shape_cast %291 : vector<1x8x128xf32> to vector<8x128xf32>
    %293 = vector.shape_cast %289 : vector<8x128xf32> to vector<1x8x128xf32>
    tpu.vector_store %arg19[%290, %c0_172, %c0_173], %293 {strides = array<i32>} : memref<8x8x128xf32, #tpu.memory_space<vmem>>, vector<1x8x128xf32>,
    %c7_i32 = arith.constant 7 : i32
    %c2_i32_174 = arith.constant 2 : i32
    %294 = arith.muli %c2_i32_174, %c7_i32 : i32
    %c1_i32_175 = arith.constant 1 : i32
    %295 = arith.addi %294, %c1_i32_175 : i32
    %296 = arith.index_cast %295 : i32 to index
    %c0_176 = arith.constant 0 : index
    %c0_177 = arith.constant 0 : index
    %297 = vector.load %arg16[%296, %c0_176, %c0_177] : memref<16x8x128xf32, #tpu.memory_space<vmem>>, vector<1x8x128xf32>
    %298 = vector.shape_cast %297 : vector<1x8x128xf32> to vector<8x128xf32>
    %c2_i32_178 = arith.constant 2 : i32
    %299 = arith.muli %c2_i32_178, %c7_i32 : i32
    %300 = arith.index_cast %299 : i32 to index
    %c0_179 = arith.constant 0 : index
    %c0_180 = arith.constant 0 : index
    %301 = vector.load %arg16[%300, %c0_179, %c0_180] : memref<16x8x128xf32, #tpu.memory_space<vmem>>, vector<1x8x128xf32>
    %302 = vector.shape_cast %301 : vector<1x8x128xf32> to vector<8x128xf32>
    %303 = arith.mulf %298, %302 : vector<8x128xf32>
    %304 = arith.index_cast %c7_i32 : i32 to index
    %c0_181 = arith.constant 0 : index
    %c0_182 = arith.constant 0 : index
    %305 = vector.load %arg18[%304, %c0_181, %c0_182] : memref<8x8x128xf32, #tpu.memory_space<vmem>>, vector<1x8x128xf32>
    %306 = vector.shape_cast %305 : vector<1x8x128xf32> to vector<8x128xf32>
    %307 = vector.shape_cast %303 : vector<8x128xf32> to vector<1x8x128xf32>
    tpu.vector_store %arg18[%304, %c0_181, %c0_182], %307 {strides = array<i32>} : memref<8x8x128xf32, #tpu.memory_space<vmem>>, vector<1x8x128xf32>,
    %c2_i32_183 = arith.constant 2 : i32
    %308 = arith.muli %c2_i32_183, %c7_i32 : i32
    %309 = arith.index_cast %308 : i32 to index
    %c0_184 = arith.constant 0 : index
    %c0_185 = arith.constant 0 : index
    %310 = vector.load %arg17[%309, %c0_184, %c0_185] : memref<16x8x128xf32, #tpu.memory_space<vmem>>, vector<1x8x128xf32>
    %311 = vector.shape_cast %310 : vector<1x8x128xf32> to vector<8x128xf32>
    %312 = arith.mulf %298, %311 : vector<8x128xf32>
    %c2_i32_186 = arith.constant 2 : i32
    %313 = arith.muli %c2_i32_186, %c7_i32 : i32
    %c1_i32_187 = arith.constant 1 : i32
    %314 = arith.addi %313, %c1_i32_187 : i32
    %315 = arith.index_cast %314 : i32 to index
    %c0_188 = arith.constant 0 : index
    %c0_189 = arith.constant 0 : index
    %316 = vector.load %arg17[%315, %c0_188, %c0_189] : memref<16x8x128xf32, #tpu.memory_space<vmem>>, vector<1x8x128xf32>
    %317 = vector.shape_cast %316 : vector<1x8x128xf32> to vector<8x128xf32>
    %318 = arith.addf %312, %317 : vector<8x128xf32>
    %319 = arith.index_cast %c7_i32 : i32 to index
    %c0_190 = arith.constant 0 : index
    %c0_191 = arith.constant 0 : index
    %320 = vector.load %arg19[%319, %c0_190, %c0_191] : memref<8x8x128xf32, #tpu.memory_space<vmem>>, vector<1x8x128xf32>
    %321 = vector.shape_cast %320 : vector<1x8x128xf32> to vector<8x128xf32>
    %322 = vector.shape_cast %318 : vector<8x128xf32> to vector<1x8x128xf32>
    tpu.vector_store %arg19[%319, %c0_190, %c0_191], %322 {strides = array<i32>} : memref<8x8x128xf32, #tpu.memory_space<vmem>>, vector<1x8x128xf32>,
    %c8_i32 = arith.constant 8 : i32
    %c0_i32_192 = arith.constant 0 : i32
    %323 = arith.index_cast %c0_i32_192 : i32 to index
    %c0_193 = arith.constant 0 : index
    %c0_194 = arith.constant 0 : index
    %324 = vector.load %arg18[%323, %c0_193, %c0_194] : memref<8x8x128xf32, #tpu.memory_space<vmem>>, vector<1x8x128xf32>
    %325 = vector.shape_cast %324 : vector<1x8x128xf32> to vector<8x128xf32>
    %326 = arith.mulf %325, %9 : vector<8x128xf32>
    %327 = arith.index_cast %c0_i32_192 : i32 to index
    %c0_195 = arith.constant 0 : index
    %c0_196 = arith.constant 0 : index
    %328 = vector.load %arg19[%327, %c0_195, %c0_196] : memref<8x8x128xf32, #tpu.memory_space<vmem>>, vector<1x8x128xf32>
    %329 = vector.shape_cast %328 : vector<1x8x128xf32> to vector<8x128xf32>
    %330 = arith.addf %326, %329 : vector<8x128xf32>
    %c2_i32_197 = arith.constant 2 : i32
    %331 = arith.muli %c2_i32_197, %c0_i32_192 : i32
    %c1_i32_198 = arith.constant 1 : i32
    %332 = arith.addi %331, %c1_i32_198 : i32
    %333 = arith.index_cast %332 : i32 to index
    %c0_199 = arith.constant 0 : index
    %c0_200 = arith.constant 0 : index
    %334 = vector.load %arg20[%333, %c0_199, %c0_200] : memref<16x8x128xf32, #tpu.memory_space<vmem>>, vector<1x8x128xf32>
    %335 = vector.shape_cast %334 : vector<1x8x128xf32> to vector<8x128xf32>
    %336 = vector.shape_cast %330 : vector<8x128xf32> to vector<1x8x128xf32>
    tpu.vector_store %arg20[%333, %c0_199, %c0_200], %336 {strides = array<i32>} : memref<16x8x128xf32, #tpu.memory_space<vmem>>, vector<1x8x128xf32>,
    %c1_i32_201 = arith.constant 1 : i32
    %337 = arith.index_cast %c1_i32_201 : i32 to index
    %c0_202 = arith.constant 0 : index
    %c0_203 = arith.constant 0 : index
    %338 = vector.load %arg18[%337, %c0_202, %c0_203] : memref<8x8x128xf32, #tpu.memory_space<vmem>>, vector<1x8x128xf32>
    %339 = vector.shape_cast %338 : vector<1x8x128xf32> to vector<8x128xf32>
    %340 = arith.mulf %339, %330 : vector<8x128xf32>
    %341 = arith.index_cast %c1_i32_201 : i32 to index
    %c0_204 = arith.constant 0 : index
    %c0_205 = arith.constant 0 : index
    %342 = vector.load %arg19[%341, %c0_204, %c0_205] : memref<8x8x128xf32, #tpu.memory_space<vmem>>, vector<1x8x128xf32>
    %343 = vector.shape_cast %342 : vector<1x8x128xf32> to vector<8x128xf32>
    %344 = arith.addf %340, %343 : vector<8x128xf32>
    %c2_i32_206 = arith.constant 2 : i32
    %345 = arith.muli %c2_i32_206, %c1_i32_201 : i32
    %c1_i32_207 = arith.constant 1 : i32
    %346 = arith.addi %345, %c1_i32_207 : i32
    %347 = arith.index_cast %346 : i32 to index
    %c0_208 = arith.constant 0 : index
    %c0_209 = arith.constant 0 : index
    %348 = vector.load %arg20[%347, %c0_208, %c0_209] : memref<16x8x128xf32, #tpu.memory_space<vmem>>, vector<1x8x128xf32>
    %349 = vector.shape_cast %348 : vector<1x8x128xf32> to vector<8x128xf32>
    %350 = vector.shape_cast %344 : vector<8x128xf32> to vector<1x8x128xf32>
    tpu.vector_store %arg20[%347, %c0_208, %c0_209], %350 {strides = array<i32>} : memref<16x8x128xf32, #tpu.memory_space<vmem>>, vector<1x8x128xf32>,
    %c2_i32_210 = arith.constant 2 : i32
    %351 = arith.index_cast %c2_i32_210 : i32 to index
    %c0_211 = arith.constant 0 : index
    %c0_212 = arith.constant 0 : index
    %352 = vector.load %arg18[%351, %c0_211, %c0_212] : memref<8x8x128xf32, #tpu.memory_space<vmem>>, vector<1x8x128xf32>
    %353 = vector.shape_cast %352 : vector<1x8x128xf32> to vector<8x128xf32>
    %354 = arith.mulf %353, %344 : vector<8x128xf32>
    %355 = arith.index_cast %c2_i32_210 : i32 to index
    %c0_213 = arith.constant 0 : index
    %c0_214 = arith.constant 0 : index
    %356 = vector.load %arg19[%355, %c0_213, %c0_214] : memref<8x8x128xf32, #tpu.memory_space<vmem>>, vector<1x8x128xf32>
    %357 = vector.shape_cast %356 : vector<1x8x128xf32> to vector<8x128xf32>
    %358 = arith.addf %354, %357 : vector<8x128xf32>
    %c2_i32_215 = arith.constant 2 : i32
    %359 = arith.muli %c2_i32_215, %c2_i32_210 : i32
    %c1_i32_216 = arith.constant 1 : i32
    %360 = arith.addi %359, %c1_i32_216 : i32
    %361 = arith.index_cast %360 : i32 to index
    %c0_217 = arith.constant 0 : index
    %c0_218 = arith.constant 0 : index
    %362 = vector.load %arg20[%361, %c0_217, %c0_218] : memref<16x8x128xf32, #tpu.memory_space<vmem>>, vector<1x8x128xf32>
    %363 = vector.shape_cast %362 : vector<1x8x128xf32> to vector<8x128xf32>
    %364 = vector.shape_cast %358 : vector<8x128xf32> to vector<1x8x128xf32>
    tpu.vector_store %arg20[%361, %c0_217, %c0_218], %364 {strides = array<i32>} : memref<16x8x128xf32, #tpu.memory_space<vmem>>, vector<1x8x128xf32>,
    %c3_i32_219 = arith.constant 3 : i32
    %365 = arith.index_cast %c3_i32_219 : i32 to index
    %c0_220 = arith.constant 0 : index
    %c0_221 = arith.constant 0 : index
    %366 = vector.load %arg18[%365, %c0_220, %c0_221] : memref<8x8x128xf32, #tpu.memory_space<vmem>>, vector<1x8x128xf32>
    %367 = vector.shape_cast %366 : vector<1x8x128xf32> to vector<8x128xf32>
    %368 = arith.mulf %367, %358 : vector<8x128xf32>
    %369 = arith.index_cast %c3_i32_219 : i32 to index
    %c0_222 = arith.constant 0 : index
    %c0_223 = arith.constant 0 : index
    %370 = vector.load %arg19[%369, %c0_222, %c0_223] : memref<8x8x128xf32, #tpu.memory_space<vmem>>, vector<1x8x128xf32>
    %371 = vector.shape_cast %370 : vector<1x8x128xf32> to vector<8x128xf32>
    %372 = arith.addf %368, %371 : vector<8x128xf32>
    %c2_i32_224 = arith.constant 2 : i32
    %373 = arith.muli %c2_i32_224, %c3_i32_219 : i32
    %c1_i32_225 = arith.constant 1 : i32
    %374 = arith.addi %373, %c1_i32_225 : i32
    %375 = arith.index_cast %374 : i32 to index
    %c0_226 = arith.constant 0 : index
    %c0_227 = arith.constant 0 : index
    %376 = vector.load %arg20[%375, %c0_226, %c0_227] : memref<16x8x128xf32, #tpu.memory_space<vmem>>, vector<1x8x128xf32>
    %377 = vector.shape_cast %376 : vector<1x8x128xf32> to vector<8x128xf32>
    %378 = vector.shape_cast %372 : vector<8x128xf32> to vector<1x8x128xf32>
    tpu.vector_store %arg20[%375, %c0_226, %c0_227], %378 {strides = array<i32>} : memref<16x8x128xf32, #tpu.memory_space<vmem>>, vector<1x8x128xf32>,
    %c4_i32_228 = arith.constant 4 : i32
    %379 = arith.index_cast %c4_i32_228 : i32 to index
    %c0_229 = arith.constant 0 : index
    %c0_230 = arith.constant 0 : index
    %380 = vector.load %arg18[%379, %c0_229, %c0_230] : memref<8x8x128xf32, #tpu.memory_space<vmem>>, vector<1x8x128xf32>
    %381 = vector.shape_cast %380 : vector<1x8x128xf32> to vector<8x128xf32>
    %382 = arith.mulf %381, %372 : vector<8x128xf32>
    %383 = arith.index_cast %c4_i32_228 : i32 to index
    %c0_231 = arith.constant 0 : index
    %c0_232 = arith.constant 0 : index
    %384 = vector.load %arg19[%383, %c0_231, %c0_232] : memref<8x8x128xf32, #tpu.memory_space<vmem>>, vector<1x8x128xf32>
    %385 = vector.shape_cast %384 : vector<1x8x128xf32> to vector<8x128xf32>
    %386 = arith.addf %382, %385 : vector<8x128xf32>
    %c2_i32_233 = arith.constant 2 : i32
    %387 = arith.muli %c2_i32_233, %c4_i32_228 : i32
    %c1_i32_234 = arith.constant 1 : i32
    %388 = arith.addi %387, %c1_i32_234 : i32
    %389 = arith.index_cast %388 : i32 to index
    %c0_235 = arith.constant 0 : index
    %c0_236 = arith.constant 0 : index
    %390 = vector.load %arg20[%389, %c0_235, %c0_236] : memref<16x8x128xf32, #tpu.memory_space<vmem>>, vector<1x8x128xf32>
    %391 = vector.shape_cast %390 : vector<1x8x128xf32> to vector<8x128xf32>
    %392 = vector.shape_cast %386 : vector<8x128xf32> to vector<1x8x128xf32>
    tpu.vector_store %arg20[%389, %c0_235, %c0_236], %392 {strides = array<i32>} : memref<16x8x128xf32, #tpu.memory_space<vmem>>, vector<1x8x128xf32>,
    %c5_i32_237 = arith.constant 5 : i32
    %393 = arith.index_cast %c5_i32_237 : i32 to index
    %c0_238 = arith.constant 0 : index
    %c0_239 = arith.constant 0 : index
    %394 = vector.load %arg18[%393, %c0_238, %c0_239] : memref<8x8x128xf32, #tpu.memory_space<vmem>>, vector<1x8x128xf32>
    %395 = vector.shape_cast %394 : vector<1x8x128xf32> to vector<8x128xf32>
    %396 = arith.mulf %395, %386 : vector<8x128xf32>
    %397 = arith.index_cast %c5_i32_237 : i32 to index
    %c0_240 = arith.constant 0 : index
    %c0_241 = arith.constant 0 : index
    %398 = vector.load %arg19[%397, %c0_240, %c0_241] : memref<8x8x128xf32, #tpu.memory_space<vmem>>, vector<1x8x128xf32>
    %399 = vector.shape_cast %398 : vector<1x8x128xf32> to vector<8x128xf32>
    %400 = arith.addf %396, %399 : vector<8x128xf32>
    %c2_i32_242 = arith.constant 2 : i32
    %401 = arith.muli %c2_i32_242, %c5_i32_237 : i32
    %c1_i32_243 = arith.constant 1 : i32
    %402 = arith.addi %401, %c1_i32_243 : i32
    %403 = arith.index_cast %402 : i32 to index
    %c0_244 = arith.constant 0 : index
    %c0_245 = arith.constant 0 : index
    %404 = vector.load %arg20[%403, %c0_244, %c0_245] : memref<16x8x128xf32, #tpu.memory_space<vmem>>, vector<1x8x128xf32>
    %405 = vector.shape_cast %404 : vector<1x8x128xf32> to vector<8x128xf32>
    %406 = vector.shape_cast %400 : vector<8x128xf32> to vector<1x8x128xf32>
    tpu.vector_store %arg20[%403, %c0_244, %c0_245], %406 {strides = array<i32>} : memref<16x8x128xf32, #tpu.memory_space<vmem>>, vector<1x8x128xf32>,
    %c6_i32_246 = arith.constant 6 : i32
    %407 = arith.index_cast %c6_i32_246 : i32 to index
    %c0_247 = arith.constant 0 : index
    %c0_248 = arith.constant 0 : index
    %408 = vector.load %arg18[%407, %c0_247, %c0_248] : memref<8x8x128xf32, #tpu.memory_space<vmem>>, vector<1x8x128xf32>
    %409 = vector.shape_cast %408 : vector<1x8x128xf32> to vector<8x128xf32>
    %410 = arith.mulf %409, %400 : vector<8x128xf32>
    %411 = arith.index_cast %c6_i32_246 : i32 to index
    %c0_249 = arith.constant 0 : index
    %c0_250 = arith.constant 0 : index
    %412 = vector.load %arg19[%411, %c0_249, %c0_250] : memref<8x8x128xf32, #tpu.memory_space<vmem>>, vector<1x8x128xf32>
    %413 = vector.shape_cast %412 : vector<1x8x128xf32> to vector<8x128xf32>
    %414 = arith.addf %410, %413 : vector<8x128xf32>
    %c2_i32_251 = arith.constant 2 : i32
    %415 = arith.muli %c2_i32_251, %c6_i32_246 : i32
    %c1_i32_252 = arith.constant 1 : i32
    %416 = arith.addi %415, %c1_i32_252 : i32
    %417 = arith.index_cast %416 : i32 to index
    %c0_253 = arith.constant 0 : index
    %c0_254 = arith.constant 0 : index
    %418 = vector.load %arg20[%417, %c0_253, %c0_254] : memref<16x8x128xf32, #tpu.memory_space<vmem>>, vector<1x8x128xf32>
    %419 = vector.shape_cast %418 : vector<1x8x128xf32> to vector<8x128xf32>
    %420 = vector.shape_cast %414 : vector<8x128xf32> to vector<1x8x128xf32>
    tpu.vector_store %arg20[%417, %c0_253, %c0_254], %420 {strides = array<i32>} : memref<16x8x128xf32, #tpu.memory_space<vmem>>, vector<1x8x128xf32>,
    %c7_i32_255 = arith.constant 7 : i32
    %421 = arith.index_cast %c7_i32_255 : i32 to index
    %c0_256 = arith.constant 0 : index
    %c0_257 = arith.constant 0 : index
    %422 = vector.load %arg18[%421, %c0_256, %c0_257] : memref<8x8x128xf32, #tpu.memory_space<vmem>>, vector<1x8x128xf32>
    %423 = vector.shape_cast %422 : vector<1x8x128xf32> to vector<8x128xf32>
    %424 = arith.mulf %423, %414 : vector<8x128xf32>
    %425 = arith.index_cast %c7_i32_255 : i32 to index
    %c0_258 = arith.constant 0 : index
    %c0_259 = arith.constant 0 : index
    %426 = vector.load %arg19[%425, %c0_258, %c0_259] : memref<8x8x128xf32, #tpu.memory_space<vmem>>, vector<1x8x128xf32>
    %427 = vector.shape_cast %426 : vector<1x8x128xf32> to vector<8x128xf32>
    %428 = arith.addf %424, %427 : vector<8x128xf32>
    %c2_i32_260 = arith.constant 2 : i32
    %429 = arith.muli %c2_i32_260, %c7_i32_255 : i32
    %c1_i32_261 = arith.constant 1 : i32
    %430 = arith.addi %429, %c1_i32_261 : i32
    %431 = arith.index_cast %430 : i32 to index
    %c0_262 = arith.constant 0 : index
    %c0_263 = arith.constant 0 : index
    %432 = vector.load %arg20[%431, %c0_262, %c0_263] : memref<16x8x128xf32, #tpu.memory_space<vmem>>, vector<1x8x128xf32>
    %433 = vector.shape_cast %432 : vector<1x8x128xf32> to vector<8x128xf32>
    %434 = vector.shape_cast %428 : vector<8x128xf32> to vector<1x8x128xf32>
    tpu.vector_store %arg20[%431, %c0_262, %c0_263], %434 {strides = array<i32>} : memref<16x8x128xf32, #tpu.memory_space<vmem>>, vector<1x8x128xf32>,
    %c8_i32_264 = arith.constant 8 : i32
    %c0_265 = arith.constant 0 : index
    %c0_266 = arith.constant 0 : index
    %c0_267 = arith.constant 0 : index
    %435 = vector.load %arg16[%c0_265, %c0_266, %c0_267] : memref<16x8x128xf32, #tpu.memory_space<vmem>>, vector<1x8x128xf32>
    %436 = vector.shape_cast %435 : vector<1x8x128xf32> to vector<8x128xf32>
    %437 = arith.mulf %436, %9 : vector<8x128xf32>
    %c0_268 = arith.constant 0 : index
    %c0_269 = arith.constant 0 : index
    %c0_270 = arith.constant 0 : index
    %438 = vector.load %arg17[%c0_268, %c0_269, %c0_270] : memref<16x8x128xf32, #tpu.memory_space<vmem>>, vector<1x8x128xf32>
    %439 = vector.shape_cast %438 : vector<1x8x128xf32> to vector<8x128xf32>
    %440 = arith.addf %437, %439 : vector<8x128xf32>
    %c0_271 = arith.constant 0 : index
    %c0_272 = arith.constant 0 : index
    %c0_273 = arith.constant 0 : index
    %441 = vector.load %arg20[%c0_271, %c0_272, %c0_273] : memref<16x8x128xf32, #tpu.memory_space<vmem>>, vector<1x8x128xf32>
    %442 = vector.shape_cast %441 : vector<1x8x128xf32> to vector<8x128xf32>
    %443 = vector.shape_cast %440 : vector<8x128xf32> to vector<1x8x128xf32>
    tpu.vector_store %arg20[%c0_271, %c0_272, %c0_273], %443 {strides = array<i32>} : memref<16x8x128xf32, #tpu.memory_space<vmem>>, vector<1x8x128xf32>,
    %c1_i32_274 = arith.constant 1 : i32
    %c2_i32_275 = arith.constant 2 : i32
    %444 = arith.muli %c2_i32_275, %c1_i32_274 : i32
    %445 = arith.index_cast %444 : i32 to index
    %c0_276 = arith.constant 0 : index
    %c0_277 = arith.constant 0 : index
    %446 = vector.load %arg16[%445, %c0_276, %c0_277] : memref<16x8x128xf32, #tpu.memory_space<vmem>>, vector<1x8x128xf32>
    %447 = vector.shape_cast %446 : vector<1x8x128xf32> to vector<8x128xf32>
    %c2_i32_278 = arith.constant 2 : i32
    %448 = arith.muli %c2_i32_278, %c1_i32_274 : i32
    %c1_i32_279 = arith.constant 1 : i32
    %449 = arith.subi %448, %c1_i32_279 : i32
    %450 = arith.index_cast %449 : i32 to index
    %c0_280 = arith.constant 0 : index
    %c0_281 = arith.constant 0 : index
    %451 = vector.load %arg20[%450, %c0_280, %c0_281] : memref<16x8x128xf32, #tpu.memory_space<vmem>>, vector<1x8x128xf32>
    %452 = vector.shape_cast %451 : vector<1x8x128xf32> to vector<8x128xf32>
    %453 = arith.mulf %447, %452 : vector<8x128xf32>
    %c2_i32_282 = arith.constant 2 : i32
    %454 = arith.muli %c2_i32_282, %c1_i32_274 : i32
    %455 = arith.index_cast %454 : i32 to index
    %c0_283 = arith.constant 0 : index
    %c0_284 = arith.constant 0 : index
    %456 = vector.load %arg17[%455, %c0_283, %c0_284] : memref<16x8x128xf32, #tpu.memory_space<vmem>>, vector<1x8x128xf32>
    %457 = vector.shape_cast %456 : vector<1x8x128xf32> to vector<8x128xf32>
    %458 = arith.addf %453, %457 : vector<8x128xf32>
    %c2_i32_285 = arith.constant 2 : i32
    %459 = arith.muli %c2_i32_285, %c1_i32_274 : i32
    %460 = arith.index_cast %459 : i32 to index
    %c0_286 = arith.constant 0 : index
    %c0_287 = arith.constant 0 : index
    %461 = vector.load %arg20[%460, %c0_286, %c0_287] : memref<16x8x128xf32, #tpu.memory_space<vmem>>, vector<1x8x128xf32>
    %462 = vector.shape_cast %461 : vector<1x8x128xf32> to vector<8x128xf32>
    %463 = vector.shape_cast %458 : vector<8x128xf32> to vector<1x8x128xf32>
    tpu.vector_store %arg20[%460, %c0_286, %c0_287], %463 {strides = array<i32>} : memref<16x8x128xf32, #tpu.memory_space<vmem>>, vector<1x8x128xf32>,
    %c2_i32_288 = arith.constant 2 : i32
    %c2_i32_289 = arith.constant 2 : i32
    %464 = arith.muli %c2_i32_289, %c2_i32_288 : i32
    %465 = arith.index_cast %464 : i32 to index
    %c0_290 = arith.constant 0 : index
    %c0_291 = arith.constant 0 : index
    %466 = vector.load %arg16[%465, %c0_290, %c0_291] : memref<16x8x128xf32, #tpu.memory_space<vmem>>, vector<1x8x128xf32>
    %467 = vector.shape_cast %466 : vector<1x8x128xf32> to vector<8x128xf32>
    %c2_i32_292 = arith.constant 2 : i32
    %468 = arith.muli %c2_i32_292, %c2_i32_288 : i32
    %c1_i32_293 = arith.constant 1 : i32
    %469 = arith.subi %468, %c1_i32_293 : i32
    %470 = arith.index_cast %469 : i32 to index
    %c0_294 = arith.constant 0 : index
    %c0_295 = arith.constant 0 : index
    %471 = vector.load %arg20[%470, %c0_294, %c0_295] : memref<16x8x128xf32, #tpu.memory_space<vmem>>, vector<1x8x128xf32>
    %472 = vector.shape_cast %471 : vector<1x8x128xf32> to vector<8x128xf32>
    %473 = arith.mulf %467, %472 : vector<8x128xf32>
    %c2_i32_296 = arith.constant 2 : i32
    %474 = arith.muli %c2_i32_296, %c2_i32_288 : i32
    %475 = arith.index_cast %474 : i32 to index
    %c0_297 = arith.constant 0 : index
    %c0_298 = arith.constant 0 : index
    %476 = vector.load %arg17[%475, %c0_297, %c0_298] : memref<16x8x128xf32, #tpu.memory_space<vmem>>, vector<1x8x128xf32>
    %477 = vector.shape_cast %476 : vector<1x8x128xf32> to vector<8x128xf32>
    %478 = arith.addf %473, %477 : vector<8x128xf32>
    %c2_i32_299 = arith.constant 2 : i32
    %479 = arith.muli %c2_i32_299, %c2_i32_288 : i32
    %480 = arith.index_cast %479 : i32 to index
    %c0_300 = arith.constant 0 : index
    %c0_301 = arith.constant 0 : index
    %481 = vector.load %arg20[%480, %c0_300, %c0_301] : memref<16x8x128xf32, #tpu.memory_space<vmem>>, vector<1x8x128xf32>
    %482 = vector.shape_cast %481 : vector<1x8x128xf32> to vector<8x128xf32>
    %483 = vector.shape_cast %478 : vector<8x128xf32> to vector<1x8x128xf32>
    tpu.vector_store %arg20[%480, %c0_300, %c0_301], %483 {strides = array<i32>} : memref<16x8x128xf32, #tpu.memory_space<vmem>>, vector<1x8x128xf32>,
    %c3_i32_302 = arith.constant 3 : i32
    %c2_i32_303 = arith.constant 2 : i32
    %484 = arith.muli %c2_i32_303, %c3_i32_302 : i32
    %485 = arith.index_cast %484 : i32 to index
    %c0_304 = arith.constant 0 : index
    %c0_305 = arith.constant 0 : index
    %486 = vector.load %arg16[%485, %c0_304, %c0_305] : memref<16x8x128xf32, #tpu.memory_space<vmem>>, vector<1x8x128xf32>
    %487 = vector.shape_cast %486 : vector<1x8x128xf32> to vector<8x128xf32>
    %c2_i32_306 = arith.constant 2 : i32
    %488 = arith.muli %c2_i32_306, %c3_i32_302 : i32
    %c1_i32_307 = arith.constant 1 : i32
    %489 = arith.subi %488, %c1_i32_307 : i32
    %490 = arith.index_cast %489 : i32 to index
    %c0_308 = arith.constant 0 : index
    %c0_309 = arith.constant 0 : index
    %491 = vector.load %arg20[%490, %c0_308, %c0_309] : memref<16x8x128xf32, #tpu.memory_space<vmem>>, vector<1x8x128xf32>
    %492 = vector.shape_cast %491 : vector<1x8x128xf32> to vector<8x128xf32>
    %493 = arith.mulf %487, %492 : vector<8x128xf32>
    %c2_i32_310 = arith.constant 2 : i32
    %494 = arith.muli %c2_i32_310, %c3_i32_302 : i32
    %495 = arith.index_cast %494 : i32 to index
    %c0_311 = arith.constant 0 : index
    %c0_312 = arith.constant 0 : index
    %496 = vector.load %arg17[%495, %c0_311, %c0_312] : memref<16x8x128xf32, #tpu.memory_space<vmem>>, vector<1x8x128xf32>
    %497 = vector.shape_cast %496 : vector<1x8x128xf32> to vector<8x128xf32>
    %498 = arith.addf %493, %497 : vector<8x128xf32>
    %c2_i32_313 = arith.constant 2 : i32
    %499 = arith.muli %c2_i32_313, %c3_i32_302 : i32
    %500 = arith.index_cast %499 : i32 to index
    %c0_314 = arith.constant 0 : index
    %c0_315 = arith.constant 0 : index
    %501 = vector.load %arg20[%500, %c0_314, %c0_315] : memref<16x8x128xf32, #tpu.memory_space<vmem>>, vector<1x8x128xf32>
    %502 = vector.shape_cast %501 : vector<1x8x128xf32> to vector<8x128xf32>
    %503 = vector.shape_cast %498 : vector<8x128xf32> to vector<1x8x128xf32>
    tpu.vector_store %arg20[%500, %c0_314, %c0_315], %503 {strides = array<i32>} : memref<16x8x128xf32, #tpu.memory_space<vmem>>, vector<1x8x128xf32>,
    %c4_i32_316 = arith.constant 4 : i32
    %c2_i32_317 = arith.constant 2 : i32
    %504 = arith.muli %c2_i32_317, %c4_i32_316 : i32
    %505 = arith.index_cast %504 : i32 to index
    %c0_318 = arith.constant 0 : index
    %c0_319 = arith.constant 0 : index
    %506 = vector.load %arg16[%505, %c0_318, %c0_319] : memref<16x8x128xf32, #tpu.memory_space<vmem>>, vector<1x8x128xf32>
    %507 = vector.shape_cast %506 : vector<1x8x128xf32> to vector<8x128xf32>
    %c2_i32_320 = arith.constant 2 : i32
    %508 = arith.muli %c2_i32_320, %c4_i32_316 : i32
    %c1_i32_321 = arith.constant 1 : i32
    %509 = arith.subi %508, %c1_i32_321 : i32
    %510 = arith.index_cast %509 : i32 to index
    %c0_322 = arith.constant 0 : index
    %c0_323 = arith.constant 0 : index
    %511 = vector.load %arg20[%510, %c0_322, %c0_323] : memref<16x8x128xf32, #tpu.memory_space<vmem>>, vector<1x8x128xf32>
    %512 = vector.shape_cast %511 : vector<1x8x128xf32> to vector<8x128xf32>
    %513 = arith.mulf %507, %512 : vector<8x128xf32>
    %c2_i32_324 = arith.constant 2 : i32
    %514 = arith.muli %c2_i32_324, %c4_i32_316 : i32
    %515 = arith.index_cast %514 : i32 to index
    %c0_325 = arith.constant 0 : index
    %c0_326 = arith.constant 0 : index
    %516 = vector.load %arg17[%515, %c0_325, %c0_326] : memref<16x8x128xf32, #tpu.memory_space<vmem>>, vector<1x8x128xf32>
    %517 = vector.shape_cast %516 : vector<1x8x128xf32> to vector<8x128xf32>
    %518 = arith.addf %513, %517 : vector<8x128xf32>
    %c2_i32_327 = arith.constant 2 : i32
    %519 = arith.muli %c2_i32_327, %c4_i32_316 : i32
    %520 = arith.index_cast %519 : i32 to index
    %c0_328 = arith.constant 0 : index
    %c0_329 = arith.constant 0 : index
    %521 = vector.load %arg20[%520, %c0_328, %c0_329] : memref<16x8x128xf32, #tpu.memory_space<vmem>>, vector<1x8x128xf32>
    %522 = vector.shape_cast %521 : vector<1x8x128xf32> to vector<8x128xf32>
    %523 = vector.shape_cast %518 : vector<8x128xf32> to vector<1x8x128xf32>
    tpu.vector_store %arg20[%520, %c0_328, %c0_329], %523 {strides = array<i32>} : memref<16x8x128xf32, #tpu.memory_space<vmem>>, vector<1x8x128xf32>,
    %c5_i32_330 = arith.constant 5 : i32
    %c2_i32_331 = arith.constant 2 : i32
    %524 = arith.muli %c2_i32_331, %c5_i32_330 : i32
    %525 = arith.index_cast %524 : i32 to index
    %c0_332 = arith.constant 0 : index
    %c0_333 = arith.constant 0 : index
    %526 = vector.load %arg16[%525, %c0_332, %c0_333] : memref<16x8x128xf32, #tpu.memory_space<vmem>>, vector<1x8x128xf32>
    %527 = vector.shape_cast %526 : vector<1x8x128xf32> to vector<8x128xf32>
    %c2_i32_334 = arith.constant 2 : i32
    %528 = arith.muli %c2_i32_334, %c5_i32_330 : i32
    %c1_i32_335 = arith.constant 1 : i32
    %529 = arith.subi %528, %c1_i32_335 : i32
    %530 = arith.index_cast %529 : i32 to index
    %c0_336 = arith.constant 0 : index
    %c0_337 = arith.constant 0 : index
    %531 = vector.load %arg20[%530, %c0_336, %c0_337] : memref<16x8x128xf32, #tpu.memory_space<vmem>>, vector<1x8x128xf32>
    %532 = vector.shape_cast %531 : vector<1x8x128xf32> to vector<8x128xf32>
    %533 = arith.mulf %527, %532 : vector<8x128xf32>
    %c2_i32_338 = arith.constant 2 : i32
    %534 = arith.muli %c2_i32_338, %c5_i32_330 : i32
    %535 = arith.index_cast %534 : i32 to index
    %c0_339 = arith.constant 0 : index
    %c0_340 = arith.constant 0 : index
    %536 = vector.load %arg17[%535, %c0_339, %c0_340] : memref<16x8x128xf32, #tpu.memory_space<vmem>>, vector<1x8x128xf32>
    %537 = vector.shape_cast %536 : vector<1x8x128xf32> to vector<8x128xf32>
    %538 = arith.addf %533, %537 : vector<8x128xf32>
    %c2_i32_341 = arith.constant 2 : i32
    %539 = arith.muli %c2_i32_341, %c5_i32_330 : i32
    %540 = arith.index_cast %539 : i32 to index
    %c0_342 = arith.constant 0 : index
    %c0_343 = arith.constant 0 : index
    %541 = vector.load %arg20[%540, %c0_342, %c0_343] : memref<16x8x128xf32, #tpu.memory_space<vmem>>, vector<1x8x128xf32>
    %542 = vector.shape_cast %541 : vector<1x8x128xf32> to vector<8x128xf32>
    %543 = vector.shape_cast %538 : vector<8x128xf32> to vector<1x8x128xf32>
    tpu.vector_store %arg20[%540, %c0_342, %c0_343], %543 {strides = array<i32>} : memref<16x8x128xf32, #tpu.memory_space<vmem>>, vector<1x8x128xf32>,
    %c6_i32_344 = arith.constant 6 : i32
    %c2_i32_345 = arith.constant 2 : i32
    %544 = arith.muli %c2_i32_345, %c6_i32_344 : i32
    %545 = arith.index_cast %544 : i32 to index
    %c0_346 = arith.constant 0 : index
    %c0_347 = arith.constant 0 : index
    %546 = vector.load %arg16[%545, %c0_346, %c0_347] : memref<16x8x128xf32, #tpu.memory_space<vmem>>, vector<1x8x128xf32>
    %547 = vector.shape_cast %546 : vector<1x8x128xf32> to vector<8x128xf32>
    %c2_i32_348 = arith.constant 2 : i32
    %548 = arith.muli %c2_i32_348, %c6_i32_344 : i32
    %c1_i32_349 = arith.constant 1 : i32
    %549 = arith.subi %548, %c1_i32_349 : i32
    %550 = arith.index_cast %549 : i32 to index
    %c0_350 = arith.constant 0 : index
    %c0_351 = arith.constant 0 : index
    %551 = vector.load %arg20[%550, %c0_350, %c0_351] : memref<16x8x128xf32, #tpu.memory_space<vmem>>, vector<1x8x128xf32>
    %552 = vector.shape_cast %551 : vector<1x8x128xf32> to vector<8x128xf32>
    %553 = arith.mulf %547, %552 : vector<8x128xf32>
    %c2_i32_352 = arith.constant 2 : i32
    %554 = arith.muli %c2_i32_352, %c6_i32_344 : i32
    %555 = arith.index_cast %554 : i32 to index
    %c0_353 = arith.constant 0 : index
    %c0_354 = arith.constant 0 : index
    %556 = vector.load %arg17[%555, %c0_353, %c0_354] : memref<16x8x128xf32, #tpu.memory_space<vmem>>, vector<1x8x128xf32>
    %557 = vector.shape_cast %556 : vector<1x8x128xf32> to vector<8x128xf32>
    %558 = arith.addf %553, %557 : vector<8x128xf32>
    %c2_i32_355 = arith.constant 2 : i32
    %559 = arith.muli %c2_i32_355, %c6_i32_344 : i32
    %560 = arith.index_cast %559 : i32 to index
    %c0_356 = arith.constant 0 : index
    %c0_357 = arith.constant 0 : index
    %561 = vector.load %arg20[%560, %c0_356, %c0_357] : memref<16x8x128xf32, #tpu.memory_space<vmem>>, vector<1x8x128xf32>
    %562 = vector.shape_cast %561 : vector<1x8x128xf32> to vector<8x128xf32>
    %563 = vector.shape_cast %558 : vector<8x128xf32> to vector<1x8x128xf32>
    tpu.vector_store %arg20[%560, %c0_356, %c0_357], %563 {strides = array<i32>} : memref<16x8x128xf32, #tpu.memory_space<vmem>>, vector<1x8x128xf32>,
    %c7_i32_358 = arith.constant 7 : i32
    %c2_i32_359 = arith.constant 2 : i32
    %564 = arith.muli %c2_i32_359, %c7_i32_358 : i32
    %565 = arith.index_cast %564 : i32 to index
    %c0_360 = arith.constant 0 : index
    %c0_361 = arith.constant 0 : index
    %566 = vector.load %arg16[%565, %c0_360, %c0_361] : memref<16x8x128xf32, #tpu.memory_space<vmem>>, vector<1x8x128xf32>
    %567 = vector.shape_cast %566 : vector<1x8x128xf32> to vector<8x128xf32>
    %c2_i32_362 = arith.constant 2 : i32
    %568 = arith.muli %c2_i32_362, %c7_i32_358 : i32
    %c1_i32_363 = arith.constant 1 : i32
    %569 = arith.subi %568, %c1_i32_363 : i32
    %570 = arith.index_cast %569 : i32 to index
    %c0_364 = arith.constant 0 : index
    %c0_365 = arith.constant 0 : index
    %571 = vector.load %arg20[%570, %c0_364, %c0_365] : memref<16x8x128xf32, #tpu.memory_space<vmem>>, vector<1x8x128xf32>
    %572 = vector.shape_cast %571 : vector<1x8x128xf32> to vector<8x128xf32>
    %573 = arith.mulf %567, %572 : vector<8x128xf32>
    %c2_i32_366 = arith.constant 2 : i32
    %574 = arith.muli %c2_i32_366, %c7_i32_358 : i32
    %575 = arith.index_cast %574 : i32 to index
    %c0_367 = arith.constant 0 : index
    %c0_368 = arith.constant 0 : index
    %576 = vector.load %arg17[%575, %c0_367, %c0_368] : memref<16x8x128xf32, #tpu.memory_space<vmem>>, vector<1x8x128xf32>
    %577 = vector.shape_cast %576 : vector<1x8x128xf32> to vector<8x128xf32>
    %578 = arith.addf %573, %577 : vector<8x128xf32>
    %c2_i32_369 = arith.constant 2 : i32
    %579 = arith.muli %c2_i32_369, %c7_i32_358 : i32
    %580 = arith.index_cast %579 : i32 to index
    %c0_370 = arith.constant 0 : index
    %c0_371 = arith.constant 0 : index
    %581 = vector.load %arg20[%580, %c0_370, %c0_371] : memref<16x8x128xf32, #tpu.memory_space<vmem>>, vector<1x8x128xf32>
    %582 = vector.shape_cast %581 : vector<1x8x128xf32> to vector<8x128xf32>
    %583 = vector.shape_cast %578 : vector<8x128xf32> to vector<1x8x128xf32>
    tpu.vector_store %arg20[%580, %c0_370, %c0_371], %583 {strides = array<i32>} : memref<16x8x128xf32, #tpu.memory_space<vmem>>, vector<1x8x128xf32>,
    %c7_i32_372 = arith.constant 7 : i32
    %584 = vector.extract_strided_slice %69 {offsets = [0, 16], sizes = [16, 8], strides = [1, 1]} : vector<16x32xf32> to vector<16x8xf32>
    %585 = vector.extract_strided_slice %69 {offsets = [0, 24], sizes = [16, 8], strides = [1, 1]} : vector<16x32xf32> to vector<16x8xf32>
    %586 = vector.shape_cast %584 : vector<16x8xf32> to vector<16x8x1xf32>
    %587 = vector.shape_cast %586 : vector<16x8x1xf32> to vector<16x8x1xf32>
    %588 = vector.broadcast %587 : vector<16x8x1xf32> to vector<16x8x64xf32>
    %589 = vector.shape_cast %585 : vector<16x8xf32> to vector<16x8x1xf32>
    %590 = vector.shape_cast %589 : vector<16x8x1xf32> to vector<16x8x1xf32>
    %591 = vector.broadcast %590 : vector<16x8x1xf32> to vector<16x8x64xf32>
    %592 = tpu.concatenate %588, %591 in 2 : vector<16x8x64xf32>, vector<16x8x64xf32> -> vector<16x8x128xf32>
    %c0_373 = arith.constant 0 : index
    %c0_374 = arith.constant 0 : index
    %c0_375 = arith.constant 0 : index
    %593 = vector.load %arg20[%c0_373, %c0_374, %c0_375] : memref<16x8x128xf32, #tpu.memory_space<vmem>>, vector<16x8x128xf32>
    %594 = arith.mulf %593, %592 : vector<16x8x128xf32>
    %cst_376 = arith.constant dense<0.000000e+00> : vector<16x128xf32>
    %595 = vector.multi_reduction <add>, %594, %cst_376 [1] : vector<16x8x128xf32> to vector<16x128xf32>
    %596 = vector.extract_strided_slice %595 {offsets = [0, 0], sizes = [16, 64], strides = [1, 1]} : vector<16x128xf32> to vector<16x64xf32>
    %597 = vector.extract_strided_slice %595 {offsets = [0, 64], sizes = [16, 64], strides = [1, 1]} : vector<16x128xf32> to vector<16x64xf32>
    %598 = arith.addf %596, %597 : vector<16x64xf32>
    %599 = vector.extract_strided_slice %47 {offsets = [0, 0], sizes = [16, 64], strides = [1, 1]} : vector<16x128xf32> to vector<16x64xf32>
    %600 = vector.broadcast %6 : vector<1x64xf32> to vector<16x64xf32>
    %601 = arith.mulf %599, %600 : vector<16x64xf32>
    %602 = arith.addf %598, %601 : vector<16x64xf32>
    %603 = arith.mulf %602, %55 : vector<16x64xf32>
    %cst_377 = arith.constant dense<0.000000e+00> : vector<16x32xf32>
    %604 = tpu.matmul %603, %7, %cst_377 {dimension_numbers = #tpu.dot_dimension_numbers<[1], [0], [0], [1], [0, 0, 1, 1], [], []>} : vector<16x64xf32>, vector<64x32xf32>, vector<16x32xf32> -> vector<16x32xf32>
    %605 = vector.broadcast %8 : vector<1x32xf32> to vector<16x32xf32>
    %606 = arith.addf %604, %605 : vector<16x32xf32>
    %cst_378 = arith.constant 5.000000e-01 : f32
    %607 = vector.broadcast %cst_378 : f32 to vector<16x32xf32>
    %608 = arith.mulf %607, %606 : vector<16x32xf32>
    %cst_379 = arith.constant 0.707106769 : f32
    %609 = vector.broadcast %cst_379 : f32 to vector<16x32xf32>
    %610 = arith.mulf %606, %609 : vector<16x32xf32>
    %cst_380 = arith.constant 0.000000e+00 : f32
    %611 = vector.broadcast %cst_380 : f32 to vector<16x32xf32>
    %612 = arith.cmpf oge, %610, %611 : vector<16x32xf32>
    %cst_381 = arith.constant 1.000000e+00 : f32
    %cst_382 = arith.constant -1.000000e+00 : f32
    %613 = vector.broadcast %cst_381 : f32 to vector<16x32xf32>
    %614 = vector.broadcast %cst_382 : f32 to vector<16x32xf32>
    %615 = arith.select %612, %613, %614 : vector<16x32xi1>, vector<16x32xf32>
    %616 = math.absf %610 : vector<16x32xf32>
    %cst_383 = arith.constant 0.327591091 : f32
    %617 = vector.broadcast %cst_383 : f32 to vector<16x32xf32>
    %618 = arith.mulf %617, %616 : vector<16x32xf32>
    %cst_384 = arith.constant 1.000000e+00 : f32
    %619 = vector.broadcast %cst_384 : f32 to vector<16x32xf32>
    %620 = arith.addf %619, %618 : vector<16x32xf32>
    %cst_385 = arith.constant 1.000000e+00 : f32
    %621 = vector.broadcast %cst_385 : f32 to vector<16x32xf32>
    %622 = arith.divf %621, %620 : vector<16x32xf32>
    %cst_386 = arith.constant 1.06140542 : f32
    %623 = vector.broadcast %cst_386 : f32 to vector<16x32xf32>
    %624 = arith.mulf %623, %622 : vector<16x32xf32>
    %cst_387 = arith.constant -1.45315206 : f32
    %625 = vector.broadcast %cst_387 : f32 to vector<16x32xf32>
    %626 = arith.addf %624, %625 : vector<16x32xf32>
    %627 = arith.mulf %626, %622 : vector<16x32xf32>
    %cst_388 = arith.constant 1.42141378 : f32
    %628 = vector.broadcast %cst_388 : f32 to vector<16x32xf32>
    %629 = arith.addf %627, %628 : vector<16x32xf32>
    %630 = arith.mulf %629, %622 : vector<16x32xf32>
    %cst_389 = arith.constant -0.284496725 : f32
    %631 = vector.broadcast %cst_389 : f32 to vector<16x32xf32>
    %632 = arith.addf %630, %631 : vector<16x32xf32>
    %633 = arith.mulf %632, %622 : vector<16x32xf32>
    %cst_390 = arith.constant 0.254829586 : f32
    %634 = vector.broadcast %cst_390 : f32 to vector<16x32xf32>
    %635 = arith.addf %633, %634 : vector<16x32xf32>
    %636 = arith.mulf %635, %622 : vector<16x32xf32>
    %cst_391 = arith.constant 0.000000e+00 : f32
    %637 = vector.broadcast %cst_391 : f32 to vector<16x32xf32>
    %638 = arith.subf %637, %616 : vector<16x32xf32>
    %639 = arith.mulf %638, %616 : vector<16x32xf32>
    %640 = math.exp %639 : vector<16x32xf32>
    %641 = arith.mulf %636, %640 : vector<16x32xf32>
    %cst_392 = arith.constant 1.000000e+00 : f32
    %642 = vector.broadcast %cst_392 : f32 to vector<16x32xf32>
    %643 = arith.subf %642, %641 : vector<16x32xf32>
    %644 = arith.mulf %615, %643 : vector<16x32xf32>
    %cst_393 = arith.constant 1.000000e+00 : f32
    %645 = vector.broadcast %cst_393 : f32 to vector<16x32xf32>
    %646 = arith.addf %645, %644 : vector<16x32xf32>
    %647 = arith.mulf %608, %646 : vector<16x32xf32>
    %648 = tpu.transpose %647, [1, 0] : vector<16x32xf32> -> vector<32x16xf32>
    %c0_394 = arith.constant 0 : index
    %c0_395 = arith.constant 0 : index
    %c0_396 = arith.constant 0 : index
    %649 = vector.load %arg15[%c0_394, %c0_395, %c0_396] : memref<1x32x16xf32, #tpu.memory_space<vmem>>, vector<1x32x16xf32>
    %650 = vector.shape_cast %649 : vector<1x32x16xf32> to vector<32x16xf32>
    %651 = vector.shape_cast %648 : vector<32x16xf32> to vector<1x32x16xf32>
    tpu.vector_store %arg15[%c0_394, %c0_395, %c0_396], %651 {strides = array<i32>} : memref<1x32x16xf32, #tpu.memory_space<vmem>>, vector<1x32x16xf32>,
    %c0_397 = arith.constant 0 : index
    %c0_398 = arith.constant 0 : index
    %c0_399 = arith.constant 0 : index
    %652 = vector.load %arg15[%c0_397, %c0_398, %c0_399] : memref<1x32x16xf32, #tpu.memory_space<vmem>>, vector<1x32x16xf32>
    %653 = vector.shape_cast %652 : vector<1x32x16xf32> to vector<32x16xf32>
    %654 = vector.shape_cast %653 : vector<32x16xf32> to vector<1x32x16xf32>
    %cst_400 = arith.constant dense<0.000000e+00> : vector<1xf32>
    %655 = vector.multi_reduction <add>, %654, %cst_400 [1, 2] : vector<1x32x16xf32> to vector<1xf32>
    %656 = vector.shape_cast %655 : vector<1xf32> to vector<1x1x1xf32>
    %657 = vector.extract %656[0, 0, 0] : f32 from vector<1x1x1xf32>
    %cst_401 = arith.constant 5.120000e+02 : f32
    %658 = arith.divf %657, %cst_401 : f32
    %659 = vector.broadcast %658 : f32 to vector<32x16xf32>
    %660 = arith.subf %653, %659 : vector<32x16xf32>
    %661 = arith.mulf %660, %660 : vector<32x16xf32>
    %662 = vector.shape_cast %661 : vector<32x16xf32> to vector<1x32x16xf32>
    %cst_402 = arith.constant dense<0.000000e+00> : vector<1xf32>
    %663 = vector.multi_reduction <add>, %662, %cst_402 [1, 2] : vector<1x32x16xf32> to vector<1xf32>
    %664 = vector.shape_cast %663 : vector<1xf32> to vector<1x1x1xf32>
    %665 = vector.extract %664[0, 0, 0] : f32 from vector<1x1x1xf32>
    %cst_403 = arith.constant 5.120000e+02 : f32
    %666 = arith.divf %665, %cst_403 : f32
    %667 = vector.broadcast %658 : f32 to vector<32x16xf32>
    %668 = arith.subf %653, %667 : vector<32x16xf32>
    %cst_404 = arith.constant 9.99999974E-6 : f32
    %669 = arith.addf %666, %cst_404 : f32
    %670 = math.rsqrt %669 : f32
    %671 = vector.broadcast %670 : f32 to vector<32x16xf32>
    %672 = arith.mulf %668, %671 : vector<32x16xf32>
    %c0_405 = arith.constant 0 : index
    %c0_406 = arith.constant 0 : index
    %673 = vector.load %arg13[%c0_405, %c0_406] : memref<32x1xf32, #tpu.memory_space<vmem>>, vector<32x1xf32>
    %674 = vector.broadcast %673 : vector<32x1xf32> to vector<32x16xf32>
    %675 = arith.mulf %672, %674 : vector<32x16xf32>
    %c0_407 = arith.constant 0 : index
    %c0_408 = arith.constant 0 : index
    %676 = vector.load %arg14[%c0_407, %c0_408] : memref<32x1xf32, #tpu.memory_space<vmem>>, vector<32x1xf32>
    %677 = vector.broadcast %676 : vector<32x1xf32> to vector<32x16xf32>
    %678 = arith.addf %675, %677 : vector<32x16xf32>
    %c0_409 = arith.constant 0 : index
    %c0_410 = arith.constant 0 : index
    %c0_411 = arith.constant 0 : index
    %679 = vector.load %arg15[%c0_409, %c0_410, %c0_411] : memref<1x32x16xf32, #tpu.memory_space<vmem>>, vector<1x32x16xf32>
    %680 = vector.shape_cast %679 : vector<1x32x16xf32> to vector<32x16xf32>
    %681 = vector.shape_cast %678 : vector<32x16xf32> to vector<1x32x16xf32>
    tpu.vector_store %arg15[%c0_409, %c0_410, %c0_411], %681 {strides = array<i32>} : memref<1x32x16xf32, #tpu.memory_space<vmem>>, vector<1x32x16xf32>,
    return
  }
  func.func @transform_0(%arg0: i32) -> (i32, i32, i32) {
    %c0_i32 = arith.constant 0 : i32
    %c0_i32_0 = arith.constant 0 : i32
    %c0_i32_1 = arith.constant 0 : i32
    return %arg0, %c0_i32, %c0_i32_0 : i32, i32, i32
  }
  func.func @transform_1(%arg0: i32) -> (i32, i32) {
    %c0_i32 = arith.constant 0 : i32
    %c0_i32_0 = arith.constant 0 : i32
    %c0_i32_1 = arith.constant 0 : i32
    return %c0_i32, %c0_i32_0 : i32, i32
  }
  func.func @transform_2(%arg0: i32) -> (i32, i32) {
    %c0_i32 = arith.constant 0 : i32
    %c0_i32_0 = arith.constant 0 : i32
    %c0_i32_1 = arith.constant 0 : i32
    return %c0_i32, %c0_i32_0 : i32, i32
  }
  func.func @transform_3(%arg0: i32) -> (i32, i32) {
    %c0_i32 = arith.constant 0 : i32
    %c0_i32_0 = arith.constant 0 : i32
    %c0_i32_1 = arith.constant 0 : i32
    return %c0_i32, %c0_i32_0 : i32, i32
  }
  func.func @transform_4(%arg0: i32) -> (i32, i32) {
    %c0_i32 = arith.constant 0 : i32
    %c0_i32_0 = arith.constant 0 : i32
    %c0_i32_1 = arith.constant 0 : i32
    return %c0_i32, %c0_i32_0 : i32, i32
  }
  func.func @transform_5(%arg0: i32) -> (i32, i32) {
    %c0_i32 = arith.constant 0 : i32
    %c0_i32_0 = arith.constant 0 : i32
    %c0_i32_1 = arith.constant 0 : i32
    return %c0_i32, %c0_i32_0 : i32, i32
  }
  func.func @transform_6(%arg0: i32) -> (i32, i32) {
    %c0_i32 = arith.constant 0 : i32
    %c0_i32_0 = arith.constant 0 : i32
    %c0_i32_1 = arith.constant 0 : i32
    return %c0_i32, %c0_i32_0 : i32, i32
  }
  func.func @transform_7(%arg0: i32) -> (i32, i32) {
    %c0_i32 = arith.constant 0 : i32
    %c0_i32_0 = arith.constant 0 : i32
    %c0_i32_1 = arith.constant 0 : i32
    return %c0_i32, %c0_i32_0 : i32, i32
  }
  func.func @transform_8(%arg0: i32) -> (i32, i32) {
    %c0_i32 = arith.constant 0 : i32
    %c0_i32_0 = arith.constant 0 : i32
    %c0_i32_1 = arith.constant 0 : i32
    return %c0_i32, %c0_i32_0 : i32, i32
  }
  func.func @transform_9(%arg0: i32) -> (i32, i32) {
    %c0_i32 = arith.constant 0 : i32
    %c0_i32_0 = arith.constant 0 : i32
    %c0_i32_1 = arith.constant 0 : i32
    return %c0_i32, %c0_i32_0 : i32, i32
  }
  func.func @transform_10(%arg0: i32) -> (i32, i32) {
    %c0_i32 = arith.constant 0 : i32
    %c0_i32_0 = arith.constant 0 : i32
    %c0_i32_1 = arith.constant 0 : i32
    return %c0_i32, %c0_i32_0 : i32, i32
  }
  func.func @transform_11(%arg0: i32) -> (i32, i32) {
    %c0_i32 = arith.constant 0 : i32
    %c0_i32_0 = arith.constant 0 : i32
    %c0_i32_1 = arith.constant 0 : i32
    return %c0_i32, %c0_i32_0 : i32, i32
  }
  func.func @transform_12(%arg0: i32) -> (i32, i32) {
    %c0_i32 = arith.constant 0 : i32
    %c0_i32_0 = arith.constant 0 : i32
    %c0_i32_1 = arith.constant 0 : i32
    return %c0_i32, %c0_i32_0 : i32, i32
  }
  func.func @transform_13(%arg0: i32) -> (i32, i32) {
    %c0_i32 = arith.constant 0 : i32
    %c0_i32_0 = arith.constant 0 : i32
    %c0_i32_1 = arith.constant 0 : i32
    return %c0_i32, %c0_i32_0 : i32, i32
  }
  func.func @transform_14(%arg0: i32) -> (i32, i32, i32) {
    %c0_i32 = arith.constant 0 : i32
    %c0_i32_0 = arith.constant 0 : i32
    %c0_i32_1 = arith.constant 0 : i32
    return %arg0, %c0_i32, %c0_i32_0 : i32, i32, i32
  }
}

</mosaic_0001>

<bundles_post_ra>
// kernel: mamba_wrapper_forward.1
= control target key start
LH: loop header
LB: loop body
LE: loop exit
PB: predicated region body
PF: predicated region fallthrough
CT: control target
= control target key end

     0   :  { %s2659_s29 = smov 0   ;;  %s3494_s0 = inlined_call_operand.vmem [shape: f32[2,32,24], index: 0, kind: input, shape index: {}]   ;;  %s3495_s1 = inlined_call_operand.vmem [shape: f32[32,128], index: 1, kind: input, shape index: {}]   ;;  %s3496_s2 = inlined_call_operand.vmem [shape: f32[32,64], index: 2, kind: input, shape index: {}]   ;;  %s3497_s3 = inlined_call_operand.vmem [shape: f32[4,128], index: 3, kind: input, shape index: {}]   ;;  %s3498_s4 = inlined_call_operand.vmem [shape: f32[1,128], index: 4, kind: input, shape index: {}]   ;;  %s3499_s5 = inlined_call_operand.vmem [shape: f32[128,128], index: 5, kind: input, shape index: {}]   ;;  %s3500_s6 = inlined_call_operand.vmem [shape: f32[1,128], index: 6, kind: input, shape index: {}]   ;;  %s3501_s7 = inlined_call_operand.vmem [shape: f32[128,32], index: 7, kind: input, shape index: {}]   ;;  %s3502_s8 = inlined_call_operand.vmem [shape: f32[8,128], index: 8, kind: input, shape index: {}]   ;;  %s3503_s9 = inlined_call_operand.vmem [shape: f32[1,64], index: 9, kind: input, shape index: {}]   ;;  %s3504_s10 = inlined_call_operand.vmem [shape: f32[64,32], index: 10, kind: input, shape index: {}]   ;;  %s3505_s11 = inlined_call_operand.vmem [shape: f32[1,32], index: 11, kind: input, shape index: {}]   ;;  %s3506_s12 = inlined_call_operand.vmem [shape: f32[32,1], index: 12, kind: input, shape index: {}]   ;;  %s3507_s13 = inlined_call_operand.vmem [shape: f32[32,1], index: 13, kind: input, shape index: {}]   ;;  %s3508_s14 = inlined_call_operand.vmem [shape: f32[2,32,16], index: 14, kind: output, shape index: {}]  }
   0x1 LB: > { %s2414_s30 = sadd.s32 4294967295, %s2578_s29   ;;  %p2418_p0 = scmp.ge.s32.totalorder %s2578_s29, 1  ;;  %s2578_s29 = sphi %s2659_s29, %s24_s29  }
   0x2   : > { %p412_p1 = scmp.lt.s32.totalorder %s2578_s29, 3 }
   0x4   : > { %p413_p2 = pnand %p2418_p0, %p412_p1 }
   0x5   : > { %p458_p3 = scmp.lt.s32.totalorder (!%p413_p2), %s2414_s30, 1  ;;  %s2580_s24 = smov (!%p413_p2), 64  }
   0x6   : > { %416 = sbr.rel (%p413_p2) target bundleno = 1915 (0x77b), region = 76 }
   0xb   : > { %v471_v0 = vld [vmem:[%s3495_s1 + $0x18] sm:$0xff]  ;;  %v470_v1 = vld [vmem:[%s3495_s1 + $0x10] sm:$0xff]  ;;  %s3514_s30 = smov (!%p458_p3, %s2414_s30), 1  ;;  %v469_v2 = vld [vmem:[%s3495_s1 + $0x8] sm:$0xff]  ;;  %vm556_vm0 = vcmask 261120   ;;  %vm631_vm1 = vcmask 1046528  }
   0xc   : > { %578 = vmatpush.msra.mxu0 %v471_v0  ;;  %s2432_s21 = sshll.u32 %s3514_s30, 5  ;;  %v468_v3 = vld [vmem:[%s3495_s1] sm:$0xff]  ;;  %v475_v8 = vld [vmem:[%s3496_s2 + $0x18] sm:$0xff]  ;;  %v474_v9 = vld [vmem:[%s3496_s2 + $0x10] sm:$0xff]  ;;  %vm651_vm2 = vcmask 1045504   ;;  %vm669_vm3 = vcmask 1044480  }
   0xd   : > { %s462_s26 = scalar_lea.vmem %s3494_s0, %s2432_s21  ;;  %604 = vmatpush.msra.mxu1 %v475_v8  ;;  %v473_v10 = vld [vmem:[%s3496_s2 + $0x8] sm:$0xff]  ;;  %v472_v11 = vld [vmem:[%s3496_s2] sm:$0xff]  ;;  %v491_v17 = vld [vmem:[%s3499_s5 + $0x78] sm:$0xff]  ;;  %s3433_s20 = scalar_lea.vmem %s3508_s14, %s2432_s21 }
   0xe   : > { %579 = vmatpush.msra.mxu0 %v470_v1  ;;  %v520_v4 = vld [vmem:[%s462_s26] sm:$0xff]  ;;  %v521_v5 = vld [vmem:[%s462_s26 + $0x8] sm:$0xff]  ;;  %v522_v6 = vld [vmem:[%s462_s26 + $0x10] sm:$0xff]  ;;  %800 = vmatpush.msra.mxu2 %v491_v17 }
   0xf   : > { %524 = vxpose.xlu0.b32.start [1/4] (short) (narrow) %v520_v4, 24  ;;  %v523_v7 = vld [vmem:[%s462_s26 + $0x18] sm:$0xff]  ;;  %605 = vmatpush.msra.mxu1 %v474_v9  ;;  %v2492_v16 = vld [vmem:[%s3497_s3 + $0x1] ss:$0 sm:$0xff]  ;;  %v2493_v19 = vld [vmem:[%s3497_s3 + $0x2] ss:$0 sm:$0xff] }
  0x10   : > { %580 = vmatpush.msra.mxu0 %v469_v2  ;;  %v508_v18 = vld [vmem:[%s3501_s7 + $0x78] sm:$0xff]  ;;  %v490_v20 = vld [vmem:[%s3499_s5 + $0x70] sm:$0xff]  ;;  %v489_v23 = vld [vmem:[%s3499_s5 + $0x68] sm:$0xff] }
  0x11   : > { %606 = vmatpush.msra.mxu1 %v473_v10  ;;  %841 = vmatpush.msra.mxu3 %v508_v18  ;;  %v507_v21 = vld [vmem:[%s3501_s7 + $0x70] sm:$0xff]  ;;  %v506_v24 = vld [vmem:[%s3501_s7 + $0x68] sm:$0xff]  ;;  %v2491_v25 = vld [vmem:[%s3497_s3] ss:$0 sm:$0xff] }
  0x12   : > { %581 = vmatpush.msra.mxu0 %v468_v3  ;;  %801 = vmatpush.msra.mxu2 %v490_v20  ;;  %v2494_v27 = vld [vmem:[%s3497_s3 + $0x3] ss:$0 sm:$0xff]  ;;  %v487_v36 = vld [vmem:[%s3499_s5 + $0x58] sm:$0xff]  ;;  %v486_v42 = vld [vmem:[%s3499_s5 + $0x50] sm:$0xff] }
  0x13   : > { %607 = vmatpush.msra.mxu1 %v472_v11  ;;  %842 = vmatpush.msra.mxu3 %v507_v21  ;;  %v488_v31 = vld [vmem:[%s3499_s5 + $0x60] sm:$0xff]  ;;  %v504_v37 = vld [vmem:[%s3501_s7 + $0x58] sm:$0xff]  ;;  %v503_v43 = vld [vmem:[%s3501_s7 + $0x50] sm:$0xff] }
  0x14   : > { %802 = vmatpush.msra.mxu2 %v489_v23  ;;  %v505_v32 = vld [vmem:[%s3501_s7 + $0x60] sm:$0xff]  ;;  %v485_v46 = vld [vmem:[%s3499_s5 + $0x48] sm:$0xff]  ;;  %v483_v56 = vld [vmem:[%s3499_s5 + $0x38] sm:$0xff] }
  0x15   : > { %843 = vmatpush.msra.mxu3 %v506_v24  ;;  %v502_v47 = vld [vmem:[%s3501_s7 + $0x48] sm:$0xff]  ;;  %v2495_v51 = vld [vmem:[%s3498_s4] ss:$0 sm:$0xff]  ;;  %v500_v59 = vld [vmem:[%s3501_s7 + $0x38] sm:$0xff] }
  0x16   : > { %803 = vmatpush.msra.mxu2 %v488_v31  ;;  %v484_v54 = vld [vmem:[%s3499_s5 + $0x40] sm:$0xff]  ;;  %v482_v62 = vld [vmem:[%s3499_s5 + $0x30] sm:$0xff]  ;;  %v496_v17 = vld [vmem:[%s3501_s7 + $0x18] sm:$0xff] }
  0x17   : > { %525 = vxpose.xlu0.b32.cont [2/4] (short) (narrow) %v521_v5, 24  ;;  %844 = vmatpush.msra.mxu3 %v505_v32  ;;  %v501_v55 = vld [vmem:[%s3501_s7 + $0x40] sm:$0xff]  ;;  %v499_v63 = vld [vmem:[%s3501_s7 + $0x30] sm:$0xff]  ;;  %v481_v5 = vld [vmem:[%s3499_s5 + $0x28] sm:$0xff] }
  0x18   : > { %804 = vmatpush.msra.mxu2 %v487_v36  ;;  %v480_v10 = vld [vmem:[%s3499_s5 + $0x20] sm:$0xff]  ;;  %v495_v23 = vld [vmem:[%s3501_s7 + $0x10] sm:$0xff] }
  0x19   : > { %845 = vmatpush.msra.mxu3 %v504_v37  ;;  %v497_v11 = vld [vmem:[%s3501_s7 + $0x20] sm:$0xff] }
  0x1a   : > { %805 = vmatpush.msra.mxu2 %v486_v42  ;;  %v979_v42 = vlaneseq }
  0x1b   : > { %846 = vmatpush.msra.mxu3 %v503_v43 }
  0x1c   : > { %806 = vmatpush.msra.mxu2 %v485_v46 }
  0x1d   : > { %847 = vmatpush.msra.mxu3 %v502_v47 }
  0x1e   : > { %807 = vmatpush.msra.mxu2 %v484_v54 }
  0x1f   : > { %526 = vxpose.xlu0.b32.cont [3/4] (short) (narrow) %v522_v6, 24  ;;  %848 = vmatpush.msra.mxu3 %v501_v55  ;;  %v498_v6 = vld [vmem:[%s3501_s7 + $0x28] sm:$0xff] }
  0x20   : > { %808 = vmatpush.msra.mxu2 %v483_v56 }
  0x21   : > { %849 = vmatpush.msra.mxu3 %v500_v59 }
  0x22   : > { %809 = vmatpush.msra.mxu2 %v482_v62 }
  0x23   : > { %850 = vmatpush.msra.mxu3 %v499_v63 }
  0x24   : > { %810 = vmatpush.msra.mxu2 %v481_v5 }
  0x25   : > { %851 = vmatpush.msra.mxu3 %v498_v6 }
  0x26   : > { %811 = vmatpush.msra.mxu2 %v480_v10 }
  0x27   : > { %527 = vxpose.xlu0.b32.end [4/4] (short) (narrow) %v523_v7, 24  ;;  %852 = vmatpush.msra.mxu3 %v497_v11 }
  0x29   : > { %853 = vmatpush.msra.mxu3 %v496_v17 }
  0x2b   : > { %854 = vmatpush.msra.mxu3 %v495_v23 }
  0xb3   : > { %v540_v12 = vpop.trf.xlu0 }
  0xb4   : > { %2423 = vmatmul.msk.f32.vlgmr.msra.gmra.mxu0 %vm556_vm0, %v540_v12 }
  0xbb   : > { %v541_v13 = vpop.trf.xlu0 }
  0xbc   : > { %2424 = vmatmul.msk.f32.gmra.mxu0 %vm556_vm0, %v541_v13  ;;  %2426 = vmatmul.msk.f32.vlgmr.msra.gmra.mxu1 %vm556_vm0, %v541_v13 }
  0xc3   : > { %v542_v14 = vpop.trf.xlu0 }
  0xc4   : > { %2425 = vmatmul.msk.f32.gmra.mxu0 %vm556_vm0, %v542_v14  ;;  %2427 = vmatmul.msk.f32.gmra.mxu1 %vm556_vm0, %v542_v14  ;;  %vm792_vm0 = vcmask 1042432  }
 0x131   : > { %v583_v15 = vpop.f32.mrf.mxu0 }
 0x132   : > { %v625_v22 = vmul.f32 %v2492_v16, %v583_v15  ;;  %v645_v28 = vmul.f32 %v2493_v19, %v583_v15  ;;  %v617_v38 = vmul.f32 %v2491_v25, %v583_v15 }
 0x134   : > { %v632_v33 = vrot.slane %v625_v22, 1  ;;  %v652_v40 = vrot.slane %v645_v28, 2  ;;  %v478_v22 = vld [vmem:[%s3499_s5 + $0x10] sm:$0xff] }
 0x139   : > { %v586_v26 = vpop.f32.mrf.mxu0 }
 0x13a   : > { %v626_v29 = vmul.f32 %v2492_v16, %v586_v26  ;;  %v2729_v30 = vmul.f32 %v2493_v19, %v586_v26  ;;  %v665_v39 = vmul.f32 %v2494_v27, %v586_v26  ;;  %v618_v2 = vmul.f32 %v2491_v25, %v586_v26  ;;  %v494_v26 = vld [vmem:[%s3501_s7 + $0x8] sm:$0xff] }
 0x13b   : > { %855 = vmatpush.msra.mxu3 %v494_v26 }
 0x13c   : > { %v633_v34 = vrot.slane %v626_v29, 1  ;;  %v653_v35 = vrot.slane %v2729_v30, 2  ;;  %v670_v50 = vrot.slane %v665_v39, 3  ;;  %v476_v29 = vld [vmem:[%s3499_s5] sm:$0xff] }
 0x13d   : > { %v493_v30 = vld [vmem:[%s3501_s7] sm:$0xff] }
 0x13e   : > { %v634_v41 = vsel %vm631_vm1, %v632_v33, %v633_v34  ;;  %v654_v45 = vsel %vm651_vm2, %v652_v40, %v653_v35  ;;  %856 = vmatpush.msra.mxu3 %v493_v30 }
 0x13f   : > { %v640_v44 = vadd.f32 %v634_v41, %v617_v38 }
 0x141   : > { %v660_v48 = vadd.f32 %v654_v45, %v640_v44  ;;  %v589_v49 = vpop.f32.mrf.mxu0  ;;  %v2826_v45 = vshrl.u32 %v979_v42, 7 }
 0x142   : > { %v627_v52 = vmul.f32 %v2492_v16, %v589_v49  ;;  %v647_v53 = vmul.f32 %v2493_v19, %v589_v49  ;;  %v666_v57 = vmul.f32 %v2494_v27, %v589_v49  ;;  %v619_v60 = vmul.f32 %v2491_v25, %v589_v49  ;;  %v479_v16 = vld [vmem:[%s3499_s5 + $0x18] sm:$0xff]  ;;  %v477_v25 = vld [vmem:[%s3499_s5 + $0x8] sm:$0xff] }
 0x143   : > { %v676_v58 = vadd.f32 %v670_v50, %v660_v48  ;;  %812 = vmatpush.msra.mxu2 %v479_v16  ;;  %2457 = vset.pattern.permute.xlu2 %v2826_v45 }
 0x144   : > { %v635_v61 = vrot.slane %v627_v52, 1  ;;  %v655_v0 = vrot.slane %v647_v53, 2  ;;  %v671_v7 = vrot.slane %v666_v57, 3  ;;  %2455 = vset.pattern.permute.xlu1 %v2826_v45  ;;  %2460 = vset.pattern.permute.xlu0 %v2826_v45 }
 0x145   : > { %v2779_v1 = vadd.f32 %v2495_v51, %v676_v58  ;;  %813 = vmatpush.msra.mxu2 %v478_v22 }
 0x146   : > { %v636_v3 = vsel %vm631_vm1, %v633_v34, %v635_v61  ;;  %v642_v4 = vadd.f32 %v635_v61, %v619_v60  ;;  %v656_v13 = vsel %vm651_vm2, %v653_v35, %v655_v0  ;;  %v672_v19 = vsel %vm669_vm3, %v670_v50, %v671_v7 }
 0x147   : > { %v641_v8 = vadd.f32 %v636_v3, %v618_v2  ;;  %v686_v12 = vsub.f32 0.0, %v2779_v1  ;;  %814 = vmatpush.msra.mxu2 %v477_v25  ;;  %vm1186_vm1 = vcmask 523264  }
 0x148   : > { %v662_v9 = vadd.f32 %v655_v0, %v642_v4 }
 0x149   : > { %v661_v14 = vadd.f32 %v656_v13, %v641_v8  ;;  %v689_v18 = vmul.f32 1.442695, %v686_v12  ;;  %815 = vmatpush.msra.mxu2 %v476_v29  ;;  %v2880_v29 = vadd.s32 8, %v2826_v45 }
 0x14a   : > { %v678_v15 = vadd.f32 %v671_v7, %v662_v9  ;;  %v2496_v9 = vld [vmem:[%s3503_s9] ss:$0 sm:$0xff] }
 0x14b   : > { %v677_v20 = vadd.f32 %v672_v19, %v661_v14  ;;  %2499 = vpow2.f32 %v689_v18  ;;  %v2497_v18 = vld [vmem:[%s3500_s6] ss:$0 sm:$0xff] }
 0x14c   : > { %v2802_v21 = vadd.f32 %v2495_v51, %v678_v15 }
 0x14d   : > { %v2817_v27 = vadd.f32 %v2495_v51, %v677_v20 }
 0x14e   : > { %v688_v24 = vsub.f32 0.0, %v2802_v21 }
 0x14f   : > { %v687_v31 = vsub.f32 0.0, %v2817_v27 }
 0x150   : > { %v693_v28 = vmul.f32 1.442695, %v688_v24 }
 0x151   : > { %v2500_v32 = vpop.eup %2499  ;;  %v691_v33 = vmul.f32 1.442695, %v687_v31 }
 0x152   : > { %2501 = vpow2.f32 %v693_v28  ;;  %v695_v34 = vadd.f32 1.0, %v2500_v32  ;;  %v2877_v28 = vadd.s32 24, %v2826_v45 }
 0x153   : > { %2503 = vpow2.f32 %v691_v33 }
 0x154   : > { %2505 = vrcp.f32 %v695_v34  ;;  %v707_v49 = vand.u32 2147483647, %v695_v34  ;;  %v709_v50 = vand.u32 2147483648, %v695_v34  ;;  %vm703_vm5 = vweird.f32 %v695_v34 }
 0x156   : > { %vm708_vm8 = vcmp.eq.f32.partialorder %v707_v49, 8.507059e+37  ;;  %v710_v59 = vor.u32 1.1754944e-38, %v709_v50 }
 0x158   : > { %v2502_v35 = vpop.eup %2501 }
 0x159   : > { %v697_v36 = vadd.f32 1.0, %v2502_v35  ;;  %v2504_v37 = vpop.eup %2503 }
 0x15a   : > { %v2506_v38 = vpop.eup %2505  ;;  %v696_v39 = vadd.f32 1.0, %v2504_v37 }
 0x15b   : > { %2507 = vrcp.f32 %v697_v36  ;;  %v699_v40 = vmul.f32 %v2506_v38, %v695_v34  ;;  %vm704_vm4 = vweird.f32 %v2506_v38  ;;  %v737_v54 = vand.u32 2147483647, %v697_v36 }
 0x15c   : > { %2509 = vrcp.f32 %v696_v39  ;;  %vm2831_vm6 = vmor %vm703_vm5, %vm704_vm4  ;;  %v739_v55 = vand.u32 2147483648, %v697_v36  ;;  %v724_v60 = vand.u32 2147483648, %v696_v39  ;;  %vm733_vm9 = vweird.f32 %v697_v36 }
 0x15d   : > { %v700_v41 = vsub.f32 1.0, %v699_v40  ;;  %v722_v62 = vand.u32 2147483647, %v696_v39  ;;  %vm718_vm12 = vweird.f32 %v696_v39  ;;  %vm738_vm13 = vcmp.eq.f32.partialorder %v737_v54, 8.507059e+37  ;;  %v2913_v54 = vld [vmem:[%s3502_s8] sm:$0xff] }
 0x15e   : > { %v740_v2 = vor.u32 1.1754944e-38, %v739_v55  ;;  %v725_v5 = vor.u32 1.1754944e-38, %v724_v60 }
 0x15f   : > { %v701_v43 = vmul.f32 %v2506_v38, %v700_v41  ;;  %vm723_vm15 = vcmp.eq.f32.partialorder %v722_v62, 8.507059e+37 }
 0x161   : > { %v2508_v44 = vpop.eup %2507  ;;  %v702_v46 = vadd.f32 %v2506_v38, %v701_v43 }
 0x162   : > { %v729_v47 = vmul.f32 %v2508_v44, %v697_v36  ;;  %v2510_v48 = vpop.eup %2509  ;;  %vm734_vm7 = vweird.f32 %v2508_v44 }
 0x163   : > { %v714_v51 = vmul.f32 %v2510_v48, %v696_v39  ;;  %v706_v56 = vsel %vm2831_vm6, %v2506_v38, %v702_v46  ;;  %vm719_vm10 = vweird.f32 %v2510_v48  ;;  %vm735_vm11 = vmor %vm733_vm9, %vm734_vm7  ;;  %vm2040_vm6 = vcmask 1041409  }
 0x164   : > { %v730_v52 = vsub.f32 1.0, %v729_v47  ;;  %v711_v0 = vsel %vm708_vm8, %v710_v59, %v706_v56  ;;  %vm720_vm14 = vmor %vm718_vm12, %vm719_vm10  ;;  %vm2043_vm7 = vcmask 1042434   ;;  %vm2046_vm8 = vcmask 1043459  }
 0x165   : > { %v715_v57 = vsub.f32 1.0, %v714_v51  ;;  %v2838_v8 = vmul.f32 %v711_v0, %v2779_v1  ;;  %vm2049_vm9 = vcmask 1044484   ;;  %vm2052_vm10 = vcmask 1045509  }
 0x166   : > { %v731_v58 = vmul.f32 %v2508_v44, %v730_v52  ;;  %vm2058_vm12 = vcmask 1047559  }
 0x167   : > { %v716_v61 = vmul.f32 %v2510_v48, %v715_v57  ;;  %v793_v14 = vrot.slane %v2838_v8, 5 }
 0x168   : > { %v732_v63 = vadd.f32 %v2508_v44, %v731_v58 }
 0x169   : > { %v717_v3 = vadd.f32 %v2510_v48, %v716_v61 }
 0x16a   : > { %v736_v4 = vsel %vm735_vm11, %v2508_v44, %v732_v63  ;;  %vm2055_vm11 = vcmask 1046534  }
 0x16b   : > { %v741_v6 = vsel %vm738_vm13, %v740_v2, %v736_v4  ;;  %v721_v7 = vsel %vm720_vm14, %v2510_v48, %v717_v3 }
 0x16c   : > { %v745_v10 = vmul.f32 %v741_v6, %v2802_v21  ;;  %v726_v11 = vsel %vm723_vm15, %v725_v5, %v721_v7 }
 0x16d   : > { %v2845_v12 = vmul.f32 %v726_v11, %v2817_v27 }
 0x16e   : > { %v2847_v13 = vmul.f32 %v2496_v9, %v745_v10  ;;  %v796_v1 = vrot.slane %v745_v10, 5 }
 0x16f   : > { %v794_v15 = vrot.slane %v2845_v12, 5 }
 0x171   : > { %v2851_v16 = vsel %vm792_vm0, %v793_v14, %v794_v15  ;;  %v2855_v17 = vsel %vm792_vm0, %v794_v15, %v796_v1 }
 0x172   : > { %816 = vmatmul.f32.vlgmr.msra.gmra.mxu2 %v2851_v16  ;;  %857 = vmatmul.f32.vlgmr.msra.gmra.mxu3 %v2851_v16 }
 0x17a   : > { %819 = vmatmul.f32.gmra.mxu2 %v2855_v17  ;;  %860 = vmatmul.f32.gmra.mxu3 %v2855_v17 }
 0x1f5   : > { %v817_v19 = vpop.f32.mrf.mxu2  ;;  %v2862_v20 = vpop.f32.mrf.mxu3 }
 0x1f6   : > { %v818_v21 = vadd.f32 %v2497_v18, %v817_v19  ;;  %v2865_v22 = vperm.slane %v2862_v20, 4  ;;  %v2868_v23 = vperm.slane %v2862_v20, 1  ;;  %v2871_v24 = vperm.slane %v2862_v20, 0 }
 0x1f7   : > { %v2889_v41 = vperm.slane %v2862_v20, 2  ;;  %v2899_v48 = vperm.slane %v2862_v20, 3  ;;  %v2927_v7 = vperm.slane %v2862_v20, 5 }
 0x1f8   : > { %v825_v25 = vand.u32 2147483647, %v818_v21  ;;  %1011 = vperm.xlu0 %2460, %v2865_v22   ;;  %990 = vperm.xlu2 %2457, %v2868_v23   ;;  %v823_v42 = vmax.f32 %v818_v21, 0.0 }
 0x1f9   : > { %983 = vperm.xlu1 %2455, %v2871_v24  }
 0x1fa   : > { %v827_v26 = vsub.f32 0.0, %v825_v25 }
 0x1fc   : > { %v829_v27 = vmul.f32 1.442695, %v827_v26 }
 0x1fd   : > { %v820_v30 = vpop.f32.mrf.mxu2  ;;  %v2896_v44 = vpop.f32.mrf.mxu3 }
 0x1fe   : > { %2511 = vpow2.f32 %v829_v27  ;;  %v821_v31 = vadd.f32 %v2497_v18, %v820_v30  ;;  %v2902_v49 = vperm.slane %v2896_v44, 6  ;;  %v2931_v10 = vperm.slane %v2896_v44, 7 }
 0x200   : > { %v826_v32 = vand.u32 2147483647, %v821_v31  ;;  %2469 = vset.pattern.permute.xlu0 %v2877_v28  ;;  %2458 = vset.pattern.permute.xlu2 %v2880_v29  ;;  %v824_v51 = vmax.f32 %v821_v31, 0.0 }
 0x201   : > { %2456 = vset.pattern.permute.xlu1 %v2880_v29 }
 0x202   : > { %v828_v33 = vsub.f32 0.0, %v826_v32 }
 0x204   : > { %v2512_v34 = vpop.eup %2511  ;;  %v831_v35 = vmul.f32 1.442695, %v828_v33 }
 0x205   : > { %v833_v36 = vadd.f32 1.0, %v2512_v34 }
 0x206   : > { %2513 = vpow2.f32 %v831_v35 }
 0x207   : > { %2515 = vlog2.f32 %v833_v36  ;;  %v2950_v36 = vadd.s32 16, %v2826_v45 }
 0x208   : > { %1625 = vperm.xlu0 %2469, %v2865_v22   ;;  %1100 = vperm.xlu2 %2458, %v2868_v23  }
 0x209   : > { %1094 = vperm.xlu1 %2456, %v2871_v24  }
 0x20c   : > { %v2514_v37 = vpop.eup %2513 }
 0x20d   : > { %v2516_v38 = vpop.eup %2515  ;;  %v834_v39 = vadd.f32 1.0, %v2514_v37 }
 0x20e   : > { %v836_v40 = vmul.f32 0.6931472, %v2516_v38 }
 0x20f   : > { %2517 = vlog2.f32 %v834_v39 }
 0x210   : > { %2476 = vset.pattern.permute.xlu0 %v2826_v45  ;;  %1106 = vperm.xlu2 %2458, %v2889_v41   ;;  %v2894_v43 = vadd.f32 %v836_v40, %v823_v42 }
 0x211   : > { %2459 = vset.pattern.permute.xlu1 %v2826_v45 }
 0x212   : > { %v874_v50 = vrot.slane %v2894_v43, 7  ;;  %v873_v56 = vrot.slane %v2894_v43, 6 }
 0x214   : > { %v889_v53 = vperm.slane %v874_v50, 0  ;;  %v888_v59 = vperm.slane %v873_v56, 0 }
 0x215   : > { %v2518_v46 = vpop.eup %2517 }
 0x216   : > { %v838_v47 = vmul.f32 0.6931472, %v2518_v46  ;;  %v921_v55 = vmul.f32 %v889_v53, %v2913_v54  ;;  %v920_v62 = vmul.f32 %v888_v59, %v2913_v54 }
 0x218   : > { %1112 = vperm.xlu2 %2458, %v2899_v48   ;;  %1081 = vperm.xlu0 %2476, %v2902_v49   ;;  %v2908_v52 = vadd.f32 %v838_v47, %v824_v51  ;;  %v944_v58 = vmul.f32 1.442695, %v921_v55  ;;  %v942_v3 = vmul.f32 1.442695, %v920_v62  ;;  %v2961_v47 = vperm.slane %v2862_v20, 6 }
 0x219   : > { %997 = vperm.xlu1 %2459, %v2889_v41   ;;  %v2984_v62 = vperm.slane %v2862_v20, 7 }
 0x21a   : > { %v875_v57 = vrot.slane %v2908_v52, 1  ;;  %v890_v61 = vperm.slane %v2908_v52, 0  ;;  %v877_v63 = vrot.slane %v2908_v52, 3  ;;  %2519 = vpow2.f32 %v944_v58 }
 0x21b   : > { %2521 = vpow2.f32 %v942_v3  ;;  %v876_v9 = vrot.slane %v2908_v52, 2  ;;  %v879_v14 = vrot.slane %v2908_v52, 5  ;;  %v878_v19 = vrot.slane %v2908_v52, 4 }
 0x21c   : > { %v891_v60 = vperm.slane %v875_v57, 0  ;;  %v922_v2 = vmul.f32 %v890_v61, %v2913_v54  ;;  %v893_v6 = vperm.slane %v877_v63, 0  ;;  %v881_v26 = vrot.slane %v2908_v52, 7 }
 0x21d   : > { %v892_v15 = vperm.slane %v876_v9, 0  ;;  %v895_v18 = vperm.slane %v879_v14, 0  ;;  %v894_v30 = vperm.slane %v878_v19, 0  ;;  %v880_v34 = vrot.slane %v2908_v52, 6 }
 0x21e   : > { %v923_v0 = vmul.f32 %v891_v60, %v2913_v54  ;;  %v946_v5 = vmul.f32 1.442695, %v922_v2  ;;  %v925_v11 = vmul.f32 %v893_v6, %v2913_v54  ;;  %v897_v33 = vperm.slane %v881_v26, 0 }
 0x21f   : > { %v924_v25 = vmul.f32 %v892_v15, %v2913_v54  ;;  %v927_v27 = vmul.f32 %v895_v18, %v2913_v54  ;;  %v926_v39 = vmul.f32 %v894_v30, %v2913_v54  ;;  %v896_v46 = vperm.slane %v880_v34, 0 }
 0x220   : > { %2462 = vset.pattern.permute.xlu2 %v2826_v45  ;;  %2477 = vset.pattern.permute.xlu0 %v2880_v29  ;;  %v948_v4 = vmul.f32 1.442695, %v923_v0  ;;  %v952_v1 = vmul.f32 1.442695, %v925_v11  ;;  %v2938_v21 = vpop.eup %2519  ;;  %v929_v42 = vmul.f32 %v897_v33, %v2913_v54  ;;  %v2987_v63 = vperm.slane %v2896_v44, 0 }
 0x221   : > { %1004 = vperm.xlu1 %2459, %v2899_v48   ;;  %v2944_v31 = vpop.eup %2521  ;;  %v950_v32 = vmul.f32 1.442695, %v924_v25  ;;  %v956_v38 = vmul.f32 1.442695, %v927_v27  ;;  %v954_v51 = vmul.f32 1.442695, %v926_v39  ;;  %v928_v55 = vmul.f32 %v896_v46, %v2913_v54 }
 0x222   : > { %2523 = vpow2.f32 %v948_v4  ;;  %v2954_v37 = vmul.f32 %v2944_v31, %v2938_v21  ;;  %v960_v53 = vmul.f32 1.442695, %v929_v42  ;;  %v3008_v4 = vperm.slane %v2896_v44, 4 }
 0x223   : > { %2525 = vpow2.f32 %v946_v5  ;;  %v958_v57 = vmul.f32 1.442695, %v928_v55  ;;  %v868_v11 = vrot.slane %v2894_v43, 1  ;;  %v882_v34 = vperm.slane %v2894_v43, 0 }
 0x224   : > { %2527 = vpow2.f32 %v952_v1  ;;  %v869_v39 = vrot.slane %v2894_v43, 2 }
 0x225   : > { %2529 = vpow2.f32 %v950_v32  ;;  %v883_v14 = vperm.slane %v868_v11, 0  ;;  %v914_v42 = vmul.f32 %v882_v34, %v2913_v54 }
 0x226   : > { %2531 = vpow2.f32 %v956_v38  ;;  %v870_v38 = vrot.slane %v2894_v43, 3 }
 0x227   : > { %2533 = vpow2.f32 %v954_v51  ;;  %v884_v51 = vperm.slane %v869_v39, 0  ;;  %v930_v55 = vmul.f32 1.442695, %v914_v42 }
 0x228   : > { %1018 = vperm.xlu2 %2462, %v2927_v7   ;;  %1184 = vperm.xlu0 %2477, %v2931_v10   ;;  %v2947_v35 = vpop.eup %2523  ;;  %2535 = vpow2.f32 %v960_v53  ;;  %v885_v46 = vperm.slane %v870_v38, 0 }
 0x229   : > { %2461 = vset.pattern.permute.xlu1 %v2880_v29  ;;  %v2957_v40 = vpop.eup %2525  ;;  %2537 = vpow2.f32 %v958_v57 }
 0x22a   : > { %v2965_v50 = vmul.f32 %v2957_v40, %v2947_v35  ;;  %v2970_v56 = vpop.eup %2527 }
 0x22b   : > { %v2973_v58 = vpop.eup %2529 }
 0x22c   : > { %v2975_v59 = vpop.eup %2531  ;;  %v2979_v60 = vmul.f32 %v2973_v58, %v2970_v56 }
 0x22d   : > { %v2981_v61 = vpop.eup %2533 }
 0x22e   : > { %v2989_v0 = vpop.eup %2535  ;;  %v2993_v2 = vmul.f32 %v2981_v61, %v2975_v59 }
 0x22f   : > { %v2997_v3 = vpop.eup %2537 }
 0x230   : > { %1025 = vperm.xlu2 %2462, %v2961_v47   ;;  %2480 = vset.pattern.permute.xlu0 %v2950_v36  ;;  %v3002_v20 = vmul.f32 %v2997_v3, %v2989_v0 }
 0x231   : > { %1118 = vperm.xlu1 %2461, %v2865_v22  }
 0x238   : > { %1032 = vperm.xlu2 %2462, %v2984_v62   ;;  %1553 = vperm.xlu0 %2480, %v2987_v63  }
 0x239   : > { %1124 = vperm.xlu1 %2461, %v2927_v7  }
 0x240   : > { %2463 = vset.pattern.permute.xlu2 %v2950_v36  ;;  %2483 = vset.pattern.permute.xlu0 %v2877_v28 }
 0x241   : > { %1130 = vperm.xlu1 %2461, %v2961_v47  }
 0x248   : > { %1511 = vperm.xlu2 %2463, %v2868_v23   ;;  %1673 = vperm.xlu0 %2483, %v3008_v4  }
 0x249   : > { %1136 = vperm.xlu1 %2461, %v2984_v62  }
 0x250   : > { %1517 = vperm.xlu2 %2463, %v2889_v41   ;;  %2486 = vset.pattern.permute.xlu0 %v2950_v36 }
 0x251   : > { %2464 = vset.pattern.permute.xlu1 %v2877_v28 }
 0x252   : > { %v991_v5 = vpop.permute.xlu2 %990 }
 0x258   : > { %1505 = vperm.xlu2 %2463, %v2871_v24   ;;  %1595 = vperm.xlu0 %2486, %v2931_v10  }
 0x259   : > { %1607 = vperm.xlu1 %2464, %v2868_v23   ;;  %v915_v23 = vmul.f32 %v883_v14, %v2913_v54 }
 0x25b   : > { %v932_v1 = vmul.f32 1.442695, %v915_v23 }
 0x25d   : > { %2539 = vpow2.f32 %v932_v1 }
 0x25e   : > { %2541 = vpow2.f32 %v930_v55 }
 0x260   : > { %2466 = vset.pattern.permute.xlu2 %v2877_v28 }
 0x261   : > { %1613 = vperm.xlu1 %2464, %v2889_v41   ;;  %v3030_v41 = vmul.f32 %v2894_v43, %v2851_v16 }
 0x262   : > { %v1101_v6 = vpop.permute.xlu2 %1100 }
 0x263   : > { %v1188_v9 = vsel %vm1186_vm1, %v991_v5, %v1101_v6  ;;  %v1219_v19 = vperm.slane %v3030_v41, 0  ;;  %v2540_v30 = vpop.eup %2539  ;;  %v917_v5 = vmul.f32 %v885_v46, %v2913_v54  ;;  %v916_v6 = vmul.f32 %v884_v51, %v2913_v54 }
 0x264   : > { %v1206_v23 = vrot.slane %v3030_v41, 2 }
 0x265   : > { %v936_v11 = vmul.f32 1.442695, %v917_v5  ;;  %v934_v14 = vmul.f32 1.442695, %v916_v6 }
 0x267   : > { %2543 = vpow2.f32 %v936_v11 }
 0x268   : > { %1601 = vperm.xlu2 %2466, %v2871_v24   ;;  %v1205_v24 = vrot.slane %v3030_v41, 1  ;;  %2545 = vpow2.f32 %v934_v14 }
 0x269   : > { %2465 = vset.pattern.permute.xlu1 %v2950_v36 }
 0x26a   : > { %v1220_v26 = vperm.slane %v1205_v24, 0  ;;  %v1107_v33 = vpop.permute.xlu2 %1106 }
 0x26b   : > { %v984_v15 = vpop.permute.xlu1 %983 }
 0x26c   : > { %v1252_v32 = vmul.f32 %v1220_v26, %v1188_v9  ;;  %v871_v9 = vrot.slane %v2894_v43, 4 }
 0x26e   : > { %v886_v1 = vperm.slane %v871_v9, 0  ;;  %v1208_v9 = vrot.slane %v3030_v41, 4 }
 0x270   : > { %2468 = vset.pattern.permute.xlu2 %v2950_v36 }
 0x271   : > { %1523 = vperm.xlu1 %2465, %v2899_v48  }
 0x272   : > { %v1113_v53 = vpop.permute.xlu2 %1112 }
 0x278   : > { %1529 = vperm.xlu2 %2468, %v2865_v22  }
 0x279   : > { %2467 = vset.pattern.permute.xlu1 %v2877_v28 }
 0x27b   : > { %v1095_v18 = vpop.permute.xlu1 %1094 }
 0x27c   : > { %v1187_v25 = vsel %vm1186_vm1, %v984_v15, %v1095_v18  ;;  %v1207_v18 = vrot.slane %v3030_v41, 3 }
 0x27d   : > { %v3037_v27 = vmul.f32 %v1219_v19, %v1187_v25  ;;  %v3056_v19 = vpop.eup %2541  ;;  %v872_v25 = vrot.slane %v2894_v43, 5 }
 0x27e   : > { %v1286_v26 = vmul.f32 %v3056_v19, %v2540_v30  ;;  %v2544_v39 = vpop.eup %2543 }
 0x27f   : > { %v1289_v16 = vmul.f32 %v2540_v30, %v3037_v27  ;;  %v887_v38 = vperm.slane %v872_v25, 0  ;;  %v3066_v51 = vpop.eup %2545 }
 0x280   : > { %2471 = vset.pattern.permute.xlu2 %v2877_v28  ;;  %v1400_v42 = vmul.f32 0.0, %v1286_v26  ;;  %v1298_v5 = vmul.f32 %v3066_v51, %v2544_v39  ;;  %v1209_v26 = vrot.slane %v3030_v41, 5 }
 0x281   : > { %v1292_v22 = vadd.f32 %v1289_v16, %v1252_v32  ;;  %1619 = vperm.xlu1 %2467, %v2899_v48   ;;  %v1221_v32 = vperm.slane %v1206_v23, 0  ;;  %v1223_v23 = vperm.slane %v1208_v9, 0 }
 0x282   : > { %v1019_v15 = vpop.permute.xlu2 %1018 }
 0x283   : > { %v3068_v30 = vadd.f32 %v1400_v42, %v1292_v22  ;;  %v1012_v22 = vpop.permute.xlu0 %1011 }
 0x285   : > { %v1406_v6 = vmul.f32 %v3068_v30, %v1298_v5  ;;  %v1210_v5 = vrot.slane %v3030_v41, 6 }
 0x288   : > { %1631 = vperm.xlu2 %2471, %v2927_v7  }
 0x289   : > { %2470 = vset.pattern.permute.xlu1 %v2950_v36 }
 0x28a   : > { %v1026_v55 = vpop.permute.xlu2 %1025 }
 0x28b   : > { %v998_v57 = vpop.permute.xlu1 %997 }
 0x28c   : > { %v1189_v48 = vsel %vm1186_vm1, %v998_v57, %v1107_v33  ;;  %v918_v33 = vmul.f32 %v886_v1, %v2913_v54  ;;  %v919_v57 = vmul.f32 %v887_v38, %v2913_v54 }
 0x28d   : > { %v3062_v34 = vmul.f32 %v1221_v32, %v1189_v48 }
 0x28e   : > { %v938_v43 = vmul.f32 1.442695, %v918_v33 }
 0x290   : > { %1637 = vperm.xlu2 %2471, %v2961_v47   ;;  %2547 = vpow2.f32 %v938_v43 }
 0x291   : > { %1535 = vperm.xlu1 %2470, %v2927_v7   ;;  %v1222_v7 = vperm.slane %v1207_v18, 0 }
 0x292   : > { %v1033_v25 = vpop.permute.xlu2 %1032 }
 0x293   : > { %v1005_v24 = vpop.permute.xlu1 %1004 }
 0x294   : > { %v1190_v16 = vsel %vm1186_vm1, %v1005_v24, %v1113_v53  ;;  %v1303_v53 = vmul.f32 %v2544_v39, %v3062_v34 }
 0x295   : > { %v1254_v46 = vmul.f32 %v1222_v7, %v1190_v16  ;;  %v1224_v7 = vperm.slane %v1209_v26, 0 }
 0x296   : > { %v2548_v1 = vpop.eup %2547 }
 0x297   : > { %v1306_v48 = vadd.f32 %v1303_v53, %v1254_v46 }
 0x298   : > { %2472 = vset.pattern.permute.xlu2 %v2950_v36 }
 0x299   : > { %1541 = vperm.xlu1 %2470, %v2961_v47   ;;  %v940_v47 = vmul.f32 1.442695, %v919_v57  ;;  %v3076_v11 = vadd.f32 %v1406_v6, %v1306_v48 }
 0x29b   : > { %2549 = vpow2.f32 %v940_v47  ;;  %v1461_v18 = vmul.f32 %v2548_v1, %v3076_v11 }
 0x2a0   : > { %1547 = vperm.xlu2 %2472, %v2984_v62  }
 0x2a1   : > { %2473 = vset.pattern.permute.xlu1 %v2877_v28  ;;  %v2550_v16 = vpop.eup %2549 }
 0x2a2   : > { %v1313_v46 = vmul.f32 %v2550_v16, %v2548_v1  ;;  %v1512_v43 = vpop.permute.xlu2 %1511 }
 0x2a3   : > { %v1119_v14 = vpop.permute.xlu1 %1118 }
 0x2a4   : > { %v1191_v54 = vsel %vm1186_vm1, %v1012_v22, %v1119_v14  ;;  %v1412_v57 = vmul.f32 %v3076_v11, %v1313_v46  ;;  %v1041_v22 = vperm.slane %v2896_v44, 1 }
 0x2a5   : > { %v1255_v24 = vmul.f32 %v1223_v23, %v1191_v54  ;;  %v1211_v23 = vrot.slane %v3030_v41, 7 }
 0x2a7   : > { %v1463_v32 = vadd.f32 %v1461_v18, %v1255_v24  ;;  %v1318_v39 = vmul.f32 %v2550_v16, %v1255_v24  ;;  %v1048_v18 = vperm.slane %v2896_v44, 2 }
 0x2a8   : > { %2474 = vset.pattern.permute.xlu2 %v2826_v45 }
 0x2a9   : > { %1643 = vperm.xlu1 %2473, %v2984_v62   ;;  %v1225_v62 = vperm.slane %v1210_v5, 0 }
 0x2ab   : > { %v1125_v33 = vpop.permute.xlu1 %1124 }
 0x2ac   : > { %v1192_v38 = vsel %vm1186_vm1, %v1019_v15, %v1125_v33  ;;  %v3115_v33 = vperm.slane %v2896_v44, 3 }
 0x2ad   : > { %v1256_v42 = vmul.f32 %v1224_v7, %v1192_v38 }
 0x2af   : > { %v1321_v53 = vadd.f32 %v1318_v39, %v1256_v42 }
 0x2b0   : > { %1039 = vperm.xlu2 %2474, %v2987_v63  }
 0x2b1   : > { %v3088_v48 = vadd.f32 %v1412_v57, %v1321_v53  ;;  %2475 = vset.pattern.permute.xlu1 %v2880_v29  ;;  %v1518_v29 = vpop.permute.xlu2 %1517 }
 0x2b3   : > { %v1131_v45 = vpop.permute.xlu1 %1130  ;;  %v1418_v15 = vmul.f32 %v3088_v48, %v2954_v37  ;;  %v1468_v47 = vmul.f32 %v2944_v31, %v3088_v48  ;;  %v1226_v37 = vperm.slane %v1211_v23, 0 }
 0x2b4   : > { %v1193_v6 = vsel %vm1186_vm1, %v1026_v55, %v1131_v45  ;;  %v3133_v45 = vperm.slane %v2896_v44, 5 }
 0x2b5   : > { %v1257_v9 = vmul.f32 %v1225_v62, %v1193_v6 }
 0x2b7   : > { %v1333_v14 = vmul.f32 %v2938_v21, %v1257_v9  ;;  %v3099_v1 = vadd.f32 %v1468_v47, %v1257_v9 }
 0x2b8   : > { %1046 = vperm.xlu2 %2474, %v1041_v22  }
 0x2b9   : > { %1142 = vperm.xlu1 %2475, %v2987_v63   ;;  %v1506_v21 = vpop.permute.xlu2 %1505 }
 0x2bb   : > { %v1137_v54 = vpop.permute.xlu1 %1136 }
 0x2bc   : > { %v1194_v55 = vsel %vm1186_vm1, %v1033_v25, %v1137_v54 }
 0x2bd   : > { %v1258_v24 = vmul.f32 %v1226_v37, %v1194_v55 }
 0x2bf   : > { %v1336_v31 = vadd.f32 %v1333_v14, %v1258_v24 }
 0x2c0   : > { %1053 = vperm.xlu2 %2474, %v1048_v18  }
 0x2c1   : > { %v3104_v26 = vadd.f32 %v1418_v15, %v1336_v31  ;;  %1148 = vperm.xlu1 %2475, %v1041_v22   ;;  %v1448_v31 = vmul.f32 0.0, %v3056_v19 }
 0x2c2   : > { %v1602_v25 = vpop.permute.xlu2 %1601 }
 0x2c3   : > { %v3108_v41 = vmul.f32 %v3104_v26, %v2965_v50  ;;  %v3112_v16 = vmul.f32 %v2957_v40, %v3104_v26  ;;  %v1454_v50 = vmul.f32 %v3066_v51, %v3068_v30  ;;  %v1626_v40 = vpop.permute.xlu0 %1625 }
 0x2c5   : > { %v1456_v53 = vadd.f32 %v1454_v50, %v3062_v34  ;;  %v1693_v50 = vsel %vm1186_vm1, %v1506_v21, %v1602_v25 }
 0x2c8   : > { %1060 = vperm.xlu2 %2474, %v3115_v33  }
 0x2c9   : > { %1154 = vperm.xlu1 %2475, %v1048_v18  }
 0x2cb   : > { %v1608_v7 = vpop.permute.xlu1 %1607 }
 0x2cc   : > { %v3119_v38 = vsel %vm1186_vm1, %v1512_v43, %v1608_v7 }
 0x2cd   : > { %v1726_v21 = vmul.f32 %v3119_v38, %v3068_v30 }
 0x2cf   : > { %v1747_v25 = vrot.slane %v1726_v21, 4 }
 0x2d0   : > { %1067 = vperm.xlu2 %2474, %v3008_v4  }
 0x2d1   : > { %1160 = vperm.xlu1 %2475, %v3115_v33  }
 0x2d2   : > { %v1530_v39 = vpop.permute.xlu2 %1529 }
 0x2d3   : > { %v1697_v42 = vsel %vm1186_vm1, %v1530_v39, %v1626_v40  ;;  %v1614_v46 = vpop.permute.xlu1 %1613  ;;  %v1450_v39 = vadd.f32 %v1448_v31, %v3037_v27 }
 0x2d4   : > { %v3127_v57 = vmul.f32 %v1697_v42, %v1463_v32  ;;  %v1695_v5 = vsel %vm1186_vm1, %v1518_v29, %v1614_v46 }
 0x2d5   : > { %v3130_v43 = vmul.f32 %v1695_v5, %v1456_v53  ;;  %v1725_v46 = vmul.f32 %v1693_v50, %v1450_v39 }
 0x2d8   : > { %1074 = vperm.xlu2 %2474, %v3133_v45  }
 0x2d9   : > { %1166 = vperm.xlu1 %2475, %v3008_v4  }
 0x2e0   : > { %1088 = vperm.xlu2 %2474, %v2931_v10  }
 0x2e1   : > { %1172 = vperm.xlu1 %2475, %v3133_v45  }
 0x2e2   : > { %v1632_v51 = vpop.permute.xlu2 %1631 }
 0x2e3   : > { %v1524_v34 = vpop.permute.xlu1 %1523 }
 0x2e8   : > { %2479 = vset.pattern.permute.xlu2 %v2877_v28 }
 0x2e9   : > { %1178 = vperm.xlu1 %2475, %v2902_v49  }
 0x2ea   : > { %v1638_v9 = vpop.permute.xlu2 %1637 }
 0x2f0   : > { %1655 = vperm.xlu2 %2479, %v1041_v22  }
 0x2f1   : > { %2478 = vset.pattern.permute.xlu1 %v2950_v36 }
 0x2f3   : > { %v1620_v32 = vpop.permute.xlu1 %1619 }
 0x2f4   : > { %v1696_v44 = vsel %vm1186_vm1, %v1524_v34, %v1620_v32 }
 0x2f5   : > { %v1728_v62 = vmul.f32 %v1696_v44, %v3076_v11  ;;  %v1748_v44 = vadd.f32 %v1747_v25, %v1726_v21 }
 0x2f7   : > { %v1759_v15 = vrot.slane %v1728_v62, 4 }
 0x2f8   : > { %1661 = vperm.xlu2 %2479, %v1048_v18  }
 0x2f9   : > { %v1760_v6 = vadd.f32 %v1759_v15, %v1728_v62  ;;  %1559 = vperm.xlu1 %2478, %v1041_v22  }
 0x2fa   : > { %v3147_v54 = vpop.permute.xlu2 %1547 }
 0x2fb   : > { %v1761_v47 = vrot.slane %v1760_v6, 2 }
 0x2fd   : > { %v1762_v14 = vadd.f32 %v1761_v47, %v1760_v6  ;;  %v3178_v6 = vmul.f32 %v2908_v52, %v2855_v17 }
 0x2ff   : > { %v1763_v23 = vrot.slane %v1762_v14, 1  ;;  %v1213_v39 = vrot.slane %v3178_v6, 2 }
 0x300   : > { %1649 = vperm.xlu2 %2479, %v2987_v63  }
 0x301   : > { %1565 = vperm.xlu1 %2478, %v1048_v18   ;;  %v3145_v29 = vadd.f32 %v1763_v23, %v1762_v14  ;;  %v1229_v21 = vperm.slane %v1213_v39, 0 }
 0x303   : > { %v1536_v37 = vpop.permute.xlu1 %1535  ;;  %1859 = vrot.lane.b32.xlu0 %v3145_v29, %s2580_s24 }
 0x308   : > { %2482 = vset.pattern.permute.xlu2 %v2950_v36 }
 0x309   : > { %1571 = vperm.xlu1 %2478, %v3115_v33  }
 0x30a   : > { %v1040_v11 = vpop.permute.xlu2 %1039 }
 0x30b   : > { %v1542_v22 = vpop.permute.xlu1 %1541 }
 0x30c   : > { %v1699_v55 = vsel %vm1186_vm1, %v1542_v22, %v1638_v9  ;;  %v1212_v22 = vrot.slane %v3178_v6, 1 }
 0x30d   : > { %v1731_v63 = vmul.f32 %v1699_v55, %v3099_v1  ;;  %v3196_v55 = vpop.permute.xlu0 %1081 }
 0x30f   : > { %v1777_v24 = vrot.slane %v1731_v63, 4 }
 0x310   : > { %1577 = vperm.xlu2 %2482, %v3008_v4   ;;  %v1741_v4 = vrot.slane %v1725_v46, 4 }
 0x311   : > { %v1778_v18 = vadd.f32 %v1777_v24, %v1731_v63  ;;  %2481 = vset.pattern.permute.xlu1 %v2877_v28 }
 0x312   : > { %v1047_v7 = vpop.permute.xlu2 %1046  ;;  %v1742_v19 = vadd.f32 %v1741_v4, %v1725_v46 }
 0x313   : > { %v1779_v40 = vrot.slane %v1778_v18, 2 }
 0x314   : > { %v1743_v27 = vrot.slane %v1742_v19, 2 }
 0x315   : > { %v1780_v42 = vadd.f32 %v1779_v40, %v1778_v18  ;;  %v1753_v18 = vrot.slane %v3130_v43, 4 }
 0x316   : > { %v1744_v15 = vadd.f32 %v1743_v27, %v1742_v19  ;;  %v1765_v19 = vrot.slane %v3127_v57, 4 }
 0x317   : > { %v1781_v53 = vrot.slane %v1780_v42, 1  ;;  %v1754_v46 = vadd.f32 %v1753_v18, %v3130_v43 }
 0x318   : > { %2485 = vset.pattern.permute.xlu2 %v2877_v28  ;;  %v1745_v9 = vrot.slane %v1744_v15, 1 }
 0x319   : > { %1667 = vperm.xlu1 %2481, %v3115_v33   ;;  %v3162_v1 = vadd.f32 %v1781_v53, %v1780_v42  ;;  %v1698_v33 = vsel %vm1186_vm1, %v1536_v37, %v1632_v51  ;;  %v1227_v51 = vperm.slane %v3178_v6, 0  ;;  %v1218_v42 = vrot.slane %v3178_v6, 7 }
 0x31a   : > { %v3164_v5 = vpop.permute.xlu2 %1053  ;;  %v1730_v62 = vmul.f32 %v1698_v33, %v3088_v48  ;;  %v3186_v37 = vadd.f32 %v1745_v9, %v1744_v15 }
 0x31b   : > { %1865 = vrot.lane.b32.xlu0 %v3162_v1, %s2580_s24  ;;  %v1644_v32 = vpop.permute.xlu1 %1643  ;;  %v1234_v25 = vperm.slane %v1218_v42, 0 }
 0x31c   : > { %v1771_v30 = vrot.slane %v1730_v62, 4 }
 0x31e   : > { %v1772_v23 = vadd.f32 %v1771_v30, %v1730_v62 }
 0x320   : > { %1679 = vperm.xlu2 %2485, %v3133_v45  }
 0x321   : > { %2484 = vset.pattern.permute.xlu1 %v2950_v36  ;;  %v1749_v36 = vrot.slane %v1748_v44, 2 }
 0x322   : > { %v3172_v34 = vpop.permute.xlu2 %1060 }
 0x323   : > { %v1750_v17 = vadd.f32 %v1749_v36, %v1748_v44  ;;  %v1755_v44 = vrot.slane %v1754_v46, 2 }
 0x325   : > { %v1751_v24 = vrot.slane %v1750_v17, 1 }
 0x328   : > { %1685 = vperm.xlu2 %2485, %v2902_v49  }
 0x329   : > { %1583 = vperm.xlu1 %2484, %v3133_v45  }
 0x32a   : > { %v3182_v38 = vpop.permute.xlu2 %1067 }
 0x32b   : > { %v1143_v47 = vpop.permute.xlu1 %1142 }
 0x32c   : > { %v1195_v14 = vsel %vm1186_vm1, %v1040_v11, %v1143_v47  ;;  %v1773_v11 = vrot.slane %v1772_v23, 2  ;;  %v1766_v47 = vadd.f32 %v1765_v19, %v3127_v57 }
 0x32d   : > { %v1259_v48 = vmul.f32 %v1227_v51, %v1195_v14  ;;  %v1214_v14 = vrot.slane %v3178_v6, 3 }
 0x32f   : > { %v1348_v52 = vmul.f32 %v2947_v35, %v1259_v48  ;;  %v3191_v45 = vadd.f32 %v3112_v16, %v1259_v48  ;;  %v1228_v35 = vperm.slane %v1212_v22, 0  ;;  %v3202_v16 = vadd.f32 %v1751_v24, %v1750_v17 }
 0x330   : > { %1853 = vrot.lane.b32.xlu2 %v3186_v37, %s2580_s24  ;;  %v1230_v57 = vperm.slane %v1214_v14, 0 }
 0x331   : > { %1589 = vperm.xlu1 %2484, %v2902_v49   ;;  %v1774_v49 = vadd.f32 %v1773_v11, %v1772_v23 }
 0x332   : > { %v3198_v63 = vpop.permute.xlu2 %1074 }
 0x333   : > { %v1149_v31 = vpop.permute.xlu1 %1148  ;;  %v1775_v33 = vrot.slane %v1774_v49, 1 }
 0x334   : > { %v1196_v50 = vsel %vm1186_vm1, %v1047_v7, %v1149_v31  ;;  %v1185_v7 = vpop.permute.xlu0 %1184 }
 0x335   : > { %v1260_v40 = vmul.f32 %v1228_v35, %v1196_v50  ;;  %v3226_v51 = vadd.f32 %v1775_v33, %v1774_v49 }
 0x337   : > { %v1351_v53 = vadd.f32 %v1348_v52, %v1260_v40 }
 0x338   : > { %1855 = vrot.lane.b32.xlu2 %v3202_v16, %s2580_s24 }
 0x339   : > { %v3210_v4 = vadd.f32 %v3108_v41, %v1351_v53  ;;  %2487 = vset.pattern.permute.xlu1 %v2877_v28  ;;  %v1700_v28 = vsel %vm1186_vm1, %v3147_v54, %v1644_v32  ;;  %v1767_v54 = vrot.slane %v1766_v47, 2  ;;  %v1216_v53 = vrot.slane %v3178_v6, 5 }
 0x33a   : > { %v1089_v27 = vpop.permute.xlu2 %1088 }
 0x33b   : > { %v1155_v62 = vpop.permute.xlu1 %1154  ;;  %v1202_v43 = vsel %vm1186_vm1, %v1089_v27, %v1185_v7  ;;  %v1430_v15 = vmul.f32 %v3210_v4, %v2979_v60  ;;  %v1482_v41 = vmul.f32 %v2973_v58, %v3210_v4  ;;  %v1732_v60 = vmul.f32 %v1700_v28, %v3104_v26 }
 0x33c   : > { %v1197_v36 = vsel %vm1186_vm1, %v3164_v5, %v1155_v62  ;;  %v3223_v30 = vmul.f32 %v1234_v25, %v1202_v43  ;;  %v1756_v58 = vadd.f32 %v1755_v44, %v1754_v46  ;;  %v1215_v26 = vrot.slane %v3178_v6, 4 }
 0x33d   : > { %v1261_v9 = vmul.f32 %v1229_v21, %v1197_v36  ;;  %v1783_v5 = vrot.slane %v1732_v60, 4  ;;  %v1768_v18 = vadd.f32 %v1767_v54, %v1766_v47  ;;  %v1232_v33 = vperm.slane %v1216_v53, 0 }
 0x33e   : > { %v1757_v17 = vrot.slane %v1756_v58, 1 }
 0x33f   : > { %v1363_v48 = vmul.f32 %v2970_v56, %v1261_v9  ;;  %v3231_v23 = vadd.f32 %v1482_v41, %v1261_v9  ;;  %v1784_v56 = vadd.f32 %v1783_v5, %v1732_v60  ;;  %v1769_v39 = vrot.slane %v1768_v18, 1  ;;  %v1554_v41 = vpop.permute.xlu0 %1553 }
 0x340   : > { %1863 = vrot.lane.b32.xlu2 %v3226_v51, %s2580_s24  ;;  %v3239_v24 = vadd.f32 %v1757_v17, %v1756_v58 }
 0x341   : > { %1691 = vperm.xlu1 %2487, %v2931_v10   ;;  %v1231_v10 = vperm.slane %v1215_v26, 0  ;;  %v1785_v50 = vrot.slane %v1784_v56, 2  ;;  %v3253_v19 = vadd.f32 %v1769_v39, %v1768_v18 }
 0x343   : > { %v1161_v32 = vpop.permute.xlu1 %1160  ;;  %v1786_v21 = vadd.f32 %v1785_v50, %v1784_v56 }
 0x344   : > { %v1198_v52 = vsel %vm1186_vm1, %v3172_v34, %v1161_v32 }
 0x345   : > { %v1262_v22 = vmul.f32 %v1230_v57, %v1198_v52  ;;  %v1787_v44 = vrot.slane %v1786_v21, 1 }
 0x347   : > { %v1366_v11 = vadd.f32 %v1363_v48, %v1262_v22  ;;  %v3259_v43 = vadd.f32 %v1787_v44, %v1786_v21 }
 0x349   : > { %v3241_v31 = vadd.f32 %v1430_v15, %v1366_v11  ;;  %1857 = vrot.lane.b32.xlu1 %v3239_v24, %s2580_s24 }
 0x34a   : > { %v1656_v35 = vpop.permute.xlu2 %1655 }
 0x34b   : > { %v1167_v40 = vpop.permute.xlu1 %1166  ;;  %v1436_v34 = vmul.f32 %v3241_v31, %v2993_v2  ;;  %v1489_v42 = vmul.f32 %v2981_v61, %v3241_v31 }
 0x34c   : > { %v1199_v49 = vsel %vm1186_vm1, %v3182_v38, %v1167_v40 }
 0x34d   : > { %v1263_v46 = vmul.f32 %v1231_v10, %v1199_v49 }
 0x34f   : > { %v1378_v7 = vmul.f32 %v2975_v59, %v1263_v46  ;;  %v1491_v27 = vadd.f32 %v1489_v42, %v1263_v46  ;;  %v1217_v59 = vrot.slane %v3178_v6, 6 }
 0x351   : > { %1861 = vrot.lane.b32.xlu1 %v3253_v19, %s2580_s24  ;;  %v1233_v9 = vperm.slane %v1217_v59, 0 }
 0x352   : > { %v1662_v25 = vpop.permute.xlu2 %1661 }
 0x353   : > { %v1173_v2 = vpop.permute.xlu1 %1172 }
 0x354   : > { %v1200_v61 = vsel %vm1186_vm1, %v3198_v63, %v1173_v2 }
 0x355   : > { %v1264_v38 = vmul.f32 %v1232_v33, %v1200_v61  ;;  %v3295_v61 = vpop.f32.mrf.mxu1 }
 0x357   : > { %v1381_v62 = vadd.f32 %v1378_v7, %v1264_v38 }
 0x359   : > { %v3262_v15 = vadd.f32 %v1436_v34, %v1381_v62  ;;  %1867 = vrot.lane.b32.xlu1 %v3259_v43, %s2580_s24  ;;  %v746_v62 = vsub.f32 0.0, %v3295_v61 }
 0x35a   : > { %v1650_v28 = vpop.permute.xlu2 %1649 }
 0x35b   : > { %v1179_v36 = vpop.permute.xlu1 %1178  ;;  %v1701_v47 = vsel %vm1186_vm1, %v1554_v41, %v1650_v28  ;;  %v1496_v63 = vmul.f32 %v2997_v3, %v3262_v15  ;;  %v1442_v14 = vmul.f32 %v3262_v15, %v3002_v20  ;;  %v748_v41 = vmul.f32 1.442695, %v746_v62 }
 0x35c   : > { %v1201_v6 = vsel %vm1186_vm1, %v3196_v55, %v1179_v36  ;;  %v1733_v60 = vmul.f32 %v1701_v47, %v3191_v45 }
 0x35d   : > { %v1265_v48 = vmul.f32 %v1233_v9, %v1201_v6  ;;  %2551 = vpow2.f32 %v748_v41 }
 0x35e   : > { %v1789_v58 = vrot.slane %v1733_v60, 4 }
 0x35f   : > { %v1393_v54 = vmul.f32 %v2989_v0, %v1265_v48  ;;  %v3275_v5 = vadd.f32 %v1496_v63, %v1265_v48  ;;  %v1674_v0 = vpop.permute.xlu0 %1673 }
 0x360   : > { %v1790_v32 = vadd.f32 %v1789_v58, %v1733_v60 }
 0x361   : > { %v1396_v57 = vadd.f32 %v1393_v54, %v3223_v30 }
 0x362   : > { %v1791_v17 = vrot.slane %v1790_v32, 2 }
 0x363   : > { %v3278_v52 = vadd.f32 %v1442_v14, %v1396_v57  ;;  %v2552_v6 = vpop.eup %2551 }
 0x364   : > { %v1792_v3 = vadd.f32 %v1791_v17, %v1790_v32  ;;  %v752_v48 = vadd.f32 1.0, %v2552_v6  ;;  %v2571_v6 = vld [vmem:[%s3503_s9] ss:$0 sm:$0xff] }
 0x366   : > { %v1793_v22 = vrot.slane %v1792_v3, 1  ;;  %2553 = vrcp.f32 %v752_v48  ;;  %vm759_vm3 = vweird.f32 %v752_v48 }
 0x368   : > { %v3280_v20 = vadd.f32 %v1793_v22, %v1792_v3 }
 0x36a   : > { %1869 = vrot.lane.b32.xlu1 %v3280_v20, %s2580_s24  ;;  %v1578_v55 = vpop.permute.xlu2 %1577 }
 0x36b   : > { %v1560_v45 = vpop.permute.xlu1 %1559  ;;  %v1705_v11 = vsel %vm1186_vm1, %v1578_v55, %v1674_v0 }
 0x36c   : > { %v1702_v26 = vsel %vm1186_vm1, %v1560_v45, %v1656_v35  ;;  %v1737_v10 = vmul.f32 %v1705_v11, %v1491_v27  ;;  %v2554_v22 = vpop.eup %2553 }
 0x36d   : > { %v1734_v56 = vmul.f32 %v1702_v26, %v3210_v4  ;;  %vm760_vm2 = vweird.f32 %v2554_v22 }
 0x36e   : > { %v1813_v34 = vrot.slane %v1737_v10, 4  ;;  %vm3335_vm4 = vmor %vm759_vm3, %vm760_vm2 }
 0x36f   : > { %v1795_v30 = vrot.slane %v1734_v56, 4 }
 0x370   : > { %v1814_v7 = vadd.f32 %v1813_v34, %v1737_v10 }
 0x371   : > { %v1796_v18 = vadd.f32 %v1795_v30, %v1734_v56  ;;  %v755_v56 = vmul.f32 %v2554_v22, %v752_v48 }
 0x372   : > { %v1815_v2 = vrot.slane %v1814_v7, 2 }
 0x373   : > { %v1797_v50 = vrot.slane %v1796_v18, 2  ;;  %v1566_v40 = vpop.permute.xlu1 %1565 }
 0x374   : > { %v1703_v39 = vsel %vm1186_vm1, %v1566_v40, %v1662_v25  ;;  %v1816_v25 = vadd.f32 %v1815_v2, %v1814_v7  ;;  %v756_v40 = vsub.f32 1.0, %v755_v56  ;;  %v516_v7 = vld [vmem:[%s3504_s10 + $0x28] sm:$0xff]  ;;  %v765_v2 = vand.u32 2147483648, %v752_v48 }
 0x375   : > { %v1735_v42 = vmul.f32 %v1703_v39, %v3231_v23  ;;  %v1798_v49 = vadd.f32 %v1797_v50, %v1796_v18 }
 0x376   : > { %v1817_v38 = vrot.slane %v1816_v25, 1 }
 0x377   : > { %v1801_v46 = vrot.slane %v1735_v42, 4  ;;  %v1799_v53 = vrot.slane %v1798_v49, 1 }
 0x378   : > { %v3300_v59 = vadd.f32 %v1817_v38, %v1816_v25  ;;  %v1596_v25 = vpop.permute.xlu0 %1595  ;;  %v514_v38 = vld [vmem:[%s3504_s10 + $0x18] sm:$0xff] }
 0x379   : > { %v1802_v35 = vadd.f32 %v1801_v46, %v1735_v42  ;;  %v3289_v21 = vadd.f32 %v1799_v53, %v1798_v49  ;;  %v757_v49 = vmul.f32 %v2554_v22, %v756_v40  ;;  %v518_v46 = vld [vmem:[%s3504_s10 + $0x38] sm:$0xff]  ;;  %v3370_v40 = vmul.f32 %v2571_v6, %v2845_v12 }
 0x37a   : > { %v1680_v58 = vpop.permute.xlu2 %1679  ;;  %2086 = vmatpush.msrb.mxu1 %v518_v46 }
 0x37b   : > { %v1803_v4 = vrot.slane %v1802_v35, 2  ;;  %1871 = vrot.lane.b32.xlu2 %v3289_v21, %s2580_s24  ;;  %v1572_v23 = vpop.permute.xlu1 %1571 }
 0x37d   : > { %v1804_v27 = vadd.f32 %v1803_v4, %v1802_v35  ;;  %v758_v4 = vadd.f32 %v2554_v22, %v757_v49 }
 0x37f   : > { %v1805_v33 = vrot.slane %v1804_v27, 1 }
 0x381   : > { %v3293_v44 = vadd.f32 %v1805_v33, %v1804_v27  ;;  %v763_v33 = vand.u32 2147483647, %v752_v48  ;;  %v512_v48 = vld [vmem:[%s3504_s10 + $0x8] sm:$0xff] }
 0x382   : > { %v1686_v45 = vpop.permute.xlu2 %1685 }
 0x383   : > { %1873 = vrot.lane.b32.xlu0 %v3293_v44, %s2580_s24  ;;  %vm764_vm5 = vcmp.eq.f32.partialorder %v763_v33, 8.507059e+37  ;;  %v1930_v33 = vrot.slane %v3370_v40, 2 }
 0x38a   : > { %v1854_v42 = vpop.permute.xlu2 %1853 }
 0x38b   : > { %v1668_v28 = vpop.permute.xlu1 %1667  ;;  %1877 = vrot.lane.b32.xlu0 %v3300_v59, %s2580_s24 }
 0x38c   : > { %v1704_v36 = vsel %vm1186_vm1, %v1572_v23, %v1668_v28  ;;  %v515_v23 = vld [vmem:[%s3504_s10 + $0x20] sm:$0xff]  ;;  %v762_v28 = vsel %vm3335_vm4, %v2554_v22, %v758_v4 }
 0x38d   : > { %v1736_v9 = vmul.f32 %v1704_v36, %v3241_v31 }
 0x38f   : > { %v1807_v47 = vrot.slane %v1736_v9, 4 }
 0x391   : > { %v1808_v63 = vadd.f32 %v1807_v47, %v1736_v9  ;;  %v513_v9 = vld [vmem:[%s3504_s10 + $0x10] sm:$0xff]  ;;  %v766_v47 = vor.u32 1.1754944e-38, %v765_v2 }
 0x393   : > { %v1809_v14 = vrot.slane %v1808_v63, 2 }
 0x395   : > { %v1810_v60 = vadd.f32 %v1809_v14, %v1808_v63  ;;  %v1856_v63 = vpop.permute.xlu2 %1855 }
 0x397   : > { %v1811_v54 = vrot.slane %v1810_v60, 1 }
 0x399   : > { %v3306_v32 = vadd.f32 %v1811_v54, %v1810_v60  ;;  %v1920_v60 = vmul.f32 %v2571_v6, %v2838_v8  ;;  %v1860_v8 = vpop.permute.xlu0 %1859 }
 0x39b   : > { %v1584_v57 = vpop.permute.xlu1 %1583  ;;  %1875 = vrot.lane.b32.xlu2 %v3306_v32, %s2580_s24  ;;  %v1927_v22 = vrot.slane %v1920_v60, 6  ;;  %v1928_v56 = vrot.slane %v1920_v60, 7  ;;  %v1926_v46 = vrot.slane %v1920_v60, 5 }
 0x39c   : > { %v1706_v17 = vsel %vm1186_vm1, %v1584_v57, %v1680_v58  ;;  %v767_v58 = vsel %vm764_vm5, %v766_v47, %v762_v28  ;;  %v3355_v57 = vpop.f32.mrf.mxu1 }
 0x39d   : > { %v1738_v31 = vmul.f32 %v1706_v17, %v3262_v15  ;;  %v1902_v17 = vadd.f32 %v1856_v63, %v3202_v16 }
 0x39f   : > { %v1819_v3 = vrot.slane %v1738_v31, 4 }
 0x3a1   : > { %v1820_v55 = vadd.f32 %v1819_v3, %v1738_v31  ;;  %v3362_v3 = vmul.f32 %v767_v58, %v3295_v61 }
 0x3a3   : > { %v1821_v26 = vrot.slane %v1820_v55, 2  ;;  %v1590_v0 = vpop.permute.xlu1 %1589  ;;  %v1977_v12 = vrot.slane %v3362_v3, 4  ;;  %v1978_v63 = vrot.slane %v3362_v3, 5 }
 0x3a4   : > { %v1707_v11 = vsel %vm1186_vm1, %v1590_v0, %v1686_v45  ;;  %v747_v45 = vsub.f32 0.0, %v3355_v57  ;;  %v1957_v0 = vadd.f32 %v1927_v22, %v1902_v17 }
 0x3a5   : > { %v1739_v30 = vmul.f32 %v1707_v11, %v3275_v5  ;;  %v1822_v18 = vadd.f32 %v1821_v26, %v1820_v55  ;;  %v517_v5 = vld [vmem:[%s3504_s10 + $0x30] sm:$0xff]  ;;  %v1904_v11 = vadd.f32 %v1860_v8, %v3145_v29 }
 0x3a6   : > { %2087 = vmatpush.msrb.mxu1 %v517_v5 }
 0x3a7   : > { %v1825_v10 = vrot.slane %v1739_v30, 4  ;;  %v1823_v50 = vrot.slane %v1822_v18, 1 }
 0x3a8   : > { %2088 = vmatpush.msrb.mxu1 %v516_v7 }
 0x3a9   : > { %v1826_v39 = vadd.f32 %v1825_v10, %v1739_v30  ;;  %v3314_v34 = vadd.f32 %v1823_v50, %v1822_v18  ;;  %v1901_v18 = vadd.f32 %v1854_v42, %v3186_v37  ;;  %v1974_v10 = vrot.slane %v3362_v3, 1  ;;  %v1866_v37 = vpop.permute.xlu0 %1865 }
 0x3aa   : > { %2089 = vmatpush.msrb.mxu1 %v515_v23  ;;  %v750_v50 = vmul.f32 1.442695, %v747_v45  ;;  %v1907_v62 = vadd.f32 %v1866_v37, %v3162_v1 }
 0x3ab   : > { %v1827_v15 = vrot.slane %v1826_v39, 2  ;;  %1879 = vrot.lane.b32.xlu1 %v3314_v34, %s2580_s24  ;;  %v2005_v5 = vmul.f32 %v1974_v10, %v1957_v0  ;;  %v1956_v7 = vadd.f32 %v1926_v46, %v1901_v18  ;;  %v1980_v0 = vrot.slane %v3362_v3, 7 }
 0x3ac   : > { %2090 = vmatpush.msrb.mxu1 %v514_v38  ;;  %2555 = vpow2.f32 %v750_v50 }
 0x3ad   : > { %v1828_v53 = vadd.f32 %v1827_v15, %v1826_v39  ;;  %v1864_v39 = vpop.permute.xlu2 %1863  ;;  %v1975_v15 = vrot.slane %v3362_v3, 2  ;;  %v2039_v2 = vrot.slane %v2005_v5, 7 }
 0x3ae   : > { %2091 = vmatpush.msrb.mxu1 %v513_v9  ;;  %v1906_v42 = vadd.f32 %v1864_v39, %v3226_v51  ;;  %v1931_v9 = vrot.slane %v3370_v40, 3 }
 0x3af   : > { %v1829_v35 = vrot.slane %v1828_v53, 1 }
 0x3b0   : > { %2092 = vmatpush.msrb.mxu1 %v512_v48  ;;  %v1961_v28 = vadd.f32 %v1930_v33, %v1906_v42  ;;  %v1962_v60 = vadd.f32 %v1931_v9, %v1907_v62  ;;  %v1933_v33 = vrot.slane %v3370_v40, 5 }
 0x3b1   : > { %v3327_v27 = vadd.f32 %v1829_v35, %v1828_v53  ;;  %v1976_v35 = vrot.slane %v3362_v3, 3 }
 0x3b2   : > { %v2556_v6 = vpop.eup %2555  ;;  %v2009_v48 = vmul.f32 %v1978_v63, %v1961_v28 }
 0x3b3   : > { %v1692_v41 = vpop.permute.xlu1 %1691  ;;  %1881 = vrot.lane.b32.xlu2 %v3327_v27, %s2580_s24 }
 0x3b4   : > { %v1708_v36 = vsel %vm1186_vm1, %v1596_v25, %v1692_v41  ;;  %v1929_v25 = vrot.slane %v3370_v40, 1  ;;  %v2004_v41 = vmul.f32 %v1956_v7, %v3362_v3 }
 0x3b5   : > { %v1740_v14 = vmul.f32 %v1708_v36, %v3278_v52  ;;  %v511_v52 = vld [vmem:[%s3504_s10] sm:$0xff] }
 0x3b6   : > { %2093 = vmatpush.msrb.mxu1 %v511_v52  ;;  %v2041_v47 = vsel %vm2040_vm6, %v2039_v2, %v2004_v41 }
 0x3b7   : > { %v1831_v54 = vrot.slane %v1740_v14, 4 }
 0x3b9   : > { %v1832_v31 = vadd.f32 %v1831_v54, %v1740_v14  ;;  %v1979_v54 = vrot.slane %v3362_v3, 6 }
 0x3bb   : > { %v1833_v55 = vrot.slane %v1832_v31, 2  ;;  %v1858_v26 = vpop.permute.xlu1 %1857  ;;  %v2010_v22 = vmul.f32 %v1979_v54, %v1962_v60 }
 0x3bc   : > { %v1903_v16 = vadd.f32 %v1858_v26, %v3239_v24  ;;  %v1959_v24 = vadd.f32 %v3370_v40, %v1904_v11  ;;  %v2051_v26 = vrot.slane %v2009_v48, 3 }
 0x3bd   : > { %v1834_v30 = vadd.f32 %v1833_v55, %v1832_v31  ;;  %v1932_v31 = vrot.slane %v3370_v40, 4  ;;  %v753_v55 = vadd.f32 1.0, %v2556_v6 }
 0x3be   : > { %v1958_v61 = vadd.f32 %v1928_v56, %v1903_v16  ;;  %v2007_v38 = vmul.f32 %v1976_v35, %v1959_v24 }
 0x3bf   : > { %v1835_v49 = vrot.slane %v1834_v30, 1  ;;  %2557 = vrcp.f32 %v753_v55  ;;  %vm774_vm14 = vweird.f32 %v753_v55  ;;  %v778_v46 = vand.u32 2147483647, %v753_v55 }
 0x3c0   : > { %v2006_v53 = vmul.f32 %v1975_v15, %v1958_v61  ;;  %v2045_v1 = vrot.slane %v2007_v38, 5 }
 0x3c1   : > { %v3374_v29 = vadd.f32 %v1835_v49, %v1834_v30  ;;  %v2054_v30 = vrot.slane %v2010_v22, 2  ;;  %v780_v49 = vand.u32 2147483648, %v753_v55  ;;  %vm779_vm0 = vcmp.eq.f32.partialorder %v778_v46, 8.507059e+37 }
 0x3c2   : > { %v2042_v51 = vrot.slane %v2006_v53, 6 }
 0x3c3   : > { %v1862_v4 = vpop.permute.xlu1 %1861  ;;  %1883 = vrot.lane.b32.xlu0 %v3374_v29, %s2580_s24  ;;  %v781_v24 = vor.u32 1.1754944e-38, %v780_v49 }
 0x3c4   : > { %v1905_v23 = vadd.f32 %v1862_v4, %v3253_v19  ;;  %v2044_v19 = vsel %vm2043_vm7, %v2042_v51, %v2041_v47  ;;  %v1935_v51 = vrot.slane %v3370_v40, 7 }
 0x3c5   : > { %v2047_v52 = vsel %vm2046_vm8, %v2045_v1, %v2044_v19  ;;  %v2558_v61 = vpop.eup %2557 }
 0x3c6   : > { %v1960_v36 = vadd.f32 %v1929_v25, %v1905_v23  ;;  %v770_v50 = vmul.f32 %v2558_v61, %v753_v55  ;;  %vm775_vm13 = vweird.f32 %v2558_v61  ;;  %v1938_v55 = vrot.slane %v2847_v13, 3 }
 0x3c7   : > { %vm776_vm15 = vmor %vm774_vm14, %vm775_vm13 }
 0x3c8   : > { %v2008_v14 = vmul.f32 %v1977_v12, %v1960_v36  ;;  %v771_v39 = vsub.f32 1.0, %v770_v50  ;;  %v1934_v12 = vrot.slane %v3370_v40, 6 }
 0x3ca   : > { %v2048_v58 = vrot.slane %v2008_v14, 4  ;;  %v772_v15 = vmul.f32 %v2558_v61, %v771_v39 }
 0x3cb   : > { %v1868_v17 = vpop.permute.xlu1 %1867 }
 0x3cc   : > { %v1908_v8 = vadd.f32 %v1868_v17, %v3259_v43  ;;  %v2050_v45 = vsel %vm2049_vm9, %v2048_v58, %v2047_v52  ;;  %v773_v3 = vadd.f32 %v2558_v61, %v772_v15  ;;  %v1939_v15 = vrot.slane %v2847_v13, 4 }
 0x3cd   : > { %v2053_v11 = vsel %vm2052_vm10, %v2051_v26, %v2050_v45 }
 0x3ce   : > { %v1963_v56 = vadd.f32 %v1932_v31, %v1908_v8  ;;  %v2056_v10 = vsel %vm2055_vm11, %v2054_v30, %v2053_v11  ;;  %v777_v5 = vsel %vm776_vm15, %v2558_v61, %v773_v3 }
 0x3cf   : > { %v782_v7 = vsel %vm779_vm0, %v781_v24, %v777_v5 }
 0x3d0   : > { %v2011_v16 = vmul.f32 %v1980_v0, %v1963_v56  ;;  %v785_v35 = vmul.f32 %v782_v7, %v3355_v57  ;;  %v1937_v56 = vrot.slane %v2847_v13, 2 }
 0x3d2   : > { %v2057_v18 = vrot.slane %v2011_v16, 1  ;;  %v1981_v25 = vrot.slane %v785_v35, 1  ;;  %v1982_v36 = vrot.slane %v785_v35, 2  ;;  %v1983_v9 = vrot.slane %v785_v35, 3 }
 0x3d3   : > { %v1984_v54 = vrot.slane %v785_v35, 4  ;;  %v1985_v11 = vrot.slane %v785_v35, 5  ;;  %v1987_v49 = vrot.slane %v785_v35, 7 }
 0x3d4   : > { %v2059_v43 = vsel %vm2058_vm12, %v2057_v18, %v2056_v10 }
 0x3d5   : > { %2428 = vmatmul.msk.f32.vlgmr.msrb.gmra.mxu1 %vm1186_vm1, %v2059_v43  ;;  %v1872_v53 = vpop.permute.xlu2 %1871 }
 0x3d6   : > { %v1910_v42 = vadd.f32 %v1872_v53, %v3289_v21  ;;  %v2498_v53 = vld [vmem:[%s3505_s11] ss:$0 sm:$0xff] }
 0x3d8   : > { %v1965_v2 = vadd.f32 %v1934_v12, %v1910_v42 }
 0x3da   : > { %v2013_v21 = vmul.f32 %v1981_v25, %v1965_v2 }
 0x3dc   : > { %v1870_v37 = vpop.permute.xlu1 %1869  ;;  %v2060_v6 = vrot.slane %v2013_v21, 7 }
 0x3dd   : > { %v1909_v4 = vadd.f32 %v1870_v37, %v3280_v20 }
 0x3df   : > { %v1964_v23 = vadd.f32 %v1933_v33, %v1909_v4 }
 0x3e1   : > { %v2012_v20 = vmul.f32 %v1964_v23, %v785_v35 }
 0x3e3   : > { %v2061_v1 = vsel %vm2040_vm6, %v2060_v6, %v2012_v20 }
 0x3f5   : > { %v1874_v38 = vpop.permute.xlu0 %1873  ;;  %v1876_v62 = vpop.permute.xlu2 %1875 }
 0x3f6   : > { %v1911_v41 = vadd.f32 %v1874_v38, %v3293_v44  ;;  %v1912_v28 = vadd.f32 %v1876_v62, %v3306_v32  ;;  %v1936_v44 = vrot.slane %v2847_v13, 1 }
 0x3f8   : > { %v1966_v57 = vadd.f32 %v1935_v51, %v1911_v41  ;;  %v1967_v47 = vadd.f32 %v2847_v13, %v1912_v28 }
 0x3fa   : > { %v2014_v63 = vmul.f32 %v1982_v36, %v1966_v57  ;;  %v2015_v14 = vmul.f32 %v1983_v9, %v1967_v47 }
 0x3fc   : > { %v2062_v60 = vrot.slane %v2014_v63, 6  ;;  %v2064_v19 = vrot.slane %v2015_v14, 5 }
 0x3fd   : > { %v1878_v48 = vpop.permute.xlu0 %1877 }
 0x3fe   : > { %v2063_v40 = vsel %vm2043_vm7, %v2062_v60, %v2061_v1  ;;  %v1913_v32 = vadd.f32 %v1878_v48, %v3300_v59  ;;  %v1986_v59 = vrot.slane %v785_v35, 6 }
 0x3ff   : > { %v2065_v58 = vsel %vm2046_vm8, %v2064_v19, %v2063_v40 }
 0x400   : > { %v1968_v17 = vadd.f32 %v1936_v44, %v1913_v32  ;;  %v2581_v44 = vmov -1.0  }
 0x402   : > { %v2016_v52 = vmul.f32 %v1984_v54, %v1968_v17 }
 0x404   : > { %v2066_v31 = vrot.slane %v2016_v52, 4 }
 0x406   : > { %v2067_v8 = vsel %vm2049_vm9, %v2066_v31, %v2065_v58 }
 0x40d   : > { %v1882_v22 = vpop.permute.xlu2 %1881 }
 0x40e   : > { %v1915_v45 = vadd.f32 %v1882_v22, %v3327_v27 }
 0x410   : > { %v1970_v26 = vadd.f32 %v1938_v55, %v1915_v45 }
 0x412   : > { %v2018_v18 = vmul.f32 %v1986_v59, %v1970_v26 }
 0x414   : > { %v2070_v61 = vrot.slane %v2018_v18, 2 }
 0x41d   : > { %v1880_v0 = vpop.permute.xlu1 %1879 }
 0x41e   : > { %v1914_v16 = vadd.f32 %v1880_v0, %v3314_v34 }
 0x420   : > { %v1969_v30 = vadd.f32 %v1937_v56, %v1914_v16 }
 0x422   : > { %v2017_v10 = vmul.f32 %v1985_v11, %v1969_v30 }
 0x424   : > { %v2068_v43 = vrot.slane %v2017_v10, 3 }
 0x426   : > { %v2069_v50 = vsel %vm2052_vm10, %v2068_v43, %v2067_v8 }
 0x427   : > { %v2071_v39 = vsel %vm2055_vm11, %v2070_v61, %v2069_v50  ;;  %vm2213_vm11 = vcmask 130048  }
 0x435   : > { %v1884_v27 = vpop.permute.xlu0 %1883 }
 0x436   : > { %v1916_v3 = vadd.f32 %v1884_v27, %v3374_v29 }
 0x438   : > { %v1971_v46 = vadd.f32 %v1939_v15, %v1916_v3 }
 0x43a   : > { %v2019_v5 = vmul.f32 %v1987_v49, %v1971_v46 }
 0x43c   : > { %v2072_v34 = vrot.slane %v2019_v5, 1 }
 0x43e   : > { %v2073_v24 = vsel %vm2058_vm12, %v2072_v34, %v2071_v39 }
 0x43f   : > { %2429 = vmatmul.msk.f32.gmra.mxu1 %vm1186_vm1, %v2073_v24 }
 0x452   : > { %v2095_v7 = vpop.f32.mrf.mxu1 }
 0x453   : > { %v2096_v37 = vadd.f32 %v2498_v53, %v2095_v7 }
 0x455   : > { %v2103_v42 = vmul.f32 0.70710677, %v2096_v37  ;;  %v2101_v54 = vmul.f32 0.5, %v2096_v37 }
 0x457   : > { %v2109_v12 = vand.u32 2147483647, %v2103_v42  ;;  %vm2105_vm5 = vcmp.ge.f32.partialorder %v2103_v42, 0.0 }
 0x458   : > { %v2107_v32 = vsel %vm2105_vm5, 1.0, %v2581_v44 }
 0x459   : > { %v2111_v4 = vmul.f32 0.3275911, %v2109_v12  ;;  %v2163_v41 = vsub.f32 0.0, %v2109_v12 }
 0x45b   : > { %v2113_v13 = vadd.f32 1.0, %v2111_v4  ;;  %v2165_v57 = vmul.f32 %v2163_v41, %v2109_v12 }
 0x45d   : > { %2559 = vrcp.f32 %v2113_v13  ;;  %v2126_v33 = vand.u32 2147483648, %v2113_v13  ;;  %v2124_v23 = vand.u32 2147483647, %v2113_v13  ;;  %vm2120_vm3 = vweird.f32 %v2113_v13 }
 0x45e   : > { %v2167_v20 = vmul.f32 1.442695, %v2165_v57 }
 0x45f   : > { %v2127_v62 = vor.u32 1.1754944e-38, %v2126_v33  ;;  %vm2125_vm4 = vcmp.eq.f32.partialorder %v2124_v23, 8.507059e+37 }
 0x460   : > { %2561 = vpow2.f32 %v2167_v20 }
 0x463   : > { %v2560_v29 = vpop.eup %2559 }
 0x464   : > { %v2116_v35 = vmul.f32 %v2560_v29, %v2113_v13  ;;  %vm2121_vm2 = vweird.f32 %v2560_v29 }
 0x465   : > { %vm2122_vm1 = vmor %vm2120_vm3, %vm2121_vm2 }
 0x466   : > { %v2117_v2 = vsub.f32 1.0, %v2116_v35  ;;  %v2562_v1 = vpop.eup %2561 }
 0x468   : > { %v2118_v25 = vmul.f32 %v2560_v29, %v2117_v2 }
 0x46a   : > { %v2119_v38 = vadd.f32 %v2560_v29, %v2118_v25 }
 0x46c   : > { %v2123_v51 = vsel %vm2122_vm1, %v2560_v29, %v2119_v38 }
 0x46d   : > { %v2128_v28 = vsel %vm2125_vm4, %v2127_v62, %v2123_v51 }
 0x46e   : > { %v2145_v21 = vmul.f32 1.0614054, %v2128_v28 }
 0x470   : > { %v2147_v36 = vadd.f32 -1.4531521, %v2145_v21 }
 0x472   : > { %v2149_v9 = vmul.f32 %v2147_v36, %v2128_v28 }
 0x474   : > { %v2151_v47 = vadd.f32 1.4214138, %v2149_v9 }
 0x476   : > { %v2153_v63 = vmul.f32 %v2151_v47, %v2128_v28 }
 0x478   : > { %v2155_v14 = vadd.f32 -0.28449672, %v2153_v63 }
 0x47a   : > { %v2157_v6 = vmul.f32 %v2155_v14, %v2128_v28  ;;  %v2582_v14 = vmov 512.0  }
 0x47c   : > { %v2159_v60 = vadd.f32 0.2548296, %v2157_v6 }
 0x47e   : > { %v2161_v19 = vmul.f32 %v2159_v60, %v2128_v28 }
 0x480   : > { %v2171_v48 = vmul.f32 %v2562_v1, %v2161_v19 }
 0x482   : > { %v2173_v40 = vsub.f32 1.0, %v2171_v48 }
 0x484   : > { %v2175_v58 = vmul.f32 %v2173_v40, %v2107_v32 }
 0x486   : > { %v2177_v17 = vadd.f32 1.0, %v2175_v58 }
 0x488   : > { %v2179_v52 = vmul.f32 %v2177_v17, %v2101_v54 }
 0x48a   : > { %2181 = vxpose.xlu1.b32.start [1/2] (short) (narrow) %v2179_v52, 32 }
 0x4bc   : > { %v2098_v31 = vpop.f32.mrf.mxu1 }
 0x4bd   : > { %v2099_v8 = vadd.f32 %v2498_v53, %v2098_v31 }
 0x4bf   : > { %v2104_v22 = vmul.f32 0.70710677, %v2099_v8  ;;  %v2102_v29 = vmul.f32 0.5, %v2099_v8  ;;  %v2299_v8 = vld [vmem:[%s3506_s12] sm:$0xff] }
 0x4c1   : > { %v2110_v45 = vand.u32 2147483647, %v2104_v22  ;;  %vm2106_vm10 = vcmp.ge.f32.partialorder %v2104_v22, 0.0  ;;  %v2583_v22 = vmov 0  }
 0x4c2   : > { %v2108_v4 = vsel %vm2106_vm10, 1.0, %v2581_v44  ;;  %2488 = vset.pattern.permute.xlu2 %v2583_v22  ;;  %2489 = vset.pattern.permute.xlu0 %v2583_v22 }
 0x4c3   : > { %v2112_v55 = vmul.f32 0.3275911, %v2110_v45  ;;  %v2164_v50 = vsub.f32 0.0, %v2110_v45 }
 0x4c5   : > { %v2114_v26 = vadd.f32 1.0, %v2112_v55  ;;  %v2166_v15 = vmul.f32 %v2164_v50, %v2110_v45  ;;  %v2302_v45 = vld [vmem:[%s3506_s12 + $0x18] sm:$0xff] }
 0x4c7   : > { %2563 = vrcp.f32 %v2114_v26  ;;  %v2141_v59 = vand.u32 2147483648, %v2114_v26  ;;  %v2139_v30 = vand.u32 2147483647, %v2114_v26  ;;  %vm2135_vm7 = vweird.f32 %v2114_v26 }
 0x4c8   : > { %v2169_v46 = vmul.f32 1.442695, %v2166_v15 }
 0x4c9   : > { %v2142_v10 = vor.u32 1.1754944e-38, %v2141_v59  ;;  %vm2140_vm9 = vcmp.eq.f32.partialorder %v2139_v30, 8.507059e+37 }
 0x4ca   : > { %2565 = vpow2.f32 %v2169_v46  ;;  %v2328_v46 = vld [vmem:[%s3507_s13 + $0x8] sm:$0xff] }
 0x4cb   : > { %2567 = vrcp.f32 %v2582_v14 }
 0x4cd   : > { %v2564_v0 = vpop.eup %2563 }
 0x4ce   : > { %v2131_v56 = vmul.f32 %v2564_v0, %v2114_v26  ;;  %vm2136_vm6 = vweird.f32 %v2564_v0 }
 0x4cf   : > { %vm2137_vm8 = vmor %vm2135_vm7, %vm2136_vm6 }
 0x4d0   : > { %v2132_v16 = vsub.f32 1.0, %v2131_v56  ;;  %v2566_v37 = vpop.eup %2565 }
 0x4d1   : > { %v2568_v6 = vpop.eup %2567 }
 0x4d2   : > { %v2133_v11 = vmul.f32 %v2564_v0, %v2132_v16  ;;  %v2239_v60 = vmul.f32 512.0, %v2568_v6  ;;  %vm2243_vm12 = vweird.f32 %v2568_v6 }
 0x4d4   : > { %v2134_v18 = vadd.f32 %v2564_v0, %v2133_v11  ;;  %v2240_v19 = vsub.f32 1.0, %v2239_v60 }
 0x4d6   : > { %v2138_v43 = vsel %vm2137_vm8, %v2564_v0, %v2134_v18  ;;  %v2241_v44 = vmul.f32 %v2568_v6, %v2240_v19 }
 0x4d7   : > { %v2143_v61 = vsel %vm2140_vm9, %v2142_v10, %v2138_v43 }
 0x4d8   : > { %v2146_v39 = vmul.f32 1.0614054, %v2143_v61  ;;  %v2242_v54 = vadd.f32 %v2568_v6, %v2241_v44 }
 0x4da   : > { %v2148_v27 = vadd.f32 -1.4531521, %v2146_v39  ;;  %v2244_v31 = vsel %vm2243_vm12, %v2568_v6, %v2242_v54 }
 0x4dc   : > { %v2150_v3 = vmul.f32 %v2148_v27, %v2143_v61 }
 0x4de   : > { %v2152_v49 = vadd.f32 1.4214138, %v2150_v3  ;;  %v2327_v3 = vld [vmem:[%s3507_s13] sm:$0xff] }
 0x4e0   : > { %v2154_v5 = vmul.f32 %v2152_v49, %v2143_v61  ;;  %v2300_v49 = vld [vmem:[%s3506_s12 + $0x8] sm:$0xff] }
 0x4e2   : > { %v2156_v34 = vadd.f32 -0.28449672, %v2154_v5  ;;  %v2329_v5 = vld [vmem:[%s3507_s13 + $0x10] sm:$0xff] }
 0x4e4   : > { %v2158_v24 = vmul.f32 %v2156_v34, %v2143_v61  ;;  %v2301_v34 = vld [vmem:[%s3506_s12 + $0x10] sm:$0xff] }
 0x4e6   : > { %v2160_v53 = vadd.f32 0.2548296, %v2158_v24  ;;  %v2330_v24 = vld [vmem:[%s3507_s13 + $0x18] sm:$0xff] }
 0x4e8   : > { %v2162_v7 = vmul.f32 %v2160_v53, %v2143_v61 }
 0x4ea   : > { %v2172_v42 = vmul.f32 %v2566_v37, %v2162_v7 }
 0x4ec   : > { %v2174_v12 = vsub.f32 1.0, %v2172_v42 }
 0x4ee   : > { %v2176_v13 = vmul.f32 %v2174_v12, %v2108_v4 }
 0x4f0   : > { %v2178_v35 = vadd.f32 1.0, %v2176_v13 }
 0x4f2   : > { %v2180_v2 = vmul.f32 %v2178_v35, %v2102_v29 }
 0x4f4   : > { %2182 = vxpose.xlu1.b32.end [2/2] (short) (narrow) %v2180_v2, 32 }
 0x547   : > { %2490 = vset.pattern.permute.xlu1 %v2583_v22 }
 0x55e   : > { %2315 = vperm.xlu1 %2490, %v2301_v34  }
 0x590   : > { %v2197_v33 = vpop.trf.xlu1 }
 0x591   : > { %2214 = vst.msk [vmem:[%s3433_s20] sm:$0xff] %vm2213_vm11, %v2197_v33 }
 0x598   : > { %v2198_v25 = vpop.trf.xlu1  ;;  %v2218_v51 = vld [vmem:[%s3433_s20] sm:$0xff] }
 0x599   : > { %2215 = vst.msk [vmem:[%s3433_s20 + $0x8] sm:$0xff] %vm2213_vm11, %v2198_v25  ;;  %v2222_v21 = vsel %vm2213_vm11, %v2218_v51, 0.0 }
 0x5a0   : > { %v2199_v23 = vpop.trf.xlu1  ;;  %v2219_v62 = vld [vmem:[%s3433_s20 + $0x8] sm:$0xff] }
 0x5a1   : > { %2216 = vst.msk [vmem:[%s3433_s20 + $0x10] sm:$0xff] %vm2213_vm11, %v2199_v23  ;;  %v2223_v28 = vsel %vm2213_vm11, %v2219_v62, 0.0 }
 0x5a2   : > { %v2224_v57 = vadd.f32 %v2223_v28, %v2222_v21 }
 0x5a8   : > { %v2200_v38 = vpop.trf.xlu1  ;;  %v2220_v41 = vld [vmem:[%s3433_s20 + $0x10] sm:$0xff] }
 0x5a9   : > { %2217 = vst.msk [vmem:[%s3433_s20 + $0x18] sm:$0xff] %vm2213_vm11, %v2200_v38  ;;  %v2225_v36 = vsel %vm2213_vm11, %v2220_v41, 0.0 }
 0x5aa   : > { %v2226_v47 = vadd.f32 %v2225_v36, %v2224_v57 }
 0x5b0   : > { %v2221_v9 = vld [vmem:[%s3433_s20 + $0x18] sm:$0xff] }
 0x5b1   : > { %v2227_v20 = vsel %vm2213_vm11, %v2221_v9, 0.0 }
 0x5b2   : > { %v2228_v63 = vadd.f32 %v2227_v20, %v2226_v47 }
 0x5b4   : > { %2229 = vadd.xlane.f32.xlu2 %v2228_v63 }
 0x5cc   : > { %2305 = vperm.xlu2 %2488, %v2299_v8  }
 0x5d4   : > { %2320 = vperm.xlu2 %2488, %v2302_v45  }
 0x5dc   : > { %2333 = vperm.xlu2 %2488, %v2327_v3  }
 0x5e4   : > { %2338 = vperm.xlu2 %2488, %v2328_v46  }
 0x5ec   : > { %2348 = vperm.xlu2 %2488, %v2330_v24  }
 0x627   : > { %v2230_v1 = vpop.xlane.xlu2 %2229 }
 0x628   : > { %v2231_v48 = vrot.slane %v2230_v1, 4 }
 0x62a   : > { %v2232_v40 = vadd.f32 %v2231_v48, %v2230_v1 }
 0x62c   : > { %v2233_v32 = vrot.slane %v2232_v40, 2 }
 0x62e   : > { %v2234_v58 = vadd.f32 %v2233_v32, %v2232_v40 }
 0x630   : > { %v2235_v17 = vrot.slane %v2234_v58, 1 }
 0x632   : > { %v2236_v52 = vadd.f32 %v2235_v17, %v2234_v58 }
 0x634   : > { %2434 = vpush %v2236_v52 }
 0x635   : > { %2436 = vpush %v2244_v31 }
 0x665   : > { %s2435_s25 = spop %2434 }
 0x666   : > { %s3457_s26 = spop %2436 }
 0x667   : > { %s2246_s27 = smul.f32 %s3457_s26, %s2435_s25 }
 0x669   : > { %v2247_v55 = vstv %s2246_s27 }
 0x66a   : > { %v2248_v26 = vsub.f32 %v2218_v51, %v2247_v55  ;;  %v2249_v0 = vsub.f32 %v2219_v62, %v2247_v55  ;;  %v2250_v56 = vsub.f32 %v2220_v41, %v2247_v55  ;;  %v2251_v16 = vsub.f32 %v2221_v9, %v2247_v55  ;;  %v2306_v51 = vpop.permute.xlu2 %2305  ;;  %v2316_v9 = vpop.permute.xlu1 %2315 }
 0x66c   : > { %v2252_v59 = vmul.f32 %v2248_v26, %v2248_v26  ;;  %v2253_v11 = vmul.f32 %v2249_v0, %v2249_v0  ;;  %v2254_v30 = vmul.f32 %v2250_v56, %v2250_v56  ;;  %v2255_v18 = vmul.f32 %v2251_v16, %v2251_v16 }
 0x66e   : > { %v2256_v10 = vsel %vm2213_vm11, %v2252_v59, 0.0  ;;  %v2257_v43 = vsel %vm2213_vm11, %v2253_v11, 0.0  ;;  %v2259_v50 = vsel %vm2213_vm11, %v2254_v30, 0.0  ;;  %v2261_v27 = vsel %vm2213_vm11, %v2255_v18, 0.0 }
 0x66f   : > { %v2258_v61 = vadd.f32 %v2257_v43, %v2256_v10 }
 0x671   : > { %v2260_v39 = vadd.f32 %v2259_v50, %v2258_v61 }
 0x672   : > { %v2321_v41 = vpop.permute.xlu2 %2320 }
 0x673   : > { %v2262_v15 = vadd.f32 %v2261_v27, %v2260_v39 }
 0x675   : > { %2263 = vadd.xlane.f32.xlu0 %v2262_v15 }
 0x67a   : > { %v2334_v28 = vpop.permute.xlu2 %2333 }
 0x682   : > { %v2339_v21 = vpop.permute.xlu2 %2338 }
 0x689   : > { %2310 = vperm.xlu0 %2489, %v2300_v49  }
 0x68a   : > { %v2349_v48 = vpop.permute.xlu2 %2348 }
 0x691   : > { %2343 = vperm.xlu0 %2489, %v2329_v5  }
 0x6e8   : > { %v2264_v53 = vpop.xlane.xlu0 %2263 }
 0x6e9   : > { %v2265_v7 = vrot.slane %v2264_v53, 4 }
 0x6eb   : > { %v2266_v37 = vadd.f32 %v2265_v7, %v2264_v53 }
 0x6ed   : > { %v2267_v42 = vrot.slane %v2266_v37, 2 }
 0x6ef   : > { %v2268_v12 = vadd.f32 %v2267_v42, %v2266_v37 }
 0x6f1   : > { %v2269_v4 = vrot.slane %v2268_v12, 1 }
 0x6f3   : > { %v2270_v13 = vadd.f32 %v2269_v4, %v2268_v12 }
 0x6f5   : > { %2438 = vpush %v2270_v13 }
 0x6fb   : > { %v2311_v36 = vpop.permute.xlu0 %2310 }
 0x703   : > { %v2344_v40 = vpop.permute.xlu0 %2343 }
 0x726   : > { %s2439_s27 = spop %2438 }
 0x727   : > { %s2280_s28 = smul.f32 %s2439_s27, %s3457_s26 }
 0x729   : > { %s2281_s15 = sadd.f32 1e-05, %s2280_s28 }
 0x72b   : > { %v2282_v29 = vstv %s2281_s15 }
 0x72c   : > { %2569 = vrsqrt.f32 %v2282_v29  ;;  %vm2289_vm14 = vweird.f32 %v2282_v29 }
 0x732   : > { %v2570_v35 = vpop.eup %2569 }
 0x733   : > { %v2284_v2 = vmul.f32 %v2570_v35, %v2282_v29  ;;  %vm2290_vm13 = vweird.f32 %v2570_v35 }
 0x734   : > { %vm2291_vm15 = vmor %vm2289_vm14, %vm2290_vm13 }
 0x735   : > { %v2285_v33 = vmul.f32 %v2570_v35, %v2284_v2 }
 0x737   : > { %v2286_v25 = vmul.f32 0.5, %v2285_v33 }
 0x739   : > { %v2287_v23 = vsub.f32 1.5, %v2286_v25 }
 0x73b   : > { %v2288_v38 = vmul.f32 %v2570_v35, %v2287_v23 }
 0x73d   : > { %v2292_v62 = vsel %vm2291_vm15, %v2570_v35, %v2288_v38 }
 0x73e   : > { %2440 = vpush %v2292_v62 }
 0x76f   : > { %s2441_s26 = spop %2440 }
 0x770   : > { %v2294_v57 = vstv %s2441_s26 }
 0x771   : > { %v2295_v47 = vmul.f32 %v2294_v57, %v2248_v26  ;;  %v2296_v20 = vmul.f32 %v2294_v57, %v2249_v0  ;;  %v2298_v63 = vmul.f32 %v2294_v57, %v2251_v16  ;;  %v2297_v14 = vmul.f32 %v2294_v57, %v2250_v56 }
 0x773   : > { %v2323_v6 = vmul.f32 %v2306_v51, %v2295_v47  ;;  %v2324_v60 = vmul.f32 %v2311_v36, %v2296_v20  ;;  %v2326_v19 = vmul.f32 %v2321_v41, %v2298_v63  ;;  %v2325_v1 = vmul.f32 %v2316_v9, %v2297_v14 }
 0x775   : > { %v2351_v44 = vadd.f32 %v2334_v28, %v2323_v6  ;;  %v2352_v32 = vadd.f32 %v2339_v21, %v2324_v60  ;;  %v2354_v58 = vadd.f32 %v2349_v48, %v2326_v19  ;;  %v2353_v54 = vadd.f32 %v2344_v40, %v2325_v1 }
 0x777   : > { %2355 = vst.msk [vmem:[%s3433_s20] sm:$0xff] %vm2213_vm11, %v2351_v44 }
 0x778   : > { %2356 = vst.msk [vmem:[%s3433_s20 + $0x8] sm:$0xff] %vm2213_vm11, %v2352_v32 }
 0x779   : > { %2358 = vst.msk [vmem:[%s3433_s20 + $0x18] sm:$0xff] %vm2213_vm11, %v2354_v58 }
 0x77a   : > { %2357 = vst.msk [vmem:[%s3433_s20 + $0x10] sm:$0xff] %vm2213_vm11, %v2353_v54 }
 0x77b PF: > { %s24_s29 = sadd.s32 1, %s2578_s29  }
 0x77c   : > { %p21_p4 = scmp.ge.s32.totalorder %s24_s29, 4  }
 0x77e   :  { %23 = sbr.rel (!%p21_p4) target bundleno = 1 (0x1), region = 165 }

</bundles_post_ra>
